<compile_context>
chip_gen: v7x
topology: tpu7x:2x2x1
jax: 0.10.0
libtpu: 0.0.40
codegen_flags: <defaults>
</compile_context>

<pallas_src>
import jax
import jax.numpy as jnp
from jax import lax
from jax.experimental import pallas as pl
from jax.experimental.pallas import tpu as pltpu


# ---------------------------------------------------------------------------
# Weight packing (runs once in XLA, outside the kernel).
# Banded ("Toeplitz over width") weights; kh folded into the contraction dim.
# ---------------------------------------------------------------------------
def _pack_weights(params):
    f32 = jnp.float32
    bf16 = jnp.bfloat16
    w1, b1 = params["c1_w"].astype(f32), params["c1_b"].astype(f32)   # (16,1,5,5),(16,)
    w2, b2 = params["c3_w"].astype(f32), params["c3_b"].astype(f32)   # (16,16,5,5),(16,)
    fw, fb = params["fc_w"].astype(f32), params["fc_b"].astype(f32)   # (10,256),(10,)

    # conv1: wb1[kh*32 + win, ow*16 + co] = w1[co,0,kh,win-ow]  (0<=win-ow<5)
    w1c = jnp.transpose(w1[:, 0], (1, 2, 0))                          # (kh,kw,co)
    win = jnp.arange(32)[:, None]
    ow = jnp.arange(24)[None, :]
    kw = win - ow
    valid = ((kw >= 0) & (kw < 5)).astype(f32)
    wb1 = w1c[:, jnp.clip(kw, 0, 4), :] * valid[None, :, :, None]     # (5,32,24,16)
    wb1 = wb1.reshape(5, 32, 384).reshape(160, 384)                   # K = 5*32

    # conv2: input lane packing after pool1 is 32*j + ci (ci<16 valid).
    # wb2[kh*384 + 32*win + ci, ow*16 + co] = w2[co,ci,kh,win-ow]; zero for ci>=16.
    w2c = jnp.transpose(w2, (2, 3, 1, 0))                             # (kh,kw,ci,co)
    win = jnp.arange(12)[:, None]
    ow = jnp.arange(8)[None, :]
    kw = win - ow
    valid = ((kw >= 0) & (kw < 5)).astype(f32)
    wb2 = w2c[:, jnp.clip(kw, 0, 4)] * valid[None, :, :, None, None]  # (5,12,8,16,16)
    wb2 = jnp.transpose(wb2, (0, 1, 3, 2, 4))                         # (kh,win,ci,ow,co)
    wb2 = jnp.pad(wb2, ((0, 0), (0, 0), (0, 16), (0, 0), (0, 0)))     # ci -> 32 lanes
    wb2 = wb2.reshape(5, 384, 128).reshape(1920, 128)                 # K = 5*384

    # FC on pooled lanes: feature at (pooled row q, lane 32*j + ci)
    # torch flatten index (NCHW .view) = ci*16 + q*4 + j.
    wfc = jnp.transpose(fw.reshape(10, 16, 4, 4), (2, 3, 1, 0))       # (q,j,ci,o)
    wfc = jnp.pad(wfc, ((0, 0), (0, 0), (0, 16), (0, 118)))           # (4,4,32,128)
    wfc = wfc.reshape(4, 128, 128)

    b1l = jnp.tile(b1, 24).reshape(1, 384)                            # lane = 16*ow+co
    b2l = jnp.tile(b2, 8).reshape(1, 128)
    fbl = jnp.pad(fb, (0, 118)).reshape(1, 128)
    return (wb1.astype(bf16), b1l, wb2.astype(bf16), b2l,
            wfc.astype(bf16), fbl)


# ---------------------------------------------------------------------------
# Fused forward kernel: one batch tile per grid step, everything in VMEM.
# Layout: image rows outermost, batch as sublanes -> all reshapes are free.
# ---------------------------------------------------------------------------
def _cnn_kernel(xe_ref, xo_ref, wb1_ref, b1_ref, wb2_ref, b2_ref,
                wfc_ref, bfc_ref, out_ref):
    f32 = jnp.float32
    bf16 = jnp.bfloat16
    tb = xe_ref.shape[1]

    xe = xe_ref[...]                                    # (14, tb, 32) even rows, bf16
    xo = xo_ref[...]                                    # (14, tb, 32) odd rows

    # ---- conv1 (5x5, 1->16): kh folded into K=160, one dot per row parity --
    # even output rows 2p use image rows 2p..2p+4; odd rows 2p+1 use 2p+1..2p+5
    lhs_e = jnp.concatenate(
        [xe[0:12], xo[0:12], xe[1:13], xo[1:13], xe[2:14]], axis=-1)  # (12,tb,160)
    lhs_o = jnp.concatenate(
        [xo[0:12], xe[1:13], xo[1:13], xe[2:14], xo[2:14]], axis=-1)
    lhs_e = lhs_e.reshape(12 * tb, 160)
    lhs_o = lhs_o.reshape(12 * tb, 160)
    wb1 = wb1_ref[...]                                  # (160, 384) bf16
    b1 = b1_ref[...]                                    # (1, 384) f32
    ye = jnp.maximum(jnp.dot(lhs_e, wb1, preferred_element_type=f32) + b1, 0.0)
    yo = jnp.maximum(jnp.dot(lhs_o, wb1, preferred_element_type=f32) + b1, 0.0)

    # ---- maxpool 2x2 #1: rows via parity max, cols via 16-lane rotate ------
    p = jnp.maximum(ye, yo)                             # (12*tb, 384)
    p = jnp.maximum(p, pltpu.roll(p, shift=384 - 16, axis=1))
    # valid pooled value for (col pair j, channel c) sits at lane 32*j + c;
    # the other lanes are garbage but only ever hit zero rows of wb2.
    p3 = p.astype(bf16).reshape(12, tb, 384)

    # ---- conv2 (5x5, 16->16): kh folded into K=1920, one dot ---------------
    lhs2 = jnp.concatenate([p3[kh:kh + 8] for kh in range(5)], axis=-1)  # (8,tb,1920)
    lhs2 = lhs2.reshape(8 * tb, 1920)
    acc2 = jnp.dot(lhs2, wb2_ref[...], preferred_element_type=f32)       # (8*tb,128)
    z = jnp.maximum(acc2 + b2_ref[...], 0.0)

    # ---- maxpool 2x2 #2: cols via rotate; rows folded into the FC dots -----
    z = jnp.maximum(z, pltpu.roll(z, shift=128 - 16, axis=1))
    z3 = z.reshape(8, tb, 128)

    # ---- FC(256->10) as 4 K=128 dots (one per pooled row), 128 padded lanes
    acc = jnp.zeros((tb, 128), f32)
    for q in range(4):
        zq = jnp.maximum(z3[2 * q], z3[2 * q + 1]).astype(bf16)          # (tb,128)
        acc = acc + jnp.dot(zq, wfc_ref[q], preferred_element_type=f32)
    out_ref[...] = (acc + bfc_ref[...]).astype(out_ref.dtype)


# ---------------------------------------------------------------------------
# Wrapper
# ---------------------------------------------------------------------------
def _tile_plan(batch):
    # >= 2 grid steps (megacore / v7x), tiles capped at 128 images (VMEM),
    # tile size a multiple of 8 (sublane alignment).
    n_steps = max(2, -(-batch // 128))
    tb = max(8, ((-(-batch // n_steps)) + 7) // 8 * 8)
    return tb, n_steps * tb


def cnn_forward(params, img):
    B = img.shape[0]
    assert img.shape[1:] == (1, 28, 28), "CNN expects (B,1,28,28) input"
    tb, bp = _tile_plan(B)

    x = img[:, 0].astype(jnp.float32)                  # (B,28,28)
    x = jnp.pad(x, ((0, bp - B), (0, 0), (0, 4)))      # (Bp,28,32): width -> 32
    x = jnp.transpose(x.astype(jnp.bfloat16), (1, 0, 2))   # (28,Bp,32) rows-major
    xe, xo = x[0::2], x[1::2]                          # (14,Bp,32) each

    wb1, b1l, wb2, b2l, wfc, fbl = _pack_weights(params)

    out = pl.pallas_call(
        _cnn_kernel,
        out_shape=jax.ShapeDtypeStruct((bp, 128), jnp.float32),
        grid=(bp // tb,),
        in_specs=[
            pl.BlockSpec((14, tb, 32), lambda i: (0, i, 0)),
            pl.BlockSpec((14, tb, 32), lambda i: (0, i, 0)),
            pl.BlockSpec((160, 384), lambda i: (0, 0)),        # VMEM-resident weights
            pl.BlockSpec((1, 384), lambda i: (0, 0)),
            pl.BlockSpec((1920, 128), lambda i: (0, 0)),
            pl.BlockSpec((1, 128), lambda i: (0, 0)),
            pl.BlockSpec((4, 128, 128), lambda i: (0, 0, 0)),
            pl.BlockSpec((1, 128), lambda i: (0, 0)),
        ],
        out_specs=pl.BlockSpec((tb, 128), lambda i: (i, 0)),
        compiler_params=pltpu.CompilerParams(
            dimension_semantics=("parallel",),
            vmem_limit_bytes=64 * 1024 * 1024),
    )(xe, xo, wb1, b1l, wb2, b2l, wfc, fbl)
    return out[:B, :10]


# ---------------------------------------------------------------------------
# Pure-XLA reference (same math as the PyTorch module).  mimic_bf16=True
# rounds operands/activations exactly where the kernel does (bf16 MXU inputs,
# f32 accumulation) so the kernel can be checked tightly.
# ---------------------------------------------------------------------------
def cnn_reference(params, img, mimic_bf16=False):
    f32 = jnp.float32
    q = (lambda a: a.astype(jnp.bfloat16).astype(f32)) if mimic_bf16 else (lambda a: a)
    y = lax.conv_general_dilated(q(img.astype(f32)), q(params["c1_w"]), (1, 1), "VALID",
                                 dimension_numbers=("NCHW", "OIHW", "NCHW"),
                                 precision=lax.Precision.HIGHEST)
    y = jnp.maximum(y + params["c1_b"][None, :, None, None], 0.0)
    B, C, H, W = y.shape
    y = y.reshape(B, C, H // 2, 2, W // 2, 2).max(axis=(3, 5))
    y = lax.conv_general_dilated(q(y), q(params["c3_w"]), (1, 1), "VALID",
                                 dimension_numbers=("NCHW", "OIHW", "NCHW"),
                                 precision=lax.Precision.HIGHEST)
    y = jnp.maximum(y + params["c3_b"][None, :, None, None], 0.0)
    B, C, H, W = y.shape
    y = y.reshape(B, C, H // 2, 2, W // 2, 2).max(axis=(3, 5))
    y = q(y).reshape(B, -1)
    return jnp.dot(y, q(params["fc_w"]).T,
                   precision=lax.Precision.HIGHEST) + params["fc_b"]


# ---------------------------------------------------------------------------
# Deterministic parameter init (shapes from the torch module)
# ---------------------------------------------------------------------------
def init_params(key):
    k1, k2, k3, k4, k5, k6 = jax.random.split(key, 6)
    return {
        "c1_w": 0.1 * jax.random.normal(k1, (16, 1, 5, 5), jnp.float32),
        "c1_b": 0.1 * jax.random.normal(k2, (16,), jnp.float32),
        "c3_w": 0.05 * jax.random.normal(k3, (16, 16, 5, 5), jnp.float32),
        "c3_b": 0.05 * jax.random.normal(k4, (16,), jnp.float32),
        "fc_w": 0.05 * jax.random.normal(k5, (10, 256), jnp.float32),
        "fc_b": 0.05 * jax.random.normal(k6, (10,), jnp.float32),
    }


if __name__ == "__main__":
    key = jax.random.PRNGKey(0)
    pkey, xkey = jax.random.split(key)
    params = init_params(pkey)
    # Input must be 1x28x28 so the flattened feature size is 16*4*4 = 256.
    img = jax.random.normal(xkey, (2, 1, 28, 28), jnp.float32)

    out = jax.jit(cnn_forward)(params, img)
    out = jax.block_until_ready(out)
    assert out.shape == (2, 10) and out.dtype == jnp.float32

    # Tight check against a reference that mirrors the kernel's bf16 operand
    # rounding (remaining diff is f32 accumulation order only).
    ref_q = cnn_reference(params, img, mimic_bf16=True)
    err_q = float(jnp.max(jnp.abs(out - ref_q)))
    assert jnp.allclose(out, ref_q, atol=1e-3, rtol=1e-3), (
        "bf16-matched reference mismatch, max abs diff %g" % err_q)

    # Sanity check against the full-precision f32 reference.
    ref_f = cnn_reference(params, img, mimic_bf16=False)
    err_f = float(jnp.max(jnp.abs(out - ref_f)))
    assert jnp.allclose(out, ref_f, atol=5e-2, rtol=5e-2), (
        "f32 reference mismatch, max abs diff %g" % err_f)

    print("KERNEL_OK")
</pallas_src>

<mosaic_0001>
module attributes {stable_mosaic.version = 11 : i64} {
  func.func @_cnn_kernel(%arg0: i32, %arg1: memref<14x8x32xbf16, #tpu.memory_space<vmem>>, %arg2: memref<14x8x32xbf16, #tpu.memory_space<vmem>>, %arg3: memref<160x384xbf16, #tpu.memory_space<vmem>>, %arg4: memref<1x384xf32, #tpu.memory_space<vmem>>, %arg5: memref<1920x128xbf16, #tpu.memory_space<vmem>>, %arg6: memref<1x128xf32, #tpu.memory_space<vmem>>, %arg7: memref<4x128x128xbf16, #tpu.memory_space<vmem>>, %arg8: memref<1x128xf32, #tpu.memory_space<vmem>>, %arg9: memref<8x128xf32, #tpu.memory_space<vmem>>) attributes {dimension_semantics = [#tpu.dimension_semantics<parallel>], iteration_bounds = array<i64: 2>, scalar_prefetch = 0 : i64, scratch_operands = 0 : i64, tpu.core_type = #tpu.core_type<tc>, window_params = [{transform_indices = @transform_0, window_bounds = array<i64: 14, 8, 32>}, {transform_indices = @transform_1, window_bounds = array<i64: 14, 8, 32>}, {pipeline_mode = #tpu.pipeline_mode<synchronous>, transform_indices = @transform_2, window_bounds = array<i64: 160, 384>}, {pipeline_mode = #tpu.pipeline_mode<synchronous>, transform_indices = @transform_3, window_bounds = array<i64: 1, 384>}, {pipeline_mode = #tpu.pipeline_mode<synchronous>, transform_indices = @transform_4, window_bounds = array<i64: 1920, 128>}, {pipeline_mode = #tpu.pipeline_mode<synchronous>, transform_indices = @transform_5, window_bounds = array<i64: 1, 128>}, {pipeline_mode = #tpu.pipeline_mode<synchronous>, transform_indices = @transform_6, window_bounds = array<i64: 4, 128, 128>}, {pipeline_mode = #tpu.pipeline_mode<synchronous>, transform_indices = @transform_7, window_bounds = array<i64: 1, 128>}, {transform_indices = @transform_8, window_bounds = array<i64: 8, 128>}]} {
    %c0 = arith.constant 0 : index
    %c0_0 = arith.constant 0 : index
    %c0_1 = arith.constant 0 : index
    %0 = vector.load %arg1[%c0, %c0_0, %c0_1] : memref<14x8x32xbf16, #tpu.memory_space<vmem>>, vector<14x8x32xbf16>
    %c0_2 = arith.constant 0 : index
    %c0_3 = arith.constant 0 : index
    %c0_4 = arith.constant 0 : index
    %1 = vector.load %arg2[%c0_2, %c0_3, %c0_4] : memref<14x8x32xbf16, #tpu.memory_space<vmem>>, vector<14x8x32xbf16>
    %2 = vector.extract_strided_slice %0 {offsets = [0, 0, 0], sizes = [12, 8, 32], strides = [1, 1, 1]} : vector<14x8x32xbf16> to vector<12x8x32xbf16>
    %3 = vector.extract_strided_slice %1 {offsets = [0, 0, 0], sizes = [12, 8, 32], strides = [1, 1, 1]} : vector<14x8x32xbf16> to vector<12x8x32xbf16>
    %4 = vector.extract_strided_slice %0 {offsets = [1, 0, 0], sizes = [12, 8, 32], strides = [1, 1, 1]} : vector<14x8x32xbf16> to vector<12x8x32xbf16>
    %5 = vector.extract_strided_slice %1 {offsets = [1, 0, 0], sizes = [12, 8, 32], strides = [1, 1, 1]} : vector<14x8x32xbf16> to vector<12x8x32xbf16>
    %6 = vector.extract_strided_slice %0 {offsets = [2, 0, 0], sizes = [12, 8, 32], strides = [1, 1, 1]} : vector<14x8x32xbf16> to vector<12x8x32xbf16>
    %7 = tpu.concatenate %2, %3, %4, %5, %6 in 2 : vector<12x8x32xbf16>, vector<12x8x32xbf16>, vector<12x8x32xbf16>, vector<12x8x32xbf16>, vector<12x8x32xbf16> -> vector<12x8x160xbf16>
    %8 = vector.extract_strided_slice %1 {offsets = [0, 0, 0], sizes = [12, 8, 32], strides = [1, 1, 1]} : vector<14x8x32xbf16> to vector<12x8x32xbf16>
    %9 = vector.extract_strided_slice %0 {offsets = [1, 0, 0], sizes = [12, 8, 32], strides = [1, 1, 1]} : vector<14x8x32xbf16> to vector<12x8x32xbf16>
    %10 = vector.extract_strided_slice %1 {offsets = [1, 0, 0], sizes = [12, 8, 32], strides = [1, 1, 1]} : vector<14x8x32xbf16> to vector<12x8x32xbf16>
    %11 = vector.extract_strided_slice %0 {offsets = [2, 0, 0], sizes = [12, 8, 32], strides = [1, 1, 1]} : vector<14x8x32xbf16> to vector<12x8x32xbf16>
    %12 = vector.extract_strided_slice %1 {offsets = [2, 0, 0], sizes = [12, 8, 32], strides = [1, 1, 1]} : vector<14x8x32xbf16> to vector<12x8x32xbf16>
    %13 = tpu.concatenate %8, %9, %10, %11, %12 in 2 : vector<12x8x32xbf16>, vector<12x8x32xbf16>, vector<12x8x32xbf16>, vector<12x8x32xbf16>, vector<12x8x32xbf16> -> vector<12x8x160xbf16>
    %14 = vector.shape_cast %7 : vector<12x8x160xbf16> to vector<96x160xbf16>
    %15 = vector.shape_cast %13 : vector<12x8x160xbf16> to vector<96x160xbf16>
    %c0_5 = arith.constant 0 : index
    %c0_6 = arith.constant 0 : index
    %16 = vector.load %arg3[%c0_5, %c0_6] : memref<160x384xbf16, #tpu.memory_space<vmem>>, vector<160x384xbf16>
    %c0_7 = arith.constant 0 : index
    %c0_8 = arith.constant 0 : index
    %17 = vector.load %arg4[%c0_7, %c0_8] : memref<1x384xf32, #tpu.memory_space<vmem>>, vector<1x384xf32>
    %cst = arith.constant dense<0.000000e+00> : vector<96x384xf32>
    %18 = tpu.matmul %14, %16, %cst {dimension_numbers = #tpu.dot_dimension_numbers<[1], [0], [0], [1], [0, 0, 1, 1], [], []>} : vector<96x160xbf16>, vector<160x384xbf16>, vector<96x384xf32> -> vector<96x384xf32>
    %19 = vector.broadcast %17 : vector<1x384xf32> to vector<96x384xf32>
    %20 = arith.addf %18, %19 : vector<96x384xf32>
    %cst_9 = arith.constant 0.000000e+00 : f32
    %21 = vector.broadcast %cst_9 : f32 to vector<96x384xf32>
    %22 = arith.maximumf %20, %21 : vector<96x384xf32>
    %cst_10 = arith.constant dense<0.000000e+00> : vector<96x384xf32>
    %23 = tpu.matmul %15, %16, %cst_10 {dimension_numbers = #tpu.dot_dimension_numbers<[1], [0], [0], [1], [0, 0, 1, 1], [], []>} : vector<96x160xbf16>, vector<160x384xbf16>, vector<96x384xf32> -> vector<96x384xf32>
    %24 = vector.broadcast %17 : vector<1x384xf32> to vector<96x384xf32>
    %25 = arith.addf %23, %24 : vector<96x384xf32>
    %cst_11 = arith.constant 0.000000e+00 : f32
    %26 = vector.broadcast %cst_11 : f32 to vector<96x384xf32>
    %27 = arith.maximumf %25, %26 : vector<96x384xf32>
    %28 = arith.maximumf %22, %27 : vector<96x384xf32>
    %c368_i32 = arith.constant 368 : i32
    %29 = tpu.dynamic_rotate %28 by %c368_i32 dim 1 : vector<96x384xf32>, i32 -> vector<96x384xf32>
    %30 = arith.maximumf %28, %29 : vector<96x384xf32>
    %31 = arith.truncf %30 : vector<96x384xf32> to vector<96x384xbf16>
    %32 = vector.shape_cast %31 : vector<96x384xbf16> to vector<12x8x384xbf16>
    %33 = vector.extract_strided_slice %32 {offsets = [0, 0, 0], sizes = [8, 8, 384], strides = [1, 1, 1]} : vector<12x8x384xbf16> to vector<8x8x384xbf16>
    %34 = vector.extract_strided_slice %32 {offsets = [1, 0, 0], sizes = [8, 8, 384], strides = [1, 1, 1]} : vector<12x8x384xbf16> to vector<8x8x384xbf16>
    %35 = vector.extract_strided_slice %32 {offsets = [2, 0, 0], sizes = [8, 8, 384], strides = [1, 1, 1]} : vector<12x8x384xbf16> to vector<8x8x384xbf16>
    %36 = vector.extract_strided_slice %32 {offsets = [3, 0, 0], sizes = [8, 8, 384], strides = [1, 1, 1]} : vector<12x8x384xbf16> to vector<8x8x384xbf16>
    %37 = vector.extract_strided_slice %32 {offsets = [4, 0, 0], sizes = [8, 8, 384], strides = [1, 1, 1]} : vector<12x8x384xbf16> to vector<8x8x384xbf16>
    %38 = tpu.concatenate %33, %34, %35, %36, %37 in 2 : vector<8x8x384xbf16>, vector<8x8x384xbf16>, vector<8x8x384xbf16>, vector<8x8x384xbf16>, vector<8x8x384xbf16> -> vector<8x8x1920xbf16>
    %39 = vector.shape_cast %38 : vector<8x8x1920xbf16> to vector<64x1920xbf16>
    %c0_12 = arith.constant 0 : index
    %c0_13 = arith.constant 0 : index
    %40 = vector.load %arg5[%c0_12, %c0_13] : memref<1920x128xbf16, #tpu.memory_space<vmem>>, vector<1920x128xbf16>
    %cst_14 = arith.constant dense<0.000000e+00> : vector<64x128xf32>
    %41 = tpu.matmul %39, %40, %cst_14 {dimension_numbers = #tpu.dot_dimension_numbers<[1], [0], [0], [1], [0, 0, 1, 1], [], []>} : vector<64x1920xbf16>, vector<1920x128xbf16>, vector<64x128xf32> -> vector<64x128xf32>
    %c0_15 = arith.constant 0 : index
    %c0_16 = arith.constant 0 : index
    %42 = vector.load %arg6[%c0_15, %c0_16] : memref<1x128xf32, #tpu.memory_space<vmem>>, vector<1x128xf32>
    %43 = vector.broadcast %42 : vector<1x128xf32> to vector<64x128xf32>
    %44 = arith.addf %41, %43 : vector<64x128xf32>
    %cst_17 = arith.constant 0.000000e+00 : f32
    %45 = vector.broadcast %cst_17 : f32 to vector<64x128xf32>
    %46 = arith.maximumf %44, %45 : vector<64x128xf32>
    %c112_i32 = arith.constant 112 : i32
    %47 = tpu.dynamic_rotate %46 by %c112_i32 dim 1 : vector<64x128xf32>, i32 -> vector<64x128xf32>
    %48 = arith.maximumf %46, %47 : vector<64x128xf32>
    %49 = vector.shape_cast %48 : vector<64x128xf32> to vector<8x8x128xf32>
    %cst_18 = arith.constant 0.000000e+00 : f32
    %50 = vector.broadcast %cst_18 : f32 to vector<8x128xf32>
    %51 = vector.extract_strided_slice %49 {offsets = [0, 0, 0], sizes = [1, 8, 128], strides = [1, 1, 1]} : vector<8x8x128xf32> to vector<1x8x128xf32>
    %52 = vector.shape_cast %51 : vector<1x8x128xf32> to vector<8x128xf32>
    %53 = vector.extract_strided_slice %49 {offsets = [1, 0, 0], sizes = [1, 8, 128], strides = [1, 1, 1]} : vector<8x8x128xf32> to vector<1x8x128xf32>
    %54 = vector.shape_cast %53 : vector<1x8x128xf32> to vector<8x128xf32>
    %55 = arith.maximumf %52, %54 : vector<8x128xf32>
    %56 = arith.truncf %55 : vector<8x128xf32> to vector<8x128xbf16>
    %c0_19 = arith.constant 0 : index
    %c0_20 = arith.constant 0 : index
    %c0_21 = arith.constant 0 : index
    %57 = vector.load %arg7[%c0_19, %c0_20, %c0_21] : memref<4x128x128xbf16, #tpu.memory_space<vmem>>, vector<1x128x128xbf16>
    %58 = vector.shape_cast %57 : vector<1x128x128xbf16> to vector<128x128xbf16>
    %cst_22 = arith.constant dense<0.000000e+00> : vector<8x128xf32>
    %59 = tpu.matmul %56, %58, %cst_22 {dimension_numbers = #tpu.dot_dimension_numbers<[1], [0], [0], [1], [0, 0, 1, 1], [], []>} : vector<8x128xbf16>, vector<128x128xbf16>, vector<8x128xf32> -> vector<8x128xf32>
    %60 = arith.addf %50, %59 : vector<8x128xf32>
    %61 = vector.extract_strided_slice %49 {offsets = [2, 0, 0], sizes = [1, 8, 128], strides = [1, 1, 1]} : vector<8x8x128xf32> to vector<1x8x128xf32>
    %62 = vector.shape_cast %61 : vector<1x8x128xf32> to vector<8x128xf32>
    %63 = vector.extract_strided_slice %49 {offsets = [3, 0, 0], sizes = [1, 8, 128], strides = [1, 1, 1]} : vector<8x8x128xf32> to vector<1x8x128xf32>
    %64 = vector.shape_cast %63 : vector<1x8x128xf32> to vector<8x128xf32>
    %65 = arith.maximumf %62, %64 : vector<8x128xf32>
    %66 = arith.truncf %65 : vector<8x128xf32> to vector<8x128xbf16>
    %c1 = arith.constant 1 : index
    %c0_23 = arith.constant 0 : index
    %c0_24 = arith.constant 0 : index
    %67 = vector.load %arg7[%c1, %c0_23, %c0_24] : memref<4x128x128xbf16, #tpu.memory_space<vmem>>, vector<1x128x128xbf16>
    %68 = vector.shape_cast %67 : vector<1x128x128xbf16> to vector<128x128xbf16>
    %cst_25 = arith.constant dense<0.000000e+00> : vector<8x128xf32>
    %69 = tpu.matmul %66, %68, %cst_25 {dimension_numbers = #tpu.dot_dimension_numbers<[1], [0], [0], [1], [0, 0, 1, 1], [], []>} : vector<8x128xbf16>, vector<128x128xbf16>, vector<8x128xf32> -> vector<8x128xf32>
    %70 = arith.addf %60, %69 : vector<8x128xf32>
    %71 = vector.extract_strided_slice %49 {offsets = [4, 0, 0], sizes = [1, 8, 128], strides = [1, 1, 1]} : vector<8x8x128xf32> to vector<1x8x128xf32>
    %72 = vector.shape_cast %71 : vector<1x8x128xf32> to vector<8x128xf32>
    %73 = vector.extract_strided_slice %49 {offsets = [5, 0, 0], sizes = [1, 8, 128], strides = [1, 1, 1]} : vector<8x8x128xf32> to vector<1x8x128xf32>
    %74 = vector.shape_cast %73 : vector<1x8x128xf32> to vector<8x128xf32>
    %75 = arith.maximumf %72, %74 : vector<8x128xf32>
    %76 = arith.truncf %75 : vector<8x128xf32> to vector<8x128xbf16>
    %c2 = arith.constant 2 : index
    %c0_26 = arith.constant 0 : index
    %c0_27 = arith.constant 0 : index
    %77 = vector.load %arg7[%c2, %c0_26, %c0_27] : memref<4x128x128xbf16, #tpu.memory_space<vmem>>, vector<1x128x128xbf16>
    %78 = vector.shape_cast %77 : vector<1x128x128xbf16> to vector<128x128xbf16>
    %cst_28 = arith.constant dense<0.000000e+00> : vector<8x128xf32>
    %79 = tpu.matmul %76, %78, %cst_28 {dimension_numbers = #tpu.dot_dimension_numbers<[1], [0], [0], [1], [0, 0, 1, 1], [], []>} : vector<8x128xbf16>, vector<128x128xbf16>, vector<8x128xf32> -> vector<8x128xf32>
    %80 = arith.addf %70, %79 : vector<8x128xf32>
    %81 = vector.extract_strided_slice %49 {offsets = [6, 0, 0], sizes = [1, 8, 128], strides = [1, 1, 1]} : vector<8x8x128xf32> to vector<1x8x128xf32>
    %82 = vector.shape_cast %81 : vector<1x8x128xf32> to vector<8x128xf32>
    %83 = vector.extract_strided_slice %49 {offsets = [7, 0, 0], sizes = [1, 8, 128], strides = [1, 1, 1]} : vector<8x8x128xf32> to vector<1x8x128xf32>
    %84 = vector.shape_cast %83 : vector<1x8x128xf32> to vector<8x128xf32>
    %85 = arith.maximumf %82, %84 : vector<8x128xf32>
    %86 = arith.truncf %85 : vector<8x128xf32> to vector<8x128xbf16>
    %c3 = arith.constant 3 : index
    %c0_29 = arith.constant 0 : index
    %c0_30 = arith.constant 0 : index
    %87 = vector.load %arg7[%c3, %c0_29, %c0_30] : memref<4x128x128xbf16, #tpu.memory_space<vmem>>, vector<1x128x128xbf16>
    %88 = vector.shape_cast %87 : vector<1x128x128xbf16> to vector<128x128xbf16>
    %cst_31 = arith.constant dense<0.000000e+00> : vector<8x128xf32>
    %89 = tpu.matmul %86, %88, %cst_31 {dimension_numbers = #tpu.dot_dimension_numbers<[1], [0], [0], [1], [0, 0, 1, 1], [], []>} : vector<8x128xbf16>, vector<128x128xbf16>, vector<8x128xf32> -> vector<8x128xf32>
    %90 = arith.addf %80, %89 : vector<8x128xf32>
    %c0_32 = arith.constant 0 : index
    %c0_33 = arith.constant 0 : index
    %91 = vector.load %arg8[%c0_32, %c0_33] : memref<1x128xf32, #tpu.memory_space<vmem>>, vector<1x128xf32>
    %92 = vector.broadcast %91 : vector<1x128xf32> to vector<8x128xf32>
    %93 = arith.addf %90, %92 : vector<8x128xf32>
    %c0_34 = arith.constant 0 : index
    %c0_35 = arith.constant 0 : index
    %94 = vector.load %arg9[%c0_34, %c0_35] : memref<8x128xf32, #tpu.memory_space<vmem>>, vector<8x128xf32>
    tpu.vector_store %arg9[%c0_34, %c0_35], %93 {strides = array<i32>} : memref<8x128xf32, #tpu.memory_space<vmem>>, vector<8x128xf32>,
    return
  }
  func.func @transform_0(%arg0: i32) -> (i32, i32, i32) {
    %c0_i32 = arith.constant 0 : i32
    %c0_i32_0 = arith.constant 0 : i32
    %c0_i32_1 = arith.constant 0 : i32
    return %c0_i32, %arg0, %c0_i32_0 : i32, i32, i32
  }
  func.func @transform_1(%arg0: i32) -> (i32, i32, i32) {
    %c0_i32 = arith.constant 0 : i32
    %c0_i32_0 = arith.constant 0 : i32
    %c0_i32_1 = arith.constant 0 : i32
    return %c0_i32, %arg0, %c0_i32_0 : i32, i32, i32
  }
  func.func @transform_2(%arg0: i32) -> (i32, i32) {
    %c0_i32 = arith.constant 0 : i32
    %c0_i32_0 = arith.constant 0 : i32
    %c0_i32_1 = arith.constant 0 : i32
    return %c0_i32, %c0_i32_0 : i32, i32
  }
  func.func @transform_3(%arg0: i32) -> (i32, i32) {
    %c0_i32 = arith.constant 0 : i32
    %c0_i32_0 = arith.constant 0 : i32
    %c0_i32_1 = arith.constant 0 : i32
    return %c0_i32, %c0_i32_0 : i32, i32
  }
  func.func @transform_4(%arg0: i32) -> (i32, i32) {
    %c0_i32 = arith.constant 0 : i32
    %c0_i32_0 = arith.constant 0 : i32
    %c0_i32_1 = arith.constant 0 : i32
    return %c0_i32, %c0_i32_0 : i32, i32
  }
  func.func @transform_5(%arg0: i32) -> (i32, i32) {
    %c0_i32 = arith.constant 0 : i32
    %c0_i32_0 = arith.constant 0 : i32
    %c0_i32_1 = arith.constant 0 : i32
    return %c0_i32, %c0_i32_0 : i32, i32
  }
  func.func @transform_6(%arg0: i32) -> (i32, i32, i32) {
    %c0_i32 = arith.constant 0 : i32
    %c0_i32_0 = arith.constant 0 : i32
    %c0_i32_1 = arith.constant 0 : i32
    %c0_i32_2 = arith.constant 0 : i32
    return %c0_i32, %c0_i32_0, %c0_i32_1 : i32, i32, i32
  }
  func.func @transform_7(%arg0: i32) -> (i32, i32) {
    %c0_i32 = arith.constant 0 : i32
    %c0_i32_0 = arith.constant 0 : i32
    %c0_i32_1 = arith.constant 0 : i32
    return %c0_i32, %c0_i32_0 : i32, i32
  }
  func.func @transform_8(%arg0: i32) -> (i32, i32) {
    %c0_i32 = arith.constant 0 : i32
    %c0_i32_0 = arith.constant 0 : i32
    return %arg0, %c0_i32 : i32, i32
  }
}

</mosaic_0001>

<bundles_post_ra>
// kernel: tile.13
= control target key start
LH: loop header
LB: loop body
LE: loop exit
PB: predicated region body
PF: predicated region fallthrough
CT: control target
= control target key end

     0   :  { %s34_s0 = inlined_call_operand.vmem [shape: f32[16], index: 0, kind: input, shape index: {}]   ;;  %s35_s1 = inlined_call_operand.vmem [shape: f32[24,16], index: 1, kind: output, shape index: {}]  }
   0x1   :  { %v4_v0 = vld [vmem:[%s34_s0] ss:$0 sm:$0xff] }
   0x2   :  { %5 = vst [vmem:[%s35_s1] sm:$0xff] %v4_v0  ;;  %10 = vst [vmem:[%s35_s1 + $0x8] sm:$0xff] %v4_v0 }
   0x3   :  { %11 = vst [vmem:[%s35_s1 + $0x10] sm:$0xff] %v4_v0 }

// kernel: tile.14
= control target key start
LH: loop header
LB: loop body
LE: loop exit
PB: predicated region body
PF: predicated region fallthrough
CT: control target
= control target key end

     0   :  { %s115_s8 = smov 112   ;;  %s116_s11 = smov 80   ;;  %vm4_vm0 = vcmask 130048   ;;  %s169_s0 = inlined_call_operand.vmem [shape: f32[24,16], index: 0, kind: input, shape index: {}]   ;;  %s170_s1 = inlined_call_operand.hbm [shape: f32[1,384], index: 1, kind: output, shape index: {}]  }
   0x1   :  { %v76_v0 = vld [vmem:[%s169_s0 + $0x7] ss:$8 sm:$0x7]   ;;  %v78_v1 = vld [vmem:[%s169_s0 + $0x5] ss:$8 sm:$0x7]  }
   0x2   :  { %8 = vrot.lane.b32.xlu0 %v76_v0, %s115_s8  ;;  %20 = vrot.lane.b32.xlu1 %v78_v1, %s116_s11  ;;  %v77_v2 = vld [vmem:[%s169_s0 + $0x6] ss:$8 sm:$0x7]   ;;  %v79_v3 = vld [vmem:[%s169_s0 + $0x4] ss:$8 sm:$0x7]  }
   0x3   :  { %s117_s16 = smov 96   ;;  %v3_v4 = vld [vmem:[%s169_s0] ss:$8 sm:$0x7]   ;;  %s118_s19 = smov 64  }
   0x4   :  { %v80_v5 = vld [vmem:[%s169_s0 + $0x3] ss:$8 sm:$0x7]   ;;  %5 = vst.msk [vmem:[#allocation2] ss:$8 sm:$0x7] %vm4_vm0, %v3_v4  }
   0x6   :  { %14 = vrot.lane.b32.xlu0 %v77_v2, %s117_s16  ;;  %26 = vrot.lane.b32.xlu1 %v79_v3, %s118_s19 }
   0x7   :  { %2 = vsyncpa [#allocation1], 0  ;;  %v81_v6 = vld [vmem:[%s169_s0 + $0x2] ss:$8 sm:$0x7]   ;;  %s119_s24 = smov 48  }
   0x8   :  { %s120_s25 = smov 32   ;;  %v82_v7 = vld [vmem:[%s169_s0 + $0x1] ss:$8 sm:$0x7]   ;;  %s121_s0 = smov 16   ;;  %vm10_vm1 = vcmask 1048448  }
   0x9   :  { %vm16_vm2 = vcmask 917248   ;;  %vm22_vm3 = vcmask 786048   ;;  %vm28_vm4 = vcmask 654848   ;;  %vm34_vm5 = vcmask 523648   ;;  %s122_s28 = smov [#allocation0]  }
   0xa   :  { %32 = vrot.lane.b32.xlu0 %v80_v5, %s119_s24  ;;  %38 = vrot.lane.b32.xlu1 %v81_v6, %s120_s25  ;;  %vm40_vm6 = vcmask 392448   ;;  %vm46_vm7 = vcmask 261248   ;;  %s69_s29 = sshll.u32 %s122_s28, 4  ;;  %s70_s29 = int_to_ptr.vmem [resolvable:$true] %s69_s29 }
   0xb   :  { %s91_s30 = scalar_lea.vmem %s70_s29, 48  ;;  %s95_s2 = scalar_lea.vmem %s70_s29, 64 }
   0xc   :  { %p92_p0 = scmp.ne.s32.totalorder %s70_s29, %s91_s30  ;;  %p96_p1 = scmp.lt.s32.totalorder %s70_s29, %s70_s29 }
   0xd   :  { %p97_p2 = scmp.lt.s32.totalorder %s95_s2, %s91_s30 }
   0xe   :  { %44 = vrot.lane.b32.xlu0 %v82_v7, %s121_s0 }
   0xf   :  { %p98_p3 = por %p97_p2, %p96_p1 }
  0x11   :  { %p99_p4 = pnand %p98_p3, %p92_p0 }
  0x74   :  { %v9_v8 = vpop.permute.xlu0 %8   ;;  %v21_v9 = vpop.permute.xlu1 %20  }
  0x75   :  { %11 = vst.msk [vmem:[#allocation2] ss:$8 sm:$0x7] %vm10_vm1, %v9_v8  }
  0x78   :  { %v15_v10 = vpop.permute.xlu0 %14   ;;  %v27_v11 = vpop.permute.xlu1 %26  }
  0x79   :  { %17 = vst.msk [vmem:[#allocation2] ss:$8 sm:$0x7] %vm16_vm2, %v15_v10  }
  0x7a   :  { %23 = vst.msk [vmem:[#allocation2] ss:$8 sm:$0x7] %vm22_vm3, %v21_v9  }
  0x7b   :  { %29 = vst.msk [vmem:[#allocation2] ss:$8 sm:$0x7] %vm28_vm4, %v27_v11  }
  0x7c   :  { %v33_v12 = vpop.permute.xlu0 %32   ;;  %v39_v13 = vpop.permute.xlu1 %38  }
  0x7d   :  { %35 = vst.msk [vmem:[#allocation2] ss:$8 sm:$0x7] %vm34_vm5, %v33_v12  }
  0x7e   :  { %41 = vst.msk [vmem:[#allocation2] ss:$8 sm:$0x7] %vm40_vm6, %v39_v13  }
  0x80   :  { %v45_v14 = vpop.permute.xlu0 %44  }
  0x81   :  { %47 = vst.msk [vmem:[#allocation2] ss:$8 sm:$0x7] %vm46_vm7, %v45_v14  }
  0x88   :  { %v51_v15 = vld [vmem:[#allocation2] sm:$0x1]  ;;  %v55_v16 = vld [vmem:[#allocation2 + $0x8] sm:$0x1]  ;;  %v60_v17 = vld [vmem:[#allocation2 + $0x10] sm:$0x1] }
  0x89   :  { %53 = vst [vmem:[#allocation0] sm:$0x1] %v51_v15  ;;  %58 = vst [vmem:[#allocation0 + $0x1] sm:$0x1] %v55_v16 }
  0x8a   :  { %64 = vst [vmem:[#allocation0 + $0x2] sm:$0x1] %v60_v17 }
  0x8b   :  { %102 = shalt.err (!%p99_p4)
}
  0x8c   :  { %s103_s5 = scalar_lea.hbm %s170_s1, 48 }
  0x8d   :  { %p104_p5 = scmp.ne.s32.totalorder %s170_s1, %s103_s5  ;;  %p107_p6 = scmp.lt.u32.totalorder %s103_s5, %s170_s1 }
  0x8f   :  { %p109_p7 = pnand %p107_p6, %p104_p5 }
  0x91   :  { %112 = shalt.err (!%p109_p7)
}
  0x92   :  { %72 = dma.vmem_to_hbm [thread:$0]  %s70_s29, 48, %s170_s1, [#allocation1]  }
  0x93   :  { %113 = dma.done.wait [#allocation1], 48  }
  0x94   :  { %114 = vsyncadd [#allocation1], 4294967248 }
  0x95   :  { %74 = vsyncpa [#allocation1], 1 }

// kernel: tile.18
= control target key start
LH: loop header
LB: loop body
LE: loop exit
PB: predicated region body
PF: predicated region fallthrough
CT: control target
= control target key end

     0   :  { %s22_s0 = inlined_call_operand.vmem [shape: f32[16], index: 0, kind: input, shape index: {}]   ;;  %s23_s1 = inlined_call_operand.vmem [shape: f32[8,16], index: 1, kind: output, shape index: {}]  }
   0x1   :  { %v4_v0 = vld [vmem:[%s22_s0] ss:$0 sm:$0xff] }
   0x2   :  { %5 = vst [vmem:[%s23_s1] sm:$0xff] %v4_v0 }

// kernel: tile.19
= control target key start
LH: loop header
LB: loop body
LE: loop exit
PB: predicated region body
PF: predicated region fallthrough
CT: control target
= control target key end

     0   :  { %s103_s10 = smov 112   ;;  %s104_s11 = smov 80   ;;  %vm4_vm0 = vcmask 130048   ;;  %s157_s0 = inlined_call_operand.vmem [shape: f32[8,16], index: 0, kind: input, shape index: {}]   ;;  %s158_s1 = inlined_call_operand.hbm [shape: f32[1,128], index: 1, kind: output, shape index: {}]  }
   0x1   :  { %v64_v0 = vld [vmem:[%s157_s0 + $0x7] sm:$0x1]   ;;  %v66_v1 = vld [vmem:[%s157_s0 + $0x5] sm:$0x1]   ;;  %v65_v2 = vld [vmem:[%s157_s0 + $0x6] sm:$0x1]  }
   0x2   :  { %8 = vrot.lane.b32.xlu0 %v64_v0, %s103_s10  ;;  %20 = vrot.lane.b32.xlu1 %v66_v1, %s104_s11  ;;  %v67_v3 = vld [vmem:[%s157_s0 + $0x4] sm:$0x1]   ;;  %v3_v4 = vld [vmem:[%s157_s0] sm:$0x1]  }
   0x3   :  { %2 = vsyncpa [#allocation1], 0  ;;  %s105_s18 = smov 96   ;;  %s106_s19 = smov 64   ;;  %5 = vst.msk [vmem:[#allocation2] sm:$0x1] %vm4_vm0, %v3_v4  }
   0x4   :  { %v68_v5 = vld [vmem:[%s157_s0 + $0x3] sm:$0x1]   ;;  %v69_v6 = vld [vmem:[%s157_s0 + $0x2] sm:$0x1]   ;;  %s107_s24 = smov 48   ;;  %s108_s25 = smov 32  }
   0x5   :  { %v70_v7 = vld [vmem:[%s157_s0 + $0x1] sm:$0x1]   ;;  %s109_s0 = smov 16   ;;  %vm10_vm1 = vcmask 1048448   ;;  %vm16_vm2 = vcmask 917248   ;;  %vm22_vm3 = vcmask 786048  }
   0x6   :  { %14 = vrot.lane.b32.xlu0 %v65_v2, %s105_s18  ;;  %26 = vrot.lane.b32.xlu1 %v67_v3, %s106_s19  ;;  %vm28_vm4 = vcmask 654848   ;;  %vm34_vm5 = vcmask 523648   ;;  %vm40_vm6 = vcmask 392448   ;;  %vm46_vm7 = vcmask 261248   ;;  %s110_s28 = smov [#allocation0]  }
   0x7   :  { %s58_s29 = sshll.u32 %s110_s28, 4  ;;  %s59_s29 = int_to_ptr.vmem [resolvable:$true] %s58_s29 }
   0x8   :  { %s79_s30 = scalar_lea.vmem %s59_s29, 16  ;;  %s83_s2 = scalar_lea.vmem %s59_s29, 32 }
   0x9   :  { %p80_p0 = scmp.ne.s32.totalorder %s59_s29, %s79_s30  ;;  %p84_p1 = scmp.lt.s32.totalorder %s59_s29, %s59_s29 }
   0xa   :  { %32 = vrot.lane.b32.xlu0 %v68_v5, %s107_s24  ;;  %38 = vrot.lane.b32.xlu1 %v69_v6, %s108_s25  ;;  %p85_p2 = scmp.lt.s32.totalorder %s83_s2, %s79_s30 }
   0xc   :  { %p86_p3 = por %p85_p2, %p84_p1 }
   0xe   :  { %44 = vrot.lane.b32.xlu0 %v70_v7, %s109_s0  ;;  %p87_p4 = pnand %p86_p3, %p80_p0 }
  0x74   :  { %v9_v8 = vpop.permute.xlu0 %8   ;;  %v21_v9 = vpop.permute.xlu1 %20  }
  0x75   :  { %11 = vst.msk [vmem:[#allocation2] sm:$0x1] %vm10_vm1, %v9_v8  }
  0x78   :  { %v15_v10 = vpop.permute.xlu0 %14   ;;  %v27_v11 = vpop.permute.xlu1 %26  }
  0x79   :  { %17 = vst.msk [vmem:[#allocation2] sm:$0x1] %vm16_vm2, %v15_v10  }
  0x7a   :  { %23 = vst.msk [vmem:[#allocation2] sm:$0x1] %vm22_vm3, %v21_v9  }
  0x7b   :  { %29 = vst.msk [vmem:[#allocation2] sm:$0x1] %vm28_vm4, %v27_v11  }
  0x7c   :  { %v33_v12 = vpop.permute.xlu0 %32   ;;  %v39_v13 = vpop.permute.xlu1 %38  }
  0x7d   :  { %35 = vst.msk [vmem:[#allocation2] sm:$0x1] %vm34_vm5, %v33_v12  }
  0x7e   :  { %41 = vst.msk [vmem:[#allocation2] sm:$0x1] %vm40_vm6, %v39_v13  }
  0x80   :  { %v45_v14 = vpop.permute.xlu0 %44  }
  0x81   :  { %47 = vst.msk [vmem:[#allocation2] sm:$0x1] %vm46_vm7, %v45_v14  }
  0x88   :  { %v51_v15 = vld [vmem:[#allocation2] sm:$0x1] }
  0x89   :  { %53 = vst [vmem:[#allocation0] sm:$0x1] %v51_v15 }
  0x8a   :  { %90 = shalt.err (!%p87_p4)
}
  0x8b   :  { %s91_s5 = scalar_lea.hbm %s158_s1, 16 }
  0x8c   :  { %p92_p5 = scmp.ne.s32.totalorder %s158_s1, %s91_s5  ;;  %p95_p6 = scmp.lt.u32.totalorder %s91_s5, %s158_s1 }
  0x8e   :  { %p97_p7 = pnand %p95_p6, %p92_p5 }
  0x90   :  { %100 = shalt.err (!%p97_p7)
}
  0x91   :  { %61 = dma.vmem_to_hbm [thread:$0]  %s59_s29, 16, %s158_s1, [#allocation1]  }
  0x92   :  { %101 = dma.done.wait [#allocation1], 16  }
  0x93   :  { %102 = vsyncadd [#allocation1], 4294967280 }
  0x94   :  { %63 = vsyncpa [#allocation1], 1 }

// kernel: cnn_forward.1
= control target key start
LH: loop header
LB: loop body
LE: loop exit
PB: predicated region body
PF: predicated region fallthrough
CT: control target
= control target key end

     0   :  { %s7200_s0 = inlined_call_operand.hbm [shape: bf16[14,16,32], index: 0, kind: input, shape index: {}]   ;;  %s7201_s1 = inlined_call_operand.hbm [shape: bf16[14,16,32], index: 1, kind: input, shape index: {}]   ;;  %s7202_s2 = inlined_call_operand.hbm [shape: bf16[160,384], index: 2, kind: input, shape index: {}]   ;;  %s7203_s3 = inlined_call_operand.hbm [shape: f32[1,384], index: 3, kind: input, shape index: {}]   ;;  %s7204_s4 = inlined_call_operand.hbm [shape: bf16[1920,128], index: 4, kind: input, shape index: {}]   ;;  %s7205_s5 = inlined_call_operand.hbm [shape: f32[1,128], index: 5, kind: input, shape index: {}]   ;;  %s7206_s6 = inlined_call_operand.hbm [shape: bf16[4,128,128], index: 6, kind: input, shape index: {}]   ;;  %s7207_s7 = inlined_call_operand.hbm [shape: f32[1,128], index: 7, kind: input, shape index: {}]   ;;  %s7208_s8 = inlined_call_operand.hbm [shape: f32[16,128], index: 8, kind: output, shape index: {}]  }
   0x1   :  { %7217 = sst [smem:[#allocation24_spill]] %s7200_s0 }
   0x2   :  { %7218 = sst [smem:[#allocation25_spill]] %s7202_s2 }
   0x3   :  { %7219 = sst [smem:[#allocation26_spill]] %s7203_s3 }
   0x4   :  { %7220 = sst [smem:[#allocation27_spill]] %s7204_s4 }
   0x5   :  { %7221 = sst [smem:[#allocation28_spill]] %s7205_s5 }
   0x6   :  { %7222 = sst [smem:[#allocation29_spill]] %s7206_s6 }
   0x7   :  { %13 = vsyncpa [#allocation3], 0 }
   0x8   :  { %15 = vsyncpa [#allocation3 + $0x1], 0 }
   0x9   :  { %16 = vsyncpa [#allocation6], 0 }
   0xa   :  { %18 = vsyncpa [#allocation6 + $0x1], 0 }
   0xb   :  { %19 = vsyncpa [#allocation9], 0 }
   0xc   :  { %20 = vsyncpa [#allocation12], 0 }
   0xd   :  { %21 = vsyncpa [#allocation15], 0 }
   0xe   :  { %22 = vsyncpa [#allocation4], 0 }
   0xf   :  { %24 = vsyncpa [#allocation4 + $0x1], 0  ;;  %s5662_s27 = smov 0   ;;  %s5664_s28 = smov 0  }
  0x10   :  { %s5666_s29 = smov 0   ;;  %s5668_s30 = smov 0  }
  0x11 LB: > { %s5596_s9 = smov [#allocation7]   ;;  %s5683_s11 = sadd.s32 4294967295, %s5594_s30   ;;  %s5594_s30 = sphi %s5668_s30, %s7255_s30   ;;  %s5590_s29 = sphi %s5666_s29, %s7254_s29   ;;  %s5586_s28 = sphi %s5664_s28, %s7253_s28   ;;  %s5582_s27 = sphi %s5662_s27, %s7252_s27  }
  0x12   : > { %s251_s10 = sshll.u32 %s5596_s9, 4  ;;  %p4067_p0 = scmp.ge.s32.totalorder %s5594_s30, 1  ;;  %s5688_s10 = int_to_ptr.vmem [resolvable:$true] %s251_s10 }
  0x13   : > { %p7209_p1 = scmp.eq.s32.totalorder %s5683_s11, 0  ;;  %p239_p2 = scmp.lt.s32.totalorder %s5594_s30, 3 }
  0x14   : > { %s5597_s13 = smov [#allocation8]   ;;  %s5598_s16 = smov [#allocation11]  }
  0x15   : > { %p5690_p3 = pnand %p4067_p0, %p239_p2  ;;  %s265_s14 = sshll.u32 %s5597_s13, 4  ;;  %s5703_s14 = int_to_ptr.vmem [resolvable:$true] %s265_s14 }
  0x16   : > { %s289_s17 = sshll.u32 %s5598_s16, 4  ;;  %s7225_s2 = sld [smem:[#allocation25_spill]]  ;;  %s5705_s17 = int_to_ptr.vmem [resolvable:$true] %s289_s17 }
  0x17   : > { %s7223_s12 = scalar_select %p5690_p3, 1, 0 }
  0x18   : > { %p4812_p5 = pneg %p5690_p3 }
  0x1a   : > { %p5699_p6 = pnand %p4812_p5, %p7209_p1 }
  0x1c   : > { %s5280_s20 = scalar_lea.hbm %s7225_s2, 3840  ;;  %p5715_p8 = pneg %p5699_p6 }
  0x1d   : > { %p5281_p7 = scmp.ne.s32.totalorder %s7225_s2, %s5280_s20  ;;  %p5287_p11 = scmp.lt.u32.totalorder %s5280_s20, %s7225_s2 }
  0x1f   : > { %p5283_p9 = pnand %p5715_p8, %p5281_p7 }
  0x21   : > { %p5284_p10 = pneg %p5283_p9 }
  0x23   : > { %p5289_p12 = pnand %p5287_p11, %p5284_p10 }
  0x25   : > { %5292 = shalt.err (!%p5289_p12)
}
  0x26   : > { %s5293_s26 = scalar_lea.vmem %s5688_s10, 3840  ;;  %p5301_p5 = scmp.lt.s32.totalorder %s5688_s10, %s5688_s10 }
  0x27   : > { %p5294_p13 = scmp.ne.s32.totalorder %s5688_s10, %s5293_s26  ;;  %p5302_p4 = scmp.lt.s32.totalorder %s5293_s26, %s5293_s26 }
  0x29   : > { %p5296_p0 = pnand %p5294_p13, %p5715_p8  ;;  %p5303_p7 = por %p5302_p4, %p5301_p5 }
  0x2b   : > { %p5297_p2 = pneg %p5296_p0 }
  0x2d   : > { %p5304_p9 = pnand %p5303_p7, %p5297_p2 }
  0x2f   : > { %5307 = shalt.err (!%p5304_p9)
}
  0x30   : > { %s5599_s9 = smov 192   ;;  %s5600_s13 = smov 12  }
  0x31   : > { %4815 = dma.hbm_to_vmem [thread:$0]  (!%p5699_p6), %s7225_s2, 3840, %s5688_s10, [#allocation6], %s5599_s9, %s5599_s9, %s5600_s13  }
  0x32   : > { %s7227_s3 = sld [smem:[#allocation26_spill]] }
  0x38   : > { %s5308_s21 = scalar_lea.hbm %s7227_s3, 48 }
  0x39   : > { %p5309_p4 = scmp.ne.s32.totalorder %s7227_s3, %s5308_s21  ;;  %p5315_p12 = scmp.lt.u32.totalorder %s5308_s21, %s7227_s3 }
  0x3b   : > { %p5311_p10 = pnand %p5309_p4, %p5715_p8 }
  0x3d   : > { %p5312_p11 = pneg %p5311_p10 }
  0x3f   : > { %p5317_p13 = pnand %p5315_p12, %p5312_p11 }
  0x41   : > { %5320 = shalt.err (!%p5317_p13)
}
  0x42   : > { %s5321_s10 = scalar_lea.vmem %s5703_s14, 48  ;;  %s5328_s9 = scalar_lea.vmem %s5703_s14, 64 }
  0x43   : > { %p5322_p0 = scmp.ne.s32.totalorder %s5703_s14, %s5321_s10  ;;  %p5329_p7 = scmp.lt.s32.totalorder %s5703_s14, %s5703_s14 }
  0x44   : > { %p5330_p9 = scmp.lt.s32.totalorder %s5328_s9, %s5321_s10 }
  0x45   : > { %p5324_p2 = pnand %p5322_p0, %p5715_p8 }
  0x46   : > { %p5331_p4 = por %p5330_p9, %p5329_p7 }
  0x47   : > { %p5325_p5 = pneg %p5324_p2 }
  0x49   : > { %p5332_p10 = pnand %p5331_p4, %p5325_p5 }
  0x4b   : > { %5335 = shalt.err (!%p5332_p10)
}
  0x4c   : > { %4818 = dma.hbm_to_vmem [thread:$0]  (!%p5699_p6), %s7227_s3, 48, %s5703_s14, [#allocation9]  }
  0x4d   : > { %s7228_s5 = sld [smem:[#allocation28_spill]] }
  0x53   : > { %s5336_s20 = scalar_lea.hbm %s7228_s5, 16 }
  0x54   : > { %p5337_p11 = scmp.ne.s32.totalorder %s7228_s5, %s5336_s20  ;;  %p5343_p0 = scmp.lt.u32.totalorder %s5336_s20, %s7228_s5 }
  0x56   : > { %p5339_p12 = pnand %p5337_p11, %p5715_p8 }
  0x58   : > { %p5340_p13 = pneg %p5339_p12 }
  0x5a   : > { %p5345_p2 = pnand %p5343_p0, %p5340_p13 }
  0x5c   : > { %5348 = shalt.err (!%p5345_p2)
}
  0x5d   : > { %s5349_s14 = scalar_lea.vmem %s5705_s17, 16  ;;  %s5356_s26 = scalar_lea.vmem %s5705_s17, 32 }
  0x5e   : > { %p5350_p5 = scmp.ne.s32.totalorder %s5705_s17, %s5349_s14  ;;  %p5357_p4 = scmp.lt.s32.totalorder %s5705_s17, %s5705_s17 }
  0x5f   : > { %p5358_p10 = scmp.lt.s32.totalorder %s5356_s26, %s5349_s14 }
  0x60   : > { %p5352_p7 = pnand %p5350_p5, %p5715_p8 }
  0x61   : > { %p5359_p11 = por %p5358_p10, %p5357_p4 }
  0x62   : > { %p5353_p9 = pneg %p5352_p7 }
  0x64   : > { %p5360_p12 = pnand %p5359_p11, %p5353_p9 }
  0x66   : > { %5363 = shalt.err (!%p5360_p12)
}
  0x67   : > { %4824 = dma.hbm_to_vmem [thread:$0]  (!%p5699_p6), %s7228_s5, 16, %s5705_s17, [#allocation12]  }
  0x68   : > { %s5601_s13 = smov [#allocation10]   ;;  %s7229_s4 = sld [smem:[#allocation27_spill]] }
  0x69   : > { %s275_s16 = sshll.u32 %s5601_s13, 4  ;;  %s276_s16 = int_to_ptr.vmem [resolvable:$true] %s275_s16 }
  0x6e   : > { %s5364_s20 = scalar_lea.hbm %s7229_s4, 15360 }
  0x6f   : > { %p5365_p13 = scmp.ne.s32.totalorder %s7229_s4, %s5364_s20  ;;  %p5371_p5 = scmp.lt.u32.totalorder %s5364_s20, %s7229_s4 }
  0x71   : > { %p5367_p0 = pnand %p5365_p13, %p5715_p8 }
  0x73   : > { %p5368_p2 = pneg %p5367_p0 }
  0x75   : > { %p5373_p7 = pnand %p5371_p5, %p5368_p2 }
  0x77   : > { %5376 = shalt.err (!%p5373_p7)
}
  0x78   : > { %s5377_s17 = scalar_lea.vmem %s276_s16, 15360  ;;  %p5385_p11 = scmp.lt.s32.totalorder %s276_s16, %s276_s16 }
  0x79   : > { %p5378_p9 = scmp.ne.s32.totalorder %s276_s16, %s5377_s17  ;;  %p5386_p12 = scmp.lt.s32.totalorder %s5377_s17, %s5377_s17 }
  0x7b   : > { %p5380_p4 = pnand %p5378_p9, %p5715_p8  ;;  %p5387_p1 = por %p5386_p12, %p5385_p11 }
  0x7d   : > { %p5381_p10 = pneg %p5380_p4 }
  0x7f   : > { %p5388_p3 = pnand %p5387_p1, %p5381_p10 }
  0x81   : > { %5391 = shalt.err (!%p5388_p3)
}
  0x82   : > { %s7211_s14 = smov 64   ;;  %s7213_s26 = smov 4  }
  0x83   : > { %4821 = dma.hbm_to_vmem [thread:$0]  (!%p5699_p6), %s7229_s4, 15360, %s276_s16, [#allocation9], %s7211_s14, %s7211_s14, %s7213_s26  }
  0x84   : > { %s5604_s13 = smov [#allocation13]   ;;  %s5605_s19 = smov [#allocation14]  }
  0x85   : > { %s299_s18 = sshll.u32 %s5604_s13, 4  ;;  %s313_s20 = sshll.u32 %s5605_s19, 4  ;;  %s300_s18 = int_to_ptr.vmem [resolvable:$true] %s299_s18  ;;  %s5805_s20 = int_to_ptr.vmem [resolvable:$true] %s313_s20 }
  0x86   : > { %s7230_s6 = sld [smem:[#allocation29_spill]] }
  0x8c   : > { %s5392_s24 = scalar_lea.hbm %s7230_s6, 4096 }
  0x8d   : > { %p5393_p1 = scmp.ne.s32.totalorder %s7230_s6, %s5392_s24  ;;  %p5399_p0 = scmp.lt.u32.totalorder %s5392_s24, %s7230_s6 }
  0x8f   : > { %p5395_p3 = pnand %p5393_p1, %p5715_p8 }
  0x91   : > { %p5396_p13 = pneg %p5395_p3 }
  0x93   : > { %p5401_p2 = pnand %p5399_p0, %p5396_p13 }
  0x95   : > { %5404 = shalt.err (!%p5401_p2)
}
  0x96   : > { %s5405_s9 = scalar_lea.vmem %s300_s18, 4096  ;;  %p5413_p4 = scmp.lt.s32.totalorder %s300_s18, %s300_s18 }
  0x97   : > { %p5406_p5 = scmp.ne.s32.totalorder %s300_s18, %s5405_s9  ;;  %p5414_p10 = scmp.lt.s32.totalorder %s5405_s9, %s5405_s9 }
  0x99   : > { %p5408_p7 = pnand %p5406_p5, %p5715_p8  ;;  %p5415_p11 = por %p5414_p10, %p5413_p4 }
  0x9b   : > { %p5409_p9 = pneg %p5408_p7 }
  0x9d   : > { %p5416_p12 = pnand %p5415_p11, %p5409_p9 }
  0x9f   : > { %5419 = shalt.err (!%p5416_p12)
}
  0xa0   : > { %4827 = dma.hbm_to_vmem [thread:$0]  (!%p5699_p6), %s7230_s6, 4096, %s300_s18, [#allocation12], %s7211_s14, %s7211_s14, %s7213_s26  }
  0xa1   : > { %s5420_s24 = scalar_lea.hbm %s7207_s7, 16 }
  0xa2   : > { %p5421_p1 = scmp.ne.s32.totalorder %s7207_s7, %s5420_s24  ;;  %p5427_p0 = scmp.lt.u32.totalorder %s5420_s24, %s7207_s7 }
  0xa4   : > { %p5423_p3 = pnand %p5421_p1, %p5715_p8 }
  0xa6   : > { %p5424_p13 = pneg %p5423_p3 }
  0xa8   : > { %p5429_p2 = pnand %p5427_p0, %p5424_p13 }
  0xaa   : > { %5432 = shalt.err (!%p5429_p2)
}
  0xab   : > { %s5433_s18 = scalar_lea.vmem %s5805_s20, 16  ;;  %s5440_s9 = scalar_lea.vmem %s5805_s20, 32 }
  0xac   : > { %p5434_p5 = scmp.ne.s32.totalorder %s5805_s20, %s5433_s18  ;;  %p5441_p4 = scmp.lt.s32.totalorder %s5805_s20, %s5805_s20 }
  0xad   : > { %p5442_p10 = scmp.lt.s32.totalorder %s5440_s9, %s5433_s18 }
  0xae   : > { %p5436_p7 = pnand %p5434_p5, %p5715_p8 }
  0xaf   : > { %p5443_p11 = por %p5442_p10, %p5441_p4 }
  0xb0   : > { %p5437_p9 = pneg %p5436_p7 }
  0xb2   : > { %p5444_p12 = pnand %p5443_p11, %p5437_p9 }
  0xb4   : > { %5447 = shalt.err (!%p5444_p12)
}
  0xb5   : > { %4830 = dma.hbm_to_vmem [thread:$0]  (!%p5699_p6), %s7207_s7, 16, %s5805_s20, [#allocation15]  }
  0xb6   : > { %s4066_s15 = sadd.s32 4294967294, %s5594_s30   ;;  %s5854_s23 = sadd.s32 1, %s5594_s30  }
  0xb7   : > { %s34_s21 = ssub.s32 %s5594_s30, %s5854_s23  ;;  %s37_s22 = sadd.s32 1, %s5590_s29 }
  0xb8   : > { %p35_p8 = scmp.eq.s32.totalorder %s34_s21, 0  ;;  %p44_p1 = scmp.ne.s32.totalorder %s5590_s29, %s5586_s28 }
  0xb9   : > { %p45_p3 = scmp.eq.s32.totalorder %s5594_s30, 0  ;;  %p50_p13 = scmp.ne.s32.totalorder %s5586_s28, %s5582_s27 }
  0xba   : > { %s5865_s24 = scalar_select %p35_p8, %s5590_s29, %s37_s22  }
  0xbb   : > { %p46_p0 = por %p45_p3, %p44_p1  ;;  %p7231_p2 = scmp.eq.s32.totalorder %s5683_s11, 0 }
  0xbc   : > { %p226_p6 = scmp.eq.s32.totalorder %s5683_s11, 1  ;;  %p232_p7 = scmp.eq.s32.totalorder %s4066_s15, 1 }
  0xbd   : > { %p5869_p5 = por %p7231_p2, %p50_p13  ;;  %p4848_p9 = scmp.lt.s32.totalorder %s5594_s30, 2 }
  0xbe   : > { %s324_s20 = sand.u32 1, %s5590_s29   ;;  %p5876_p4 = por %p226_p6, %p44_p1 }
  0xbf   : > { %p5880_p10 = por %p232_p7, %p50_p13  ;;  %s5884_s16 = smul.u32 56, %s324_s20 }
  0xc0   : > { %s7233_s17 = scalar_select %p5876_p4, 1, 0 }
  0xc1   : > { %s7234_s10 = scalar_select %p5880_p10, 1, 0 }
  0xc2   : > { %s7215_s18 = sshll.u32 %s5594_s30, 6  ;;  %p5887_p11 = pnand %p4848_p9, %p46_p0 }
  0xc3   : > { %s7236_s0 = sld [smem:[#allocation24_spill]]  ;;  %s328_s21 = scalar_lea.vmem [#allocation2], %s5884_s16 }
  0xc4   : > { %s334_s22 = sshll.u32 %s328_s21, 4  ;;  %s5901_s14 = scalar_lea.sflag [#allocation3], %s324_s20  ;;  %s5899_s22 = int_to_ptr.vmem [resolvable:$true] %s334_s22 }
  0xc5   : > { %p5450_p8 = pneg %p5887_p11 }
  0xc9   : > { %s5896_s15 = scalar_lea.hbm %s7236_s0, %s7215_s18  ;;  %s5453_s18 = scalar_lea.hbm %s7236_s0, 1792 }
  0xca   : > { %s5448_s26 = scalar_lea.hbm %s5896_s15, 896  ;;  %p5454_p13 = scmp.lt.u32.totalorder %s5896_s15, %s7236_s0 }
  0xcb   : > { %p5449_p12 = scmp.ne.s32.totalorder %s5896_s15, %s5448_s26  ;;  %p5455_p0 = scmp.lt.u32.totalorder %s5453_s18, %s5448_s26 }
  0xcc   : > { %p5457_p6 = scmp.lt.u32.totalorder %s5448_s26, %s5896_s15 }
  0xcd   : > { %p5451_p1 = pnand %p5450_p8, %p5449_p12  ;;  %p5456_p2 = por %p5455_p0, %p5454_p13 }
  0xcf   : > { %p5452_p3 = pneg %p5451_p1  ;;  %p5458_p7 = por %p5457_p6, %p5456_p2 }
  0xd1   : > { %p5459_p9 = pnand %p5458_p7, %p5452_p3 }
  0xd3   : > { %5462 = shalt.err (!%p5459_p9)
}
  0xd4   : > { %s5463_s20 = scalar_lea.vmem %s5899_s22, 896  ;;  %s5606_s21 = smov [#allocation2]  }
  0xd5   : > { %p5464_p12 = scmp.ne.s32.totalorder %s5899_s22, %s5463_s20  ;;  %s5468_s13 = sshll.u32 %s5606_s21, 4  ;;  %s5469_s13 = int_to_ptr.vmem [resolvable:$false] %s5468_s13 }
  0xd6   : > { %s5470_s2 = scalar_lea.vmem %s5469_s13, 1792  ;;  %p5471_p4 = scmp.lt.s32.totalorder %s5899_s22, %s5469_s13 }
  0xd7   : > { %p5466_p1 = pnand %p5464_p12, %p5450_p8  ;;  %p5472_p13 = scmp.lt.s32.totalorder %s5470_s2, %s5463_s20 }
  0xd9   : > { %p5467_p10 = pneg %p5466_p1  ;;  %p5473_p0 = por %p5472_p13, %p5471_p4 }
  0xdb   : > { %p5474_p2 = pnand %p5473_p0, %p5467_p10 }
  0xdd   : > { %5477 = shalt.err (!%p5474_p2)
}
  0xde   : > { %s5607_s3 = smov 128   ;;  %s7237_s26 = smov 4  }
  0xdf   : > { %s7238_s18 = smov 64   ;;  %s7239_s19 = sshll.u32 %s5594_s30, 6 }
  0xe0   : > { %4834 = dma.hbm_to_vmem [thread:$0]  (!%p5887_p11), %s5896_s15, 896, %s5899_s22, %s5901_s14, %s5607_s3, %s7238_s18, %s7237_s26  }
  0xe1   : > { %s5937_s13 = scalar_lea.hbm %s7201_s1, %s7239_s19  ;;  %s344_s2 = sand.u32 1, %s5594_s30  }
  0xe2   : > { %s348_s0 = scalar_lea.vmem [#allocation5], %s5884_s16  ;;  %s5943_s5 = scalar_lea.sflag [#allocation6], %s344_s2 }
  0xe3   : > { %s354_s4 = sshll.u32 %s348_s0, 4  ;;  %s5478_s6 = scalar_lea.hbm %s5937_s13, 896  ;;  %s5941_s4 = int_to_ptr.vmem [resolvable:$true] %s354_s4 }
  0xe4   : > { %p5479_p4 = scmp.ne.s32.totalorder %s5937_s13, %s5478_s6  ;;  %s5483_s22 = scalar_lea.hbm %s7201_s1, 1792 }
  0xe5   : > { %p5484_p6 = scmp.lt.u32.totalorder %s5937_s13, %s7201_s1  ;;  %p5485_p7 = scmp.lt.u32.totalorder %s5483_s22, %s5478_s6 }
  0xe6   : > { %p5481_p10 = pnand %p5479_p4, %p5450_p8  ;;  %p5487_p12 = scmp.lt.u32.totalorder %s5478_s6, %s5937_s13 }
  0xe7   : > { %p5486_p9 = por %p5485_p7, %p5484_p6 }
  0xe8   : > { %p5482_p3 = pneg %p5481_p10 }
  0xe9   : > { %p5488_p1 = por %p5487_p12, %p5486_p9 }
  0xeb   : > { %p5489_p13 = pnand %p5488_p1, %p5482_p3 }
  0xed   : > { %5492 = shalt.err (!%p5489_p13)
}
  0xee   : > { %s5493_s0 = scalar_lea.vmem %s5941_s4, 896  ;;  %s5608_s16 = smov [#allocation5]  }
  0xef   : > { %p5494_p0 = scmp.ne.s32.totalorder %s5941_s4, %s5493_s0  ;;  %s5498_s20 = sshll.u32 %s5608_s16, 4  ;;  %s5499_s20 = int_to_ptr.vmem [resolvable:$false] %s5498_s20 }
  0xf0   : > { %s5500_s2 = scalar_lea.vmem %s5499_s20, 1792  ;;  %p5501_p10 = scmp.lt.s32.totalorder %s5941_s4, %s5499_s20 }
  0xf1   : > { %p5496_p2 = pnand %p5494_p0, %p5450_p8  ;;  %p5502_p6 = scmp.lt.s32.totalorder %s5500_s2, %s5493_s0 }
  0xf3   : > { %p5497_p4 = pneg %p5496_p2  ;;  %p5503_p7 = por %p5502_p6, %p5501_p10 }
  0xf5   : > { %p5504_p9 = pnand %p5503_p7, %p5497_p4 }
  0xf7   : > { %5507 = shalt.err (!%p5504_p9)
}
  0xf8   : > { %4837 = dma.hbm_to_vmem [thread:$0]  (!%p5887_p11), %s5937_s13, 896, %s5941_s4, %s5943_s5, %s5607_s3, %s7238_s18, %s7237_s26  }
  0xf9   : > { %p7240_p8 = scmp.ne.s32.totalorder %s7223_s12, 0 }
  0xfa   : > { %s5975_s6 = sand.u32 (!%p7240_p8), 1, %s5586_s28  }
  0xfb   : > { %366 = sbr.rel (%p7240_p8) target bundleno = 1554 (0x612), region = 52  ;;  %s369_s15 = scalar_lea.sflag (!%p7240_p8), [#allocation3], %s5975_s6 }
  0xfc   : > { %s4781_s14 = smul.u32 (!%p7240_p8), 56, %s5975_s6 }
  0xfe   : > { %s5979_s22 = scalar_lea.vmem (!%p7240_p8), [#allocation2], %s4781_s14 }
 0x102   : > { %5553 = dma.done.wait (%p5869_p5), %s369_s15, 896  }
 0x103   : > { %5555 = vsyncadd (%p5869_p5), %s369_s15, 4294966400  ;;  %s377_s4 = sand.u32 1, %s5683_s11   ;;  %s5986_s12 = scalar_lea.vmem [#allocation5], %s4781_s14 }
 0x104   : > { %s378_s5 = scalar_lea.sflag [#allocation6], %s377_s4 }
 0x105   : > { %5557 = dma.done.wait (%p5869_p5), %s378_s5, 896  }
 0x106   : > { %5559 = vsyncadd (%p5869_p5), %s378_s5, 4294966400  ;;  %p7241_p11 = scmp.eq.s32.totalorder %s5683_s11, 0 }
 0x108   : > { %5561 = dma.done.wait (%p7241_p11), [#allocation6], 3840   ;;  %p7242_p3 = pmov %p7241_p11 }
 0x10a   : > { %5563 = vsyncadd (%p7242_p3), [#allocation6], 4294963456  ;;  %p7243_p12 = pmov %p7242_p3 }
 0x10b   : > { %p7244_p1 = pmov %p7242_p3 }
 0x10c   : > { %5565 = dma.done.wait (%p7243_p12), [#allocation9], 15408  }
 0x10d   : > { %5567 = vsyncadd (%p7244_p1), [#allocation9], 4294951888  ;;  %p7245_p13 = pmov %p7244_p1 }
 0x10e   : > { %p7246_p0 = pmov %p7244_p1 }
 0x10f   : > { %5569 = dma.done.wait (%p7245_p13), [#allocation12], 4112  }
 0x110   : > { %5571 = vsyncadd (%p7246_p0), [#allocation12], 4294963184  ;;  %p7247_p5 = pmov %p7246_p0 }
 0x111   : > { %p7248_p2 = pmov %p7246_p0 }
 0x112   : > { %5573 = dma.done.wait (%p7247_p5), [#allocation15], 16  }
 0x113   : > { %5575 = vsyncadd (%p7248_p2), [#allocation15], 4294967280  ;;  %v5609_v0 = vmov 0   ;;  %v458_v1 = vld [vmem:[%s5986_s12] sm:$0xf]  ;;  %s5610_s25 = smov 32  }
 0x114   : > { %1261 = vmatprep.subr.bf16.mxu1 %v5609_v0  ;;  %v6011_v2 = vld [vmem:[%s5979_s22 + $0x4] sm:$0xf]  ;;  %v459_v3 = vld [vmem:[%s5986_s12 + $0x4] sm:$0xf]  ;;  %v4085_v4 = vcombine.low %v458_v1, %v458_v1  ;;  %v446_v6 = vld [vmem:[%s5979_s22 + $0x8] sm:$0xf] }
 0x115   : > { %v6016_v5 = vcombine.low %v6011_v2, %v6011_v2  ;;  %s5611_s9 = smov 64   ;;  %v6022_v7 = vcombine.low %v459_v3, %v459_v3  ;;  %v6024_v8 = vcombine.low %v446_v6, %v446_v6  ;;  %v447_v9 = vld [vmem:[%s5979_s22 + $0xc] sm:$0xf]  ;;  %v460_v10 = vld [vmem:[%s5986_s12 + $0x8] sm:$0xf]  ;;  %vm619_vm0 = vcmask 261120  }
 0x116   : > { %508 = vrot.lane.b32.xlu0 %v4085_v4, %s5610_s25  ;;  %v4112_v11 = vcombine.low %v446_v6, %v447_v9  ;;  %v6034_v12 = vcombine.low %v460_v10, %v460_v10  ;;  %v461_v13 = vld [vmem:[%s5986_s12 + $0xc] sm:$0xf]  ;;  %v6037_v14 = vld [vmem:[#allocation7 + $0x4] ss:$12 sps:$4 sm:$0xff]   ;;  %v5044_v15 = vld [vmem:[#allocation7] ss:$12 sps:$4 sm:$0xff]   ;;  %v6054_v23 = vcombine.low %v447_v9, %v447_v9 }
 0x117   : > { %568 = vrot.lane.b32.xlu1 %v6016_v5, %s5611_s9  ;;  %v6040_v16 = vld [vmem:[%s5979_s22 + $0x10] sm:$0xf]  ;;  %s5612_s3 = smov 96   ;;  %v6046_v18 = vcombine.low %v461_v13, %v461_v13  ;;  %1168 = vmatprep.subr.bf16.mxu0 %v6037_v14  ;;  %v5048_v20 = vld [vmem:[#allocation7 + $0x18] ss:$12 sps:$4 sm:$0xff]   ;;  %vm656_vm1 = vcmask 523264  }
 0x118   : > { %4153 = vmatprep.mubr.msk.bf16.mxu0 %vm619_vm0, %v4112_v11  ;;  %4159 = vmatprep.mubr.msk.bf16.mxu1 %vm619_vm0, %v4112_v11  ;;  %v5045_v17 = vld [vmem:[#allocation7 + $0x8] ss:$12 sps:$4 sm:$0xff]   ;;  %v5049_v21 = vld [vmem:[#allocation7 + $0x20] ss:$12 sps:$4 sm:$0xff]   ;;  %v6058_v24 = vcombine.low %v6040_v16, %v6040_v16  ;;  %v5053_v26 = vld [vmem:[#allocation7 + $0x38] ss:$12 sps:$4 sm:$0xff]  }
 0x119   : > { %v5046_v19 = vld [vmem:[#allocation7 + $0x1c] ss:$12 sps:$4 sm:$0xff]   ;;  %1262 = vmatpush1.bf16.msra.mxu1 %v5045_v17  ;;  %1169 = vmatpush1.bf16.msra.mxu0 %v5044_v15  ;;  %v5050_v22 = vld [vmem:[#allocation7 + $0x34] ss:$12 sps:$4 sm:$0xff]   ;;  %v5054_v28 = vld [vmem:[#allocation7 + $0x4c] ss:$12 sps:$4 sm:$0xff]  }
 0x11a   : > { %510 = vrot.lane.b32.xlu0 %v6022_v7, %s5610_s25  ;;  %1263 = vmatprep.subr.bf16.mxu1 %v5609_v0  ;;  %v462_v25 = vld [vmem:[%s5986_s12 + $0x10] sm:$0xf]  ;;  %v5052_v27 = vld [vmem:[#allocation7 + $0x30] ss:$12 sps:$4 sm:$0xff]   ;;  %v5056_v32 = vld [vmem:[#allocation7 + $0x48] ss:$12 sps:$4 sm:$0xff]  }
 0x11b   : > { %570 = vrot.lane.b32.xlu1 %v6024_v8, %s5611_s9  ;;  %1170 = vmatprep.subr.bf16.mxu0 %v5046_v19  ;;  %v6066_v29 = vcombine.low %v462_v25, %v462_v25  ;;  %v463_v30 = vld [vmem:[%s5986_s12 + $0x14] sm:$0xf]  ;;  %v6077_v35 = vld [vmem:[%s5979_s22 + $0x14] sm:$0xf]  ;;  %v6080_v36 = vld [vmem:[%s5979_s22 + $0x18] sm:$0xf] }
 0x11c   : > { %v5057_v31 = vld [vmem:[#allocation7 + $0x50] ss:$12 sps:$4 sm:$0xff]   ;;  %v6074_v34 = vcombine.low %v463_v30, %v463_v30  ;;  %v5061_v37 = vld [vmem:[#allocation7 + $0x68] ss:$12 sps:$4 sm:$0xff]   ;;  %v5060_v38 = vld [vmem:[#allocation7 + $0x60] ss:$12 sps:$4 sm:$0xff]   ;;  %v6089_v40 = vcombine.low %v6077_v35, %v6077_v35  ;;  %v6093_v41 = vcombine.low %v6080_v36, %v6080_v36 }
 0x11d   : > { %1264 = vmatpush1.bf16.msra.mxu1 %v5049_v21  ;;  %1171 = vmatpush1.bf16.msra.mxu0 %v5048_v20  ;;  %v5058_v33 = vld [vmem:[#allocation7 + $0x64] ss:$12 sps:$4 sm:$0xff]   ;;  %v5062_v39 = vld [vmem:[#allocation7 + $0x7c] ss:$12 sps:$4 sm:$0xff]   ;;  %v5065_v43 = vld [vmem:[#allocation7 + $0x80] ss:$12 sps:$4 sm:$0xff]  }
 0x11e   : > { %595 = vrot.lane.b32.xlu0 %v6022_v7, %s5612_s3  ;;  %1265 = vmatprep.subr.bf16.mxu1 %v5609_v0  ;;  %v464_v42 = vld [vmem:[%s5986_s12 + $0x18] sm:$0xf]  ;;  %v6097_v44 = vld [vmem:[#allocation7 + $0x78] ss:$12 sps:$4 sm:$0xff]   ;;  %v6108_v48 = vld [vmem:[#allocation7 + $0x90] ss:$12 sps:$4 sm:$0xff]  }
 0x11f   : > { %597 = vrot.lane.b32.xlu1 %v6034_v12, %s5612_s3  ;;  %1172 = vmatprep.subr.bf16.mxu0 %v5050_v22  ;;  %v465_v45 = vld [vmem:[%s5986_s12 + $0x1c] sm:$0xf]  ;;  %v6100_v46 = vld [vmem:[#allocation7 + $0x94] ss:$12 sps:$4 sm:$0xff]   ;;  %v6106_v47 = vcombine.low %v464_v42, %v464_v42  ;;  %v6123_v53 = vld [vmem:[#allocation7 + $0xb0] ss:$12 sps:$4 sm:$0xff]  }
 0x120   : > { %v6110_v49 = vld [vmem:[#allocation7 + $0x98] ss:$12 sps:$4 sm:$0xff]   ;;  %v6117_v51 = vld [vmem:[%s5979_s22 + $0x1c] sm:$0xf]  ;;  %v6129_v54 = vcombine.low %v465_v45, %v465_v45  ;;  %v466_v57 = vld [vmem:[%s5986_s12 + $0x20] sm:$0xf] }
 0x121   : > { %1266 = vmatpush1.bf16.msra.mxu1 %v5053_v26  ;;  %1173 = vmatpush1.bf16.msra.mxu0 %v5052_v27  ;;  %v6112_v50 = vld [vmem:[#allocation7 + $0xac] ss:$12 sps:$4 sm:$0xff]   ;;  %v6131_v55 = vld [vmem:[#allocation7 + $0xa8] ss:$12 sps:$4 sm:$0xff]   ;;  %v6134_v56 = vld [vmem:[#allocation7 + $0xc4] ss:$12 sps:$4 sm:$0xff]   ;;  %v6148_v59 = vcombine.low %v6117_v51, %v6117_v51  ;;  %v4093_v3 = vcombine.low %v466_v57, %v466_v57 }
 0x122   : > { %512 = vrot.lane.b32.xlu0 %v6034_v12, %s5610_s25  ;;  %1267 = vmatprep.subr.bf16.mxu1 %v5609_v0  ;;  %v6120_v52 = vld [vmem:[%s5979_s22 + $0x20] sm:$0xf]  ;;  %v6140_v58 = vld [vmem:[#allocation7 + $0xc8] ss:$12 sps:$4 sm:$0xff]   ;;  %v6175_v6 = vld [vmem:[%s5979_s22 + $0x24] sm:$0xf] }
 0x123   : > { %514 = vrot.lane.b32.xlu1 %v6046_v18, %s5610_s25  ;;  %1174 = vmatprep.subr.bf16.mxu0 %v5054_v28  ;;  %v6152_v60 = vcombine.low %v6120_v52, %v6120_v52  ;;  %v6154_v61 = vld [vmem:[#allocation7 + $0xc0] ss:$12 sps:$4 sm:$0xff]   ;;  %v6157_v62 = vld [vmem:[#allocation7 + $0xdc] ss:$12 sps:$4 sm:$0xff]   ;;  %v6169_v4 = vld [vmem:[#allocation7 + $0xd8] ss:$12 sps:$4 sm:$0xff]   ;;  %v4105_v13 = vcombine.low %v6175_v6, %v6175_v6 }
 0x124   : > { %v467_v63 = vld [vmem:[%s5986_s12 + $0x24] sm:$0xf]  ;;  %v6178_v9 = vld [vmem:[%s5979_s22 + $0x28] sm:$0xf]  ;;  %v468_v11 = vld [vmem:[%s5986_s12 + $0x28] sm:$0xf] }
 0x125   : > { %1268 = vmatpush1.bf16.msra.mxu1 %v5057_v31  ;;  %1175 = vmatpush1.bf16.msra.mxu0 %v5056_v32  ;;  %v6163_v1 = vld [vmem:[#allocation7 + $0xe0] ss:$12 sps:$4 sm:$0xff]   ;;  %v6184_v10 = vcombine.low %v467_v63, %v467_v63  ;;  %v6198_v15 = vcombine.low %v6178_v9, %v6178_v9  ;;  %v469_v17 = vld [vmem:[%s5986_s12 + $0x2c] sm:$0xf]  ;;  %v4095_v19 = vcombine.low %v468_v11, %v468_v11  ;;  %v6208_v20 = vld [vmem:[%s5979_s22 + $0x30] sm:$0xf] }
 0x126   : > { %572 = vrot.lane.b32.xlu0 %v6054_v23, %s5611_s9  ;;  %1269 = vmatprep.subr.bf16.mxu1 %v5609_v0  ;;  %v6213_v21 = vcombine.low %v469_v17, %v469_v17  ;;  %v6216_v22 = vld [vmem:[%s5986_s12 + $0x30] sm:$0xf]  ;;  %v6227_v26 = vcombine.low %v6208_v20, %v6208_v20  ;;  %vm681_vm2 = vcmask 785408   ;;  %v5249_v42 = vld [vmem:[%s5979_s22 + $0x8] sm:$0xf]  ;;  %v4116_v17 = vcombine.low %v6080_v36, %v6117_v51  ;;  %s5613_s26 = smov 112  }
 0x127   : > { %574 = vrot.lane.b32.xlu1 %v6058_v24, %s5611_s9  ;;  %1176 = vmatprep.subr.bf16.mxu0 %v5058_v33  ;;  %v6235_v27 = vcombine.low %v6216_v22, %v6216_v22  ;;  %v5250_v45 = vld [vmem:[%s5979_s22 + $0xc] sm:$0xf]  ;;  %v5253_v11 = vld [vmem:[#allocation7 + $0x34] ss:$12 sps:$4 sm:$0xff]   ;;  %vm5615_vm4 = vmmov 0   ;;  %s4084_s18 = sshll.u32 %s5975_s6, 3 }
 0x128   : > { %v5251_v57 = vld [vmem:[#allocation7 + $0x18] ss:$12 sps:$4 sm:$0xff]   ;;  %s4344_s13 = sshll.u32 %s5683_s11, 7  ;;  %s442_s19 = scalar_lea.vmem [#allocation16], %s4084_s18 }
 0x129   : > { %1270 = vmatpush1.bf16.msra.mxu1 %v5061_v37  ;;  %1177 = vmatpush1.bf16.msra.mxu0 %v5060_v38  ;;  %v5256_v36 = vld [vmem:[#allocation7 + $0x4c] ss:$12 sps:$4 sm:$0xff]   ;;  %s3916_s21 = sshll.u32 %s442_s19, 4  ;;  %s7156_s20 = scalar_lea.hbm %s7208_s8, %s4344_s13  ;;  %s7158_s21 = int_to_ptr.vmem [resolvable:$true] %s3916_s21 }
 0x12a   : > { %599 = vrot.lane.b32.xlu0 %v6046_v18, %s5612_s3  ;;  %1271 = vmatprep.subr.bf16.mxu1 %v5609_v0  ;;  %s3903_s2 = scalar_lea.sflag [#allocation4], %s5975_s6  ;;  %s5508_s11 = scalar_lea.vmem %s7158_s21, 128 }
 0x12b   : > { %601 = vrot.lane.b32.xlu1 %v6066_v29, %s5612_s3  ;;  %1178 = vmatprep.subr.bf16.mxu0 %v5062_v39  ;;  %p5509_p4 = scmp.ne.s32.totalorder %s7158_s21, %s5508_s11  ;;  %p7249_p10 = scmp.ne.s32.totalorder %s7233_s17, 0 }
 0x12c   : > { %s5616_s14 = smov [#allocation16]  }
 0x12d   : > { %1272 = vmatpush1.bf16.msra.mxu1 %v5065_v43  ;;  %1179 = vmatpush1.bf16.msra.mxu0 %v6097_v44  ;;  %p5510_p6 = pnand %p5509_p4, %p7249_p10  ;;  %s5512_s15 = sshll.u32 %s5616_s14, 4  ;;  %s5513_s15 = int_to_ptr.vmem [resolvable:$false] %s5512_s15 }
 0x12e   : > { %516 = vrot.lane.b32.xlu0 %v6066_v29, %s5610_s25  ;;  %1273 = vmatprep.subr.bf16.mxu1 %v5609_v0  ;;  %p5515_p9 = scmp.lt.s32.totalorder %s7158_s21, %s5513_s15 }
 0x12f   : > { %518 = vrot.lane.b32.xlu1 %v6074_v34, %s5610_s25  ;;  %1180 = vmatprep.subr.bf16.mxu0 %v6100_v46  ;;  %p5511_p7 = pneg %p5510_p6 }
 0x131   : > { %1274 = vmatpush1.bf16.msra.mxu1 %v6110_v49  ;;  %1181 = vmatpush1.bf16.msra.mxu0 %v6108_v48 }
 0x132   : > { %576 = vrot.lane.b32.xlu0 %v6089_v40, %s5611_s9  ;;  %1275 = vmatprep.subr.bf16.mxu1 %v5609_v0 }
 0x133   : > { %578 = vrot.lane.b32.xlu1 %v6093_v41, %s5611_s9  ;;  %1182 = vmatprep.subr.bf16.mxu0 %v6112_v50 }
 0x135   : > { %1276 = vmatpush1.bf16.msra.mxu1 %v6123_v53  ;;  %1183 = vmatpush1.bf16.msra.mxu0 %v6131_v55 }
 0x136   : > { %603 = vrot.lane.b32.xlu0 %v6074_v34, %s5612_s3  ;;  %1277 = vmatprep.subr.bf16.mxu1 %v5609_v0 }
 0x137   : > { %605 = vrot.lane.b32.xlu1 %v6106_v47, %s5612_s3  ;;  %1184 = vmatprep.subr.bf16.mxu0 %v6134_v56 }
 0x139   : > { %1278 = vmatpush1.bf16.msra.mxu1 %v6140_v58  ;;  %1185 = vmatpush1.bf16.msra.mxu0 %v6154_v61 }
 0x13a   : > { %520 = vrot.lane.b32.xlu0 %v6106_v47, %s5610_s25  ;;  %1279 = vmatprep.subr.bf16.mxu1 %v5609_v0 }
 0x13b   : > { %522 = vrot.lane.b32.xlu1 %v6129_v54, %s5610_s25  ;;  %1186 = vmatprep.subr.bf16.mxu0 %v6157_v62 }
 0x13d   : > { %1280 = vmatpush1.bf16.msra.mxu1 %v6163_v1  ;;  %1187 = vmatpush1.bf16.msra.mxu0 %v6169_v4 }
 0x13e   : > { %580 = vrot.lane.b32.xlu0 %v6148_v59, %s5611_s9  ;;  %1507 = vmatprep.subr.bf16.mxu1 %v5609_v0 }
 0x13f   : > { %582 = vrot.lane.b32.xlu1 %v6152_v60, %s5611_s9  ;;  %1414 = vmatprep.subr.bf16.mxu0 %v6037_v14  ;;  %v6205_v14 = vld [vmem:[%s5979_s22 + $0x2c] sm:$0xf] }
 0x140   : > { %v6223_v25 = vcombine.low %v6205_v14, %v6205_v14 }
 0x142   : > { %607 = vrot.lane.b32.xlu0 %v6129_v54, %s5612_s3 }
 0x143   : > { %609 = vrot.lane.b32.xlu1 %v4093_v3, %s5612_s3 }
 0x146   : > { %524 = vrot.lane.b32.xlu0 %v4093_v3, %s5610_s25 }
 0x147   : > { %526 = vrot.lane.b32.xlu1 %v6184_v10, %s5610_s25 }
 0x14a   : > { %584 = vrot.lane.b32.xlu0 %v4105_v13, %s5611_s9 }
 0x14b   : > { %586 = vrot.lane.b32.xlu1 %v6198_v15, %s5611_s9 }
 0x14e   : > { %611 = vrot.lane.b32.xlu0 %v6184_v10, %s5612_s3 }
 0x14f   : > { %613 = vrot.lane.b32.xlu1 %v4095_v19, %s5612_s3 }
 0x152   : > { %528 = vrot.lane.b32.xlu0 %v4095_v19, %s5610_s25 }
 0x153   : > { %530 = vrot.lane.b32.xlu1 %v6213_v21, %s5610_s25 }
 0x156   : > { %588 = vrot.lane.b32.xlu0 %v6223_v25, %s5611_s9 }
 0x157   : > { %590 = vrot.lane.b32.xlu1 %v6227_v26, %s5611_s9 }
 0x15a   : > { %615 = vrot.lane.b32.xlu0 %v6213_v21, %s5612_s3 }
 0x15b   : > { %617 = vrot.lane.b32.xlu1 %v6235_v27, %s5612_s3 }
 0x15e   : > { %706 = vrot.lane.b32.xlu0 %v6016_v5, %s5610_s25 }
 0x15f   : > { %708 = vrot.lane.b32.xlu1 %v6024_v8, %s5610_s25 }
 0x162   : > { %730 = vrot.lane.b32.xlu0 %v6022_v7, %s5611_s9  ;;  %v444_v7 = vld [vmem:[%s5979_s22] sm:$0xf] }
 0x163   : > { %732 = vrot.lane.b32.xlu1 %v6034_v12, %s5611_s9 }
 0x166   : > { %757 = vrot.lane.b32.xlu0 %v6024_v8, %s5612_s3 }
 0x167   : > { %759 = vrot.lane.b32.xlu1 %v6054_v23, %s5612_s3 }
 0x16a   : > { %710 = vrot.lane.b32.xlu0 %v6054_v23, %s5610_s25 }
 0x16b   : > { %712 = vrot.lane.b32.xlu1 %v6058_v24, %s5610_s25 }
 0x16e   : > { %734 = vrot.lane.b32.xlu0 %v6046_v18, %s5611_s9 }
 0x16f   : > { %736 = vrot.lane.b32.xlu1 %v6066_v29, %s5611_s9 }
 0x172   : > { %761 = vrot.lane.b32.xlu0 %v6058_v24, %s5612_s3 }
 0x173   : > { %763 = vrot.lane.b32.xlu1 %v6089_v40, %s5612_s3 }
 0x176   : > { %714 = vrot.lane.b32.xlu0 %v6089_v40, %s5610_s25 }
 0x177   : > { %716 = vrot.lane.b32.xlu1 %v6093_v41, %s5610_s25 }
 0x17a   : > { %738 = vrot.lane.b32.xlu0 %v6074_v34, %s5611_s9  ;;  %v4114_v34 = vcombine.low %v6040_v16, %v6077_v35  ;;  %v5246_v16 = vld [vmem:[#allocation7] ss:$12 sps:$4 sm:$0xff]   ;;  %v5247_v35 = vld [vmem:[#allocation7 + $0x8] ss:$12 sps:$4 sm:$0xff]  }
 0x17b   : > { %740 = vrot.lane.b32.xlu1 %v6106_v47, %s5611_s9 }
 0x17e   : > { %765 = vrot.lane.b32.xlu0 %v6093_v41, %s5612_s3  ;;  %v5248_v41 = vld [vmem:[#allocation7 + $0x1c] ss:$12 sps:$4 sm:$0xff]  }
 0x17f   : > { %767 = vrot.lane.b32.xlu1 %v6148_v59, %s5612_s3 }
 0x182   : > { %718 = vrot.lane.b32.xlu0 %v6148_v59, %s5610_s25  ;;  %v5252_v59 = vld [vmem:[#allocation7 + $0x20] ss:$12 sps:$4 sm:$0xff]  }
 0x183   : > { %720 = vrot.lane.b32.xlu1 %v6152_v60, %s5610_s25 }
 0x186   : > { %742 = vrot.lane.b32.xlu0 %v6129_v54, %s5611_s9  ;;  %v6319_v54 = vld [vmem:[%s5979_s22 + $0x34] sm:$0xf] }
 0x187   : > { %744 = vrot.lane.b32.xlu1 %v4093_v3, %s5611_s9 }
 0x188   : > { %v509_v5 = vpop.permute.xlu0 %508 }
 0x189   : > { %v569_v8 = vpop.permute.xlu1 %568  ;;  %v622_v23 = vsel %vm619_vm0, %v444_v7, %v509_v5  ;;  %v5254_v5 = vld [vmem:[#allocation7 + $0x30] ss:$12 sps:$4 sm:$0xff]   ;;  %v5255_v7 = vld [vmem:[#allocation7 + $0x38] ss:$12 sps:$4 sm:$0xff]  }
 0x18a   : > { %769 = vrot.lane.b32.xlu0 %v6152_v60, %s5612_s3  ;;  %v658_v28 = vsel %vm656_vm1, %v622_v23, %v569_v8  ;;  %v5258_v23 = vld [vmem:[#allocation7 + $0x50] ss:$12 sps:$4 sm:$0xff]  }
 0x18b   : > { %771 = vrot.lane.b32.xlu1 %v4105_v13, %s5612_s3 }
 0x18c   : > { %v511_v12 = vpop.permute.xlu0 %510 }
 0x18d   : > { %v571_v18 = vpop.permute.xlu1 %570  ;;  %v625_v24 = vsel %vm619_vm0, %v6011_v2, %v511_v12 }
 0x18e   : > { %722 = vrot.lane.b32.xlu0 %v4105_v13, %s5610_s25  ;;  %v660_v29 = vsel %vm656_vm1, %v625_v24, %v571_v18  ;;  %v5257_v18 = vld [vmem:[#allocation7 + $0x48] ss:$12 sps:$4 sm:$0xff]   ;;  %v5259_v24 = vld [vmem:[#allocation7 + $0x64] ss:$12 sps:$4 sm:$0xff]  }
 0x18f   : > { %724 = vrot.lane.b32.xlu1 %v6198_v15, %s5610_s25 }
 0x190   : > { %v596_v30 = vpop.permute.xlu0 %595 }
 0x191   : > { %v598_v31 = vpop.permute.xlu1 %597  ;;  %v683_v32 = vsel %vm681_vm2, %v658_v28, %v596_v30  ;;  %v5260_v28 = vld [vmem:[%s5979_s22 + $0x10] sm:$0xf] }
 0x192   : > { %v685_v33 = vsel %vm681_vm2, %v660_v29, %v598_v31  ;;  %746 = vrot.lane.b32.xlu0 %v6184_v10, %s5611_s9  ;;  %v5261_v29 = vld [vmem:[%s5979_s22 + $0x14] sm:$0xf] }
 0x193   : > { %v4111_v37 = vcombine.low %v683_v32, %v685_v33  ;;  %748 = vrot.lane.b32.xlu1 %v4095_v19, %s5611_s9 }
 0x194   : > { %v513_v2 = vpop.permute.xlu0 %512 }
 0x195   : > { %v515_v38 = vpop.permute.xlu1 %514  ;;  %1201 = vmatmul.mubr.bf16.vlgmr.msra.gmra.mrb[0].mxu0 %v4111_v37  ;;  %1294 = vmatmul.mubr.bf16.vlgmr.msra.gmra.mrb[0].mxu1 %v4111_v37  ;;  %v628_v43 = vsel %vm619_vm0, %v5249_v42, %v513_v2  ;;  %v5262_v37 = vld [vmem:[#allocation7 + $0x60] ss:$12 sps:$4 sm:$0xff]   ;;  %v5263_v2 = vld [vmem:[#allocation7 + $0x68] ss:$12 sps:$4 sm:$0xff]  }
 0x196   : > { %4154 = vmatprep.mubr.msk.bf16.mxu0 %vm619_vm0, %v4114_v34  ;;  %4160 = vmatprep.mubr.msk.bf16.mxu1 %vm619_vm0, %v4114_v34  ;;  %v631_v47 = vsel %vm619_vm0, %v5250_v45, %v515_v38 }
 0x197   : > { %773 = vrot.lane.b32.xlu0 %v6198_v15, %s5612_s3  ;;  %775 = vrot.lane.b32.xlu1 %v6223_v25, %s5612_s3 }
 0x198   : > { %1415 = vmatpush1.bf16.msra.mxu0 %v5246_v16  ;;  %1508 = vmatpush1.bf16.msra.mxu1 %v5247_v35  ;;  %v573_v39 = vpop.permute.xlu0 %572  ;;  %v4118_v35 = vcombine.low %v6120_v52, %v6175_v6 }
 0x199   : > { %v575_v40 = vpop.permute.xlu1 %574  ;;  %1416 = vmatprep.subr.bf16.mxu0 %v5248_v41  ;;  %1509 = vmatprep.subr.bf16.mxu1 %v5609_v0  ;;  %v662_v60 = vsel %vm656_vm1, %v628_v43, %v573_v39  ;;  %v5264_v39 = vld [vmem:[#allocation7 + $0x7c] ss:$12 sps:$4 sm:$0xff]   ;;  %v5265_v43 = vld [vmem:[#allocation7 + $0x80] ss:$12 sps:$4 sm:$0xff]  }
 0x19a   : > { %v664_v63 = vsel %vm656_vm1, %v631_v47, %v575_v40  ;;  %v5266_v47 = vld [vmem:[%s5979_s22 + $0x18] sm:$0xf] }
 0x19b   : > { %726 = vrot.lane.b32.xlu0 %v6223_v25, %s5610_s25  ;;  %728 = vrot.lane.b32.xlu1 %v6227_v26, %s5610_s25  ;;  %v4110_v25 = vcombine.low %v6319_v54, %v6319_v54 }
 0x19c   : > { %1417 = vmatpush1.bf16.msra.mxu0 %v5251_v57  ;;  %1510 = vmatpush1.bf16.msra.mxu1 %v5252_v59  ;;  %v600_v3 = vpop.permute.xlu0 %599 }
 0x19d   : > { %v602_v10 = vpop.permute.xlu1 %601  ;;  %1418 = vmatprep.subr.bf16.mxu0 %v5253_v11  ;;  %1511 = vmatprep.subr.bf16.mxu1 %v5609_v0  ;;  %v687_v13 = vsel %vm681_vm2, %v662_v60, %v600_v3  ;;  %v4120_v3 = vcombine.low %v6178_v9, %v6205_v14 }
 0x19e   : > { %v689_v15 = vsel %vm681_vm2, %v664_v63, %v602_v10 }
 0x19f   : > { %v4113_v19 = vcombine.low %v687_v13, %v689_v15  ;;  %750 = vrot.lane.b32.xlu0 %v6213_v21, %s5611_s9  ;;  %752 = vrot.lane.b32.xlu1 %v6235_v27, %s5611_s9 }
 0x1a0   : > { %1419 = vmatpush1.bf16.msra.mxu0 %v5254_v5  ;;  %1512 = vmatpush1.bf16.msra.mxu1 %v5255_v7  ;;  %v517_v8 = vpop.permute.xlu0 %516 }
 0x1a1   : > { %v519_v12 = vpop.permute.xlu1 %518  ;;  %1211 = vmatmul.mubr.bf16.gmra.mrb[4].mxu0 %v4113_v19  ;;  %1302 = vmatmul.mubr.bf16.gmra.mrb[4].mxu1 %v4113_v19 }
 0x1a2   : > { %4155 = vmatprep.mubr.msk.bf16.mxu0 %vm619_vm0, %v4116_v17  ;;  %4161 = vmatprep.mubr.msk.bf16.mxu1 %vm619_vm0, %v4116_v17  ;;  %v637_v30 = vsel %vm619_vm0, %v5261_v29, %v519_v12 }
 0x1a3   : > { %777 = vrot.lane.b32.xlu0 %v6227_v26, %s5612_s3  ;;  %779 = vrot.lane.b32.xlu1 %v4110_v25, %s5612_s3  ;;  %v634_v26 = vsel %vm619_vm0, %v5260_v28, %v517_v8 }
 0x1a4   : > { %1420 = vmatprep.subr.bf16.mxu0 %v5256_v36  ;;  %1513 = vmatprep.subr.bf16.mxu1 %v5609_v0  ;;  %v577_v21 = vpop.permute.xlu0 %576 }
 0x1a5   : > { %v579_v27 = vpop.permute.xlu1 %578  ;;  %1421 = vmatpush1.bf16.msra.mxu0 %v5257_v18  ;;  %1514 = vmatpush1.bf16.msra.mxu1 %v5258_v23  ;;  %v666_v31 = vsel %vm656_vm1, %v634_v26, %v577_v21  ;;  %v5268_v18 = vld [vmem:[%s5986_s12 + $0x8] sm:$0xf]  ;;  %v5269_v23 = vld [vmem:[%s5986_s12 + $0xc] sm:$0xf] }
 0x1a6   : > { %1422 = vmatprep.subr.bf16.mxu0 %v5259_v24  ;;  %1515 = vmatprep.subr.bf16.mxu1 %v5609_v0  ;;  %v668_v32 = vsel %vm656_vm1, %v637_v30, %v579_v27  ;;  %v4166_v24 = vcombine.low %v5268_v18, %v5269_v23  ;;  %v5270_v30 = vld [vmem:[%s5986_s12] sm:$0xf] }
 0x1a8   : > { %v604_v33 = vpop.permute.xlu0 %603 }
 0x1a9   : > { %v606_v34 = vpop.permute.xlu1 %605  ;;  %1423 = vmatpush1.bf16.msra.mxu0 %v5262_v37  ;;  %1516 = vmatpush1.bf16.msra.mxu1 %v5263_v2  ;;  %v691_v38 = vsel %vm681_vm2, %v666_v31, %v604_v33 }
 0x1aa   : > { %v693_v16 = vsel %vm681_vm2, %v668_v32, %v606_v34  ;;  %1424 = vmatprep.subr.bf16.mxu0 %v5264_v39  ;;  %1517 = vmatprep.subr.bf16.mxu1 %v5609_v0  ;;  %v5271_v32 = vld [vmem:[%s5986_s12 + $0x4] sm:$0xf]  ;;  %v5272_v39 = vld [vmem:[%s5986_s12 + $0x10] sm:$0xf] }
 0x1ab   : > { %v4115_v40 = vcombine.low %v691_v38, %v693_v16 }
 0x1ac   : > { %v521_v41 = vpop.permute.xlu0 %520 }
 0x1ad   : > { %v523_v42 = vpop.permute.xlu1 %522  ;;  %1221 = vmatmul.mubr.bf16.gmra.mrb[8].mxu0 %v4115_v40  ;;  %1310 = vmatmul.mubr.bf16.gmra.mrb[8].mxu1 %v4115_v40  ;;  %v640_v57 = vsel %vm619_vm0, %v5266_v47, %v521_v41  ;;  %v5273_v40 = vld [vmem:[%s5986_s12 + $0x14] sm:$0xf] }
 0x1ae   : > { %4156 = vmatprep.mubr.msk.bf16.mxu0 %vm619_vm0, %v4118_v35  ;;  %4162 = vmatprep.mubr.msk.bf16.mxu1 %vm619_vm0, %v4118_v35  ;;  %v643_v59 = vsel %vm619_vm0, %v6117_v51, %v523_v42  ;;  %v4168_v41 = vcombine.low %v5272_v39, %v5273_v40 }
 0x1af   : > { %1425 = vmatpush1.bf16.msra.mxu0 %v6097_v44  ;;  %1518 = vmatpush1.bf16.msra.mxu1 %v5265_v43 }
 0x1b0   : > { %1426 = vmatprep.subr.bf16.mxu0 %v6100_v46  ;;  %1519 = vmatprep.subr.bf16.mxu1 %v5609_v0  ;;  %v581_v52 = vpop.permute.xlu0 %580 }
 0x1b1   : > { %v583_v45 = vpop.permute.xlu1 %582  ;;  %v670_v44 = vsel %vm656_vm1, %v640_v57, %v581_v52 }
 0x1b2   : > { %v672_v46 = vsel %vm656_vm1, %v643_v59, %v583_v45 }
 0x1b3   : > { %1427 = vmatpush1.bf16.msra.mxu0 %v6108_v48  ;;  %1520 = vmatpush1.bf16.msra.mxu1 %v6110_v49 }
 0x1b4   : > { %1428 = vmatprep.subr.bf16.mxu0 %v6112_v50  ;;  %1521 = vmatprep.subr.bf16.mxu1 %v5609_v0  ;;  %v608_v60 = vpop.permute.xlu0 %607 }
 0x1b5   : > { %v610_v63 = vpop.permute.xlu1 %609  ;;  %v695_v48 = vsel %vm681_vm2, %v670_v44, %v608_v60 }
 0x1b6   : > { %v697_v49 = vsel %vm681_vm2, %v672_v46, %v610_v63 }
 0x1b7   : > { %v4117_v10 = vcombine.low %v695_v48, %v697_v49  ;;  %1429 = vmatpush1.bf16.msra.mxu0 %v6131_v55  ;;  %1522 = vmatpush1.bf16.msra.mxu1 %v6123_v53 }
 0x1b8   : > { %1430 = vmatprep.subr.bf16.mxu0 %v6134_v56  ;;  %1523 = vmatprep.subr.bf16.mxu1 %v5609_v0  ;;  %v525_v50 = vpop.permute.xlu0 %524  ;;  %v5267_v56 = vld [vmem:[%s5979_s22 + $0x20] sm:$0xf]  ;;  %s5514_s22 = scalar_lea.vmem %s5513_s15, 256 }
 0x1b9   : > { %v527_v51 = vpop.permute.xlu1 %526  ;;  %1231 = vmatmul.mubr.bf16.gmra.mrb[12].mxu0 %v4117_v10  ;;  %1318 = vmatmul.mubr.bf16.gmra.mrb[12].mxu1 %v4117_v10  ;;  %v646_v11 = vsel %vm619_vm0, %v5267_v56, %v525_v50  ;;  %v5275_v10 = vld [vmem:[%s5986_s12 + $0x1c] sm:$0xf]  ;;  %p5516_p8 = scmp.lt.s32.totalorder %s5514_s22, %s5508_s11 }
 0x1ba   : > { %4157 = vmatprep.mubr.msk.bf16.mxu0 %vm619_vm0, %v4120_v3  ;;  %4163 = vmatprep.mubr.msk.bf16.mxu1 %vm619_vm0, %v4120_v3  ;;  %v649_v13 = vsel %vm619_vm0, %v6175_v6, %v527_v51  ;;  %v5274_v3 = vld [vmem:[%s5986_s12 + $0x18] sm:$0xf] }
 0x1bb   : > { %1431 = vmatpush1.bf16.msra.mxu0 %v6154_v61  ;;  %1524 = vmatpush1.bf16.msra.mxu1 %v6140_v58  ;;  %v4170_v50 = vcombine.low %v5274_v3, %v5275_v10  ;;  %p5517_p11 = por %p5516_p8, %p5515_p9 }
 0x1bc   : > { %1432 = vmatprep.subr.bf16.mxu0 %v6157_v62  ;;  %1525 = vmatprep.subr.bf16.mxu1 %v5609_v0  ;;  %v585_v53 = vpop.permute.xlu0 %584  ;;  %v4122_v0 = vcombine.low %v6208_v20, %v6319_v54 }
 0x1bd   : > { %v587_v55 = vpop.permute.xlu1 %586  ;;  %v674_v61 = vsel %vm656_vm1, %v646_v11, %v585_v53  ;;  %p5518_p3 = pnand %p5517_p11, %p5511_p7 }
 0x1be   : > { %v676_v58 = vsel %vm656_vm1, %v649_v13, %v587_v55 }
 0x1bf   : > { %1433 = vmatpush1.bf16.msra.mxu0 %v6169_v4  ;;  %1526 = vmatpush1.bf16.msra.mxu1 %v6163_v1 }
 0x1c0   : > { %v612_v15 = vpop.permute.xlu0 %611 }
 0x1c1   : > { %v614_v62 = vpop.permute.xlu1 %613  ;;  %v699_v17 = vsel %vm681_vm2, %v674_v61, %v612_v15 }
 0x1c2   : > { %v701_v4 = vsel %vm681_vm2, %v676_v58, %v614_v62 }
 0x1c3   : > { %v4119_v1 = vcombine.low %v699_v17, %v701_v4 }
 0x1c4   : > { %v529_v19 = vpop.permute.xlu0 %528 }
 0x1c5   : > { %v531_v25 = vpop.permute.xlu1 %530  ;;  %1241 = vmatmul.mubr.bf16.gmra.mrb[16].mxu0 %v4119_v1  ;;  %1326 = vmatmul.mubr.bf16.gmra.mrb[16].mxu1 %v4119_v1  ;;  %v652_v20 = vsel %vm619_vm0, %v6178_v9, %v529_v19  ;;  %v5276_v1 = vld [vmem:[%s5986_s12 + $0x20] sm:$0xf]  ;;  %v5277_v19 = vld [vmem:[%s5986_s12 + $0x24] sm:$0xf] }
 0x1c6   : > { %4158 = vmatprep.mubr.msk.bf16.mxu0 %vm619_vm0, %v4122_v0  ;;  %4164 = vmatprep.mubr.msk.bf16.mxu1 %vm619_vm0, %v4122_v0  ;;  %v655_v54 = vsel %vm619_vm0, %v6205_v14, %v531_v25  ;;  %v4172_v25 = vcombine.low %v5276_v1, %v5277_v19 }
 0x1c8   : > { %v589_v6 = vpop.permute.xlu0 %588 }
 0x1c9   : > { %v591_v5 = vpop.permute.xlu1 %590  ;;  %v678_v7 = vsel %vm656_vm1, %v652_v20, %v589_v6 }
 0x1ca   : > { %v680_v8 = vsel %vm656_vm1, %v655_v54, %v591_v5 }
 0x1cc   : > { %v616_v12 = vpop.permute.xlu0 %615 }
 0x1cd   : > { %v618_v36 = vpop.permute.xlu1 %617  ;;  %v703_v21 = vsel %vm681_vm2, %v678_v7, %v616_v12 }
 0x1ce   : > { %v705_v27 = vsel %vm681_vm2, %v680_v8, %v618_v36 }
 0x1cf   : > { %v4121_v28 = vcombine.low %v703_v21, %v705_v27 }
 0x1d0   : > { %v707_v9 = vpop.permute.xlu0 %706 }
 0x1d1   : > { %v709_v26 = vpop.permute.xlu1 %708  ;;  %1251 = vmatmul.mubr.bf16.gmra.mrb[20].mxu0 %v4121_v28  ;;  %1334 = vmatmul.mubr.bf16.gmra.mrb[20].mxu1 %v4121_v28  ;;  %v783_v31 = vsel %vm619_vm0, %v5270_v30, %v707_v9  ;;  %v5278_v28 = vld [vmem:[%s5986_s12 + $0x28] sm:$0xf]  ;;  %v5279_v9 = vld [vmem:[%s5986_s12 + $0x2c] sm:$0xf] }
 0x1d2   : > { %4177 = vmatprep.mubr.msk.bf16.mxu0 %vm619_vm0, %v4166_v24  ;;  %4183 = vmatprep.mubr.msk.bf16.mxu1 %vm619_vm0, %v4166_v24  ;;  %v786_v33 = vsel %vm619_vm0, %v5271_v32, %v709_v26  ;;  %v4174_v26 = vcombine.low %v5278_v28, %v5279_v9 }
 0x1d4   : > { %v731_v14 = vpop.permute.xlu0 %730 }
 0x1d5   : > { %v733_v29 = vpop.permute.xlu1 %732  ;;  %v818_v34 = vsel %vm656_vm1, %v783_v31, %v731_v14 }
 0x1d6   : > { %v820_v37 = vsel %vm656_vm1, %v786_v33, %v733_v29  ;;  %v471_v33 = vld [vmem:[%s5986_s12 + $0x34] sm:$0xf] }
 0x1d8   : > { %v758_v2 = vpop.permute.xlu0 %757 }
 0x1d9   : > { %v760_v38 = vpop.permute.xlu1 %759  ;;  %v842_v16 = vsel %vm681_vm2, %v818_v34, %v758_v2 }
 0x1da   : > { %v844_v35 = vsel %vm681_vm2, %v820_v37, %v760_v38 }
 0x1db   : > { %v4165_v42 = vcombine.low %v842_v16, %v844_v35 }
 0x1dc   : > { %v711_v43 = vpop.permute.xlu0 %710 }
 0x1dd   : > { %v713_v52 = vpop.permute.xlu1 %712  ;;  %1447 = vmatmul.mubr.bf16.vlgmr.msra.gmra.mrb[24].mxu0 %v4165_v42  ;;  %1540 = vmatmul.mubr.bf16.vlgmr.msra.gmra.mrb[24].mxu1 %v4165_v42  ;;  %v789_v57 = vsel %vm619_vm0, %v5268_v18, %v711_v43 }
 0x1de   : > { %4178 = vmatprep.mubr.msk.bf16.mxu0 %vm619_vm0, %v4168_v41  ;;  %4184 = vmatprep.mubr.msk.bf16.mxu1 %vm619_vm0, %v4168_v41  ;;  %v792_v59 = vsel %vm619_vm0, %v5269_v23, %v713_v52 }
 0x1e0   : > { %v735_v45 = vpop.permute.xlu0 %734 }
 0x1e1   : > { %v737_v47 = vpop.permute.xlu1 %736  ;;  %v822_v44 = vsel %vm656_vm1, %v789_v57, %v735_v45 }
 0x1e2   : > { %v824_v46 = vsel %vm656_vm1, %v792_v59, %v737_v47 }
 0x1e4   : > { %v762_v60 = vpop.permute.xlu0 %761 }
 0x1e5   : > { %v764_v63 = vpop.permute.xlu1 %763  ;;  %v846_v48 = vsel %vm681_vm2, %v822_v44, %v762_v60 }
 0x1e6   : > { %v848_v49 = vsel %vm681_vm2, %v824_v46, %v764_v63 }
 0x1e7   : > { %v4167_v51 = vcombine.low %v846_v48, %v848_v49 }
 0x1e8   : > { %v715_v53 = vpop.permute.xlu0 %714 }
 0x1e9   : > { %v717_v55 = vpop.permute.xlu1 %716  ;;  %1457 = vmatmul.mubr.bf16.gmra.mrb[28].mxu0 %v4167_v51  ;;  %1548 = vmatmul.mubr.bf16.gmra.mrb[28].mxu1 %v4167_v51  ;;  %v795_v13 = vsel %vm619_vm0, %v5272_v39, %v715_v53  ;;  %v4176_v39 = vcombine.low %v6216_v22, %v471_v33 }
 0x1ea   : > { %4179 = vmatprep.mubr.msk.bf16.mxu0 %vm619_vm0, %v4170_v50  ;;  %4185 = vmatprep.mubr.msk.bf16.mxu1 %vm619_vm0, %v4170_v50  ;;  %v798_v61 = vsel %vm619_vm0, %v5273_v40, %v717_v55 }
 0x1ec   : > { %v739_v56 = vpop.permute.xlu0 %738 }
 0x1ed   : > { %v741_v11 = vpop.permute.xlu1 %740  ;;  %v826_v58 = vsel %vm656_vm1, %v795_v13, %v739_v56 }
 0x1ee   : > { %v828_v15 = vsel %vm656_vm1, %v798_v61, %v741_v11 }
 0x1f0   : > { %v766_v62 = vpop.permute.xlu0 %765 }
 0x1f1   : > { %v768_v0 = vpop.permute.xlu1 %767  ;;  %v850_v17 = vsel %vm681_vm2, %v826_v58, %v766_v62 }
 0x1f2   : > { %v852_v4 = vsel %vm681_vm2, %v828_v15, %v768_v0 }
 0x1f3   : > { %v4169_v6 = vcombine.low %v850_v17, %v852_v4 }
 0x1f4   : > { %v719_v5 = vpop.permute.xlu0 %718 }
 0x1f5   : > { %v721_v20 = vpop.permute.xlu1 %720  ;;  %1467 = vmatmul.mubr.bf16.gmra.mrb[32].mxu0 %v4169_v6  ;;  %1556 = vmatmul.mubr.bf16.gmra.mrb[32].mxu1 %v4169_v6  ;;  %v801_v8 = vsel %vm619_vm0, %v5274_v3, %v719_v5  ;;  %v5100_v6 = vld [vmem:[#allocation10 + $0xc0] sm:$0xff]  }
 0x1f6   : > { %4180 = vmatprep.mubr.msk.bf16.mxu0 %vm619_vm0, %v4172_v25  ;;  %4186 = vmatprep.mubr.msk.bf16.mxu1 %vm619_vm0, %v4172_v25  ;;  %v804_v12 = vsel %vm619_vm0, %v5275_v10, %v721_v20  ;;  %v5096_v25 = vld [vmem:[#allocation10 + $0x48] sm:$0xff]   ;;  %v5101_v5 = vld [vmem:[#allocation10 + $0x80] sm:$0xff]  }
 0x1f7   : > { %v5097_v20 = vld [vmem:[#allocation10 + $0x8] sm:$0xff]   ;;  %4387 = vmatprep.subr.bf16.mxu1 %v5100_v6 }
 0x1f8   : > { %v743_v54 = vpop.permute.xlu0 %742  ;;  %4388 = vmatpush3.bf16.msra.mxu1 %v5101_v5 }
 0x1f9   : > { %v745_v7 = vpop.permute.xlu1 %744  ;;  %v830_v36 = vsel %vm656_vm1, %v801_v8, %v743_v54  ;;  %v5104_v54 = vld [vmem:[#allocation10 + $0xc8] sm:$0xff]  }
 0x1fa   : > { %v832_v21 = vsel %vm656_vm1, %v804_v12, %v745_v7  ;;  %v5098_v7 = vld [vmem:[#allocation10 + $0x50] sm:$0xff]   ;;  %4389 = vmatprep.subr.bf16.mxu1 %v5104_v54 }
 0x1fc   : > { %v770_v27 = vpop.permute.xlu0 %769 }
 0x1fd   : > { %v772_v18 = vpop.permute.xlu1 %771  ;;  %v854_v23 = vsel %vm681_vm2, %v830_v36, %v770_v27  ;;  %v5105_v36 = vld [vmem:[#allocation10 + $0x88] sm:$0xff]  }
 0x1fe   : > { %v856_v24 = vsel %vm681_vm2, %v832_v21, %v772_v18  ;;  %4390 = vmatpush3.bf16.msra.mxu1 %v5105_v36 }
 0x1ff   : > { %v4171_v14 = vcombine.low %v854_v23, %v856_v24  ;;  %v5099_v24 = vld [vmem:[#allocation10 + $0x10] sm:$0xff]  }
 0x200   : > { %v723_v29 = vpop.permute.xlu0 %722 }
 0x201   : > { %v725_v30 = vpop.permute.xlu1 %724  ;;  %1477 = vmatmul.mubr.bf16.gmra.mrb[36].mxu0 %v4171_v14  ;;  %1564 = vmatmul.mubr.bf16.gmra.mrb[36].mxu1 %v4171_v14  ;;  %v807_v34 = vsel %vm619_vm0, %v5276_v1, %v723_v29  ;;  %v5094_v1 = vld [vmem:[#allocation10 + $0x40] sm:$0xff]   ;;  %v5103_v14 = vld [vmem:[#allocation10 + $0x18] sm:$0xff]  }
 0x202   : > { %4181 = vmatprep.mubr.msk.bf16.mxu0 %vm619_vm0, %v4174_v26  ;;  %4187 = vmatprep.mubr.msk.bf16.mxu1 %vm619_vm0, %v4174_v26  ;;  %v810_v37 = vsel %vm619_vm0, %v5277_v19, %v725_v30  ;;  %v5095_v19 = vld [vmem:[#allocation10] sm:$0xff]   ;;  %v5102_v26 = vld [vmem:[#allocation10 + $0x58] sm:$0xff]  }
 0x203   : > { %4347 = vmatprep.subr.bf16.mxu0 %v5094_v1  ;;  %v5106_v29 = vld [vmem:[#allocation10 + $0x60] sm:$0xff]  }
 0x204   : > { %v747_v31 = vpop.permute.xlu0 %746  ;;  %4348 = vmatpush3.bf16.msra.mxu0 %v5095_v19  ;;  %v5107_v30 = vld [vmem:[#allocation10 + $0x20] sm:$0xff]  }
 0x205   : > { %v749_v32 = vpop.permute.xlu1 %748  ;;  %v834_v2 = vsel %vm656_vm1, %v807_v34, %v747_v31  ;;  %4349 = vmatprep.subr.bf16.mxu0 %v5096_v25 }
 0x206   : > { %v836_v38 = vsel %vm656_vm1, %v810_v37, %v749_v32 }
 0x208   : > { %4350 = vmatpush3.bf16.msra.mxu0 %v5097_v20  ;;  %v5108_v20 = vld [vmem:[#allocation10 + $0x68] sm:$0xff]  }
 0x209   : > { %v774_v16 = vpop.permute.xlu0 %773  ;;  %v776_v35 = vpop.permute.xlu1 %775  ;;  %4351 = vmatprep.subr.bf16.mxu0 %v5098_v7  ;;  %v5110_v7 = vld [vmem:[#allocation10 + $0x28] sm:$0xff]  }
 0x20a   : > { %v858_v40 = vsel %vm681_vm2, %v834_v2, %v774_v16  ;;  %v860_v41 = vsel %vm681_vm2, %v836_v38, %v776_v35  ;;  %v957_v35 = vlaneseq }
 0x20b   : > { %v4173_v42 = vcombine.low %v858_v40, %v860_v41 }
 0x20c   : > { %4352 = vmatpush3.bf16.msra.mxu0 %v5099_v24  ;;  %v5109_v24 = vld [vmem:[#allocation10 + $0xd0] sm:$0xff]  }
 0x20d   : > { %v727_v43 = vpop.permute.xlu0 %726  ;;  %v729_v52 = vpop.permute.xlu1 %728  ;;  %1487 = vmatmul.mubr.bf16.gmra.mrb[40].mxu0 %v4173_v42  ;;  %1572 = vmatmul.mubr.bf16.gmra.mrb[40].mxu1 %v4173_v42 }
 0x20e   : > { %4182 = vmatprep.mubr.msk.bf16.mxu0 %vm619_vm0, %v4176_v39  ;;  %4188 = vmatprep.mubr.msk.bf16.mxu1 %vm619_vm0, %v4176_v39  ;;  %v813_v45 = vsel %vm619_vm0, %v5278_v28, %v727_v43  ;;  %v816_v47 = vsel %vm619_vm0, %v5279_v9, %v729_v52 }
 0x20f   : > { %4353 = vmatprep.subr.bf16.mxu0 %v5102_v26  ;;  %4391 = vmatprep.subr.bf16.mxu1 %v5109_v24 }
 0x210   : > { %4354 = vmatpush3.bf16.msra.mxu0 %v5103_v14 }
 0x211   : > { %v751_v57 = vpop.permute.xlu0 %750  ;;  %v753_v59 = vpop.permute.xlu1 %752  ;;  %4355 = vmatprep.subr.bf16.mxu0 %v5106_v29 }
 0x212   : > { %v838_v22 = vsel %vm656_vm1, %v813_v45, %v751_v57  ;;  %v840_v44 = vsel %vm656_vm1, %v816_v47, %v753_v59  ;;  %v958_v45 = vshrl.u32 %v957_v35, 7 }
 0x214   : > { %4356 = vmatpush3.bf16.msra.mxu0 %v5107_v30  ;;  %v967_v59 = vsub.s32 2, %v958_v45 }
 0x215   : > { %v778_v46 = vpop.permute.xlu0 %777  ;;  %v780_v60 = vpop.permute.xlu1 %779  ;;  %4357 = vmatprep.subr.bf16.mxu0 %v5108_v20 }
 0x216   : > { %v862_v63 = vsel %vm681_vm2, %v838_v22, %v778_v46  ;;  %v864_v48 = vsel %vm681_vm2, %v840_v44, %v780_v60  ;;  %v955_v22 = vld [vmem:[#allocation8] sm:$0x7] }
 0x217   : > { %v4175_v49 = vcombine.low %v862_v63, %v864_v48  ;;  %v6526_v44 = vrot.slane %v955_v22, %v967_v59  ;;  %v959_v63 = vsub.s32 0, %v958_v45 }
 0x218   : > { %4358 = vmatpush3.bf16.msra.mxu0 %v5110_v7 }
 0x219   : > { %1497 = vmatmul.mubr.bf16.gmra.mrb[44].mxu0 %v4175_v49  ;;  %1580 = vmatmul.mubr.bf16.gmra.mrb[44].mxu1 %v4175_v49  ;;  %v6542_v6 = vrot.slane %v955_v22, %v959_v63 }
 0x268   : > { %v6465_v3 = vpop.f32.mrb[0].mxu0  ;;  %v6467_v10 = vpop.f32.mrb[0].mxu1 }
 0x269   : > { %v6469_v50 = vpop.f32.mrb[1].mxu0  ;;  %v1297_v51 = vpop.f32.mrb[1].mxu1  ;;  %v1203_v54 = vadd.f32 %v6465_v3, %v6542_v6  ;;  %v1296_v36 = vadd.f32 %v6467_v10, %v6526_v44  ;;  %v5112_v3 = vld [vmem:[#allocation10 + $0x70] sm:$0xff]  }
 0x26a   : > { %v6471_v53 = vpop.f32.mrb[2].mxu0  ;;  %v6473_v55 = vpop.f32.mrb[2].mxu1  ;;  %4359 = vmatprep.subr.bf16.mxu0 %v5112_v3 }
 0x26b   : > { %v6475_v56 = vpop.f32.mrb[3].mxu0  ;;  %v1300_v11 = vpop.f32.mrb[3].mxu1  ;;  %v1299_v26 = vadd.f32 %v6473_v55, %v6526_v44  ;;  %v1342_v30 = vmax.f32 %v1203_v54, 0.0 }
 0x26c   : > { %v963_v11 = vsub.s32 1, %v958_v45  ;;  %v5113_v45 = vld [vmem:[#allocation10 + $0x30] sm:$0xff]  }
 0x26d   : > { %4360 = vmatpush3.bf16.msra.mxu0 %v5113_v45  ;;  %v1347_v7 = vmax.f32 %v1299_v26, 0.0 }
 0x26e   : > { %v6544_v5 = vrot.slane %v955_v22, %v963_v11 }
 0x274   : > { %v6477_v13 = vpop.f32.mrb[4].mxu0  ;;  %v6479_v61 = vpop.f32.mrb[4].mxu1 }
 0x275   : > { %v6481_v58 = vpop.f32.mrb[5].mxu0  ;;  %v1305_v15 = vpop.f32.mrb[5].mxu1 }
 0x276   : > { %v6483_v62 = vpop.f32.mrb[6].mxu0  ;;  %v6485_v0 = vpop.f32.mrb[6].mxu1 }
 0x277   : > { %v6487_v17 = vpop.f32.mrb[7].mxu0  ;;  %v1308_v4 = vpop.f32.mrb[7].mxu1 }
 0x280   : > { %v6489_v8 = vpop.f32.mrb[8].mxu0  ;;  %v6491_v12 = vpop.f32.mrb[8].mxu1 }
 0x281   : > { %v6493_v21 = vpop.f32.mrb[9].mxu0  ;;  %v1313_v27 = vpop.f32.mrb[9].mxu1 }
 0x282   : > { %v6495_v18 = vpop.f32.mrb[10].mxu0  ;;  %v6497_v23 = vpop.f32.mrb[10].mxu1  ;;  %v1205_v27 = vadd.f32 %v6469_v50, %v6544_v5 }
 0x283   : > { %v6499_v28 = vpop.f32.mrb[11].mxu0  ;;  %v1316_v9 = vpop.f32.mrb[11].mxu1 }
 0x284   : > { %v1207_v9 = vadd.f32 %v6471_v53, %v6542_v6  ;;  %v1343_v59 = vmax.f32 %v1205_v27, 0.0  ;;  %v1209_v53 = vadd.f32 %v6475_v56, %v6544_v5  ;;  %v5116_v27 = vld [vmem:[#allocation10 + $0x78] sm:$0xff]  }
 0x285   : > { %4361 = vmatprep.subr.bf16.mxu0 %v5116_v27 }
 0x286   : > { %v1345_v54 = vmax.f32 %v1207_v9, 0.0 }
 0x28c   : > { %v6501_v31 = vpop.f32.mrb[12].mxu0  ;;  %v6503_v32 = vpop.f32.mrb[12].mxu1 }
 0x28d   : > { %v6505_v33 = vpop.f32.mrb[13].mxu0  ;;  %v1321_v34 = vpop.f32.mrb[13].mxu1 }
 0x28e   : > { %v6507_v37 = vpop.f32.mrb[14].mxu0  ;;  %v6509_v2 = vpop.f32.mrb[14].mxu1 }
 0x28f   : > { %v6511_v38 = vpop.f32.mrb[15].mxu0  ;;  %v1324_v16 = vpop.f32.mrb[15].mxu1 }
 0x298   : > { %v6513_v39 = vpop.f32.mrb[16].mxu0  ;;  %v6515_v40 = vpop.f32.mrb[16].mxu1 }
 0x299   : > { %v6517_v41 = vpop.f32.mrb[17].mxu0  ;;  %v1329_v42 = vpop.f32.mrb[17].mxu1 }
 0x29a   : > { %v6519_v43 = vpop.f32.mrb[18].mxu0  ;;  %v6521_v52 = vpop.f32.mrb[18].mxu1  ;;  %v5111_v42 = vld [vmem:[#allocation10 + $0x90] sm:$0xff]  }
 0x29b   : > { %v6524_v47 = vpop.f32.mrb[19].mxu0  ;;  %v1332_v57 = vpop.f32.mrb[19].mxu1  ;;  %4392 = vmatpush3.bf16.msra.mxu1 %v5111_v42  ;;  %v5117_v42 = vld [vmem:[#allocation10 + $0x38] sm:$0xff]  }
 0x29c   : > { %v1344_v57 = vmax.f32 %v1296_v36, 0.0  ;;  %4362 = vmatpush3.bf16.msra.mxu0 %v5117_v42 }
 0x2a4   : > { %v6528_v46 = vpop.f32.mrb[20].mxu0  ;;  %v1335_v60 = vpop.f32.mrb[20].mxu1 }
 0x2a5   : > { %v6531_v48 = vadd.f32 %v1335_v60, %v6526_v44  ;;  %v6533_v49 = vpop.f32.mrb[21].mxu0  ;;  %v1337_v51 = vpop.f32.mrb[21].mxu1 }
 0x2a6   : > { %v6535_v15 = vpop.f32.mrb[22].mxu0  ;;  %v1338_v4 = vpop.f32.mrb[22].mxu1 }
 0x2a7   : > { %v6538_v1 = vadd.f32 %v1338_v4, %v6526_v44  ;;  %v6540_v19 = vpop.f32.mrb[23].mxu0  ;;  %v1340_v25 = vpop.f32.mrb[23].mxu1 }
 0x2b0   : > { %v1448_v14 = vpop.f32.mrb[24].mxu0  ;;  %v1541_v29 = vpop.f32.mrb[24].mxu1 }
 0x2b1   : > { %v1449_v34 = vadd.f32 %v1448_v14, %v6542_v6  ;;  %v1542_v10 = vadd.f32 %v1541_v29, %v6526_v44  ;;  %v1450_v16 = vpop.f32.mrb[25].mxu0  ;;  %v1543_v50 = vpop.f32.mrb[25].mxu1 }
 0x2b2   : > { %v1451_v55 = vadd.f32 %v1450_v16, %v6544_v5  ;;  %v1452_v22 = vpop.f32.mrb[26].mxu0  ;;  %v1544_v60 = vpop.f32.mrb[26].mxu1 }
 0x2b3   : > { %v1588_v63 = vmax.f32 %v1449_v34, 0.0  ;;  %v1590_v51 = vmax.f32 %v1542_v10, 0.0  ;;  %v1453_v11 = vadd.f32 %v1452_v22, %v6542_v6  ;;  %v1545_v4 = vadd.f32 %v1544_v60, %v6526_v44  ;;  %v1454_v25 = vpop.f32.mrb[27].mxu0  ;;  %v1546_v20 = vpop.f32.mrb[27].mxu1  ;;  %v5114_v34 = vld [vmem:[#allocation10 + $0xd8] sm:$0xff]   ;;  %v5118_v60 = vld [vmem:[#allocation10 + $0xe0] sm:$0xff]  }
 0x2b4   : > { %v1589_v36 = vmax.f32 %v1451_v55, 0.0  ;;  %v1455_v56 = vadd.f32 %v1454_v25, %v6544_v5  ;;  %v1346_v10 = vmax.f32 %v1209_v53, 0.0  ;;  %v5115_v22 = vld [vmem:[#allocation10 + $0x98] sm:$0xff]   ;;  %4393 = vmatprep.subr.bf16.mxu1 %v5114_v34  ;;  %v1215_v53 = vadd.f32 %v6481_v58, %v6544_v5 }
 0x2b5   : > { %v6564_v24 = vmax.f32 %v1342_v30, %v1588_v63  ;;  %v6566_v14 = vmax.f32 %v1344_v57, %v1590_v51  ;;  %v1591_v29 = vmax.f32 %v1453_v11, 0.0  ;;  %v1593_v3 = vmax.f32 %v1545_v4, 0.0  ;;  %4394 = vmatpush3.bf16.msra.mxu1 %v5115_v22  ;;  %v5119_v63 = vld [vmem:[#allocation10 + $0xa0] sm:$0xff]  }
 0x2b6   : > { %v6568_v16 = vmax.f32 %v1343_v59, %v1589_v36  ;;  %v1592_v50 = vmax.f32 %v1455_v56, 0.0  ;;  %v1213_v30 = vadd.f32 %v6477_v13, %v6542_v6  ;;  %v1304_v57 = vadd.f32 %v6479_v61, %v6526_v44  ;;  %4395 = vmatprep.subr.bf16.mxu1 %v5118_v60 }
 0x2b7   : > { %v6570_v9 = vmax.f32 %v1345_v54, %v1591_v29  ;;  %v6572_v26 = vmax.f32 %v1347_v7, %v1593_v3  ;;  %v1217_v13 = vadd.f32 %v6483_v62, %v6542_v6  ;;  %v1307_v61 = vadd.f32 %v6485_v0, %v6526_v44  ;;  %v5120_v3 = vld [vmem:[#allocation10 + $0xe8] sm:$0xff]  }
 0x2b8   : > { %v6574_v45 = vmax.f32 %v1346_v10, %v1592_v50  ;;  %v1348_v58 = vmax.f32 %v1213_v30, 0.0  ;;  %v1350_v4 = vmax.f32 %v1304_v57, 0.0  ;;  %v1349_v36 = vmax.f32 %v1215_v53, 0.0  ;;  %v5121_v57 = vld [vmem:[#allocation10 + $0xa8] sm:$0xff]  }
 0x2b9   : > { %v4906_v59 = vpack.i.bf16 %v6572_v26, %v6566_v14  ;;  %4396 = vmatpush3.bf16.msra.mxu1 %v5119_v63  ;;  %v1219_v62 = vadd.f32 %v6487_v17, %v6544_v5  ;;  %v4916_v29 = vpack.i.bf16 %v6570_v9, %v6564_v24  ;;  %v1353_v53 = vmax.f32 %v1307_v61, 0.0  ;;  %v5124_v61 = vld [vmem:[#allocation10 + $0x140] sm:$0xff]  }
 0x2ba   : > { %v4911_v55 = vpack.i.bf16 %v6574_v45, %v6568_v16  ;;  %4397 = vmatprep.subr.bf16.mxu1 %v5120_v3  ;;  %4427 = vmatprep.subr.bf16.mxu0 %v5124_v61  ;;  %v5126_v3 = vld [vmem:[#allocation10 + $0xf8] sm:$0xff]  }
 0x2bb   : > { %4907 = vrot.lane.b32.xlu1 %v4906_v59, %s5613_s26  ;;  %v1351_v59 = vmax.f32 %v1217_v13, 0.0  ;;  %v5123_v13 = vld [vmem:[#allocation10 + $0xb0] sm:$0xff]  }
 0x2bc   : > { %v1458_v51 = vpop.f32.mrb[28].mxu0  ;;  %v1549_v11 = vpop.f32.mrb[28].mxu1  ;;  %4912 = vrot.lane.b32.xlu0 %v4911_v55, %s5613_s26 }
 0x2bd   : > { %v1459_v25 = vadd.f32 %v1458_v51, %v6542_v6  ;;  %v1550_v20 = vadd.f32 %v1549_v11, %v6526_v44  ;;  %v1460_v54 = vpop.f32.mrb[29].mxu0  ;;  %v1551_v7 = vpop.f32.mrb[29].mxu1  ;;  %4398 = vmatpush3.bf16.msra.mxu1 %v5121_v57 }
 0x2be   : > { %v1461_v0 = vadd.f32 %v1460_v54, %v6544_v5  ;;  %v1462_v56 = vpop.f32.mrb[30].mxu0  ;;  %v1552_v27 = vpop.f32.mrb[30].mxu1  ;;  %v5122_v7 = vld [vmem:[#allocation10 + $0xf0] sm:$0xff]  }
 0x2bf   : > { %v1594_v34 = vmax.f32 %v1459_v25, 0.0  ;;  %v1596_v10 = vmax.f32 %v1550_v20, 0.0  ;;  %v1463_v50 = vadd.f32 %v1462_v56, %v6542_v6  ;;  %v1553_v22 = vadd.f32 %v1552_v27, %v6526_v44  ;;  %v1464_v42 = vpop.f32.mrb[31].mxu0  ;;  %v1554_v30 = vpop.f32.mrb[31].mxu1  ;;  %4399 = vmatprep.subr.bf16.mxu1 %v5122_v7 }
 0x2c0   : > { %v1595_v17 = vmax.f32 %v1461_v0, 0.0  ;;  %v1465_v55 = vadd.f32 %v1464_v42, %v6544_v5  ;;  %4917 = vrot.lane.b32.xlu0 %v4916_v29, %s5613_s26  ;;  %v1352_v25 = vmax.f32 %v1219_v62, 0.0  ;;  %v1225_v62 = vadd.f32 %v6493_v21, %v6544_v5 }
 0x2c1   : > { %v6603_v60 = vmax.f32 %v1348_v58, %v1594_v34  ;;  %v6605_v63 = vmax.f32 %v1350_v4, %v1596_v10  ;;  %v1597_v51 = vmax.f32 %v1463_v50, 0.0  ;;  %v1599_v11 = vmax.f32 %v1553_v22, 0.0  ;;  %4400 = vmatpush3.bf16.msra.mxu1 %v5123_v13  ;;  %v5127_v34 = vld [vmem:[#allocation10 + $0xb8] sm:$0xff]  }
 0x2c2   : > { %v6607_v20 = vmax.f32 %v1349_v36, %v1595_v17  ;;  %v1598_v54 = vmax.f32 %v1465_v55, 0.0  ;;  %v1223_v58 = vadd.f32 %v6489_v8, %v6542_v6  ;;  %v1312_v4 = vadd.f32 %v6491_v12, %v6526_v44  ;;  %4401 = vmatprep.subr.bf16.mxu1 %v5126_v3 }
 0x2c3   : > { %v6609_v0 = vmax.f32 %v1351_v59, %v1597_v51  ;;  %v6611_v56 = vmax.f32 %v1353_v53, %v1599_v11  ;;  %v1227_v8 = vadd.f32 %v6495_v18, %v6542_v6  ;;  %v1315_v12 = vadd.f32 %v6497_v23, %v6526_v44 }
 0x2c4   : > { %v6613_v27 = vmax.f32 %v1352_v25, %v1598_v54  ;;  %v1354_v22 = vmax.f32 %v1223_v58, 0.0  ;;  %v1356_v21 = vmax.f32 %v1312_v4, 0.0  ;;  %v1355_v53 = vmax.f32 %v1225_v62, 0.0 }
 0x2c5   : > { %v4921_v36 = vpack.i.bf16 %v6611_v56, %v6605_v63  ;;  %4402 = vmatpush3.bf16.msra.mxu1 %v5127_v34  ;;  %v1229_v18 = vadd.f32 %v6499_v28, %v6544_v5  ;;  %v4931_v51 = vpack.i.bf16 %v6609_v0, %v6603_v60  ;;  %v1357_v58 = vmax.f32 %v1227_v8, 0.0 }
 0x2c6   : > { %v4926_v29 = vpack.i.bf16 %v6613_v27, %v6607_v20  ;;  %v1359_v4 = vmax.f32 %v1315_v12, 0.0  ;;  %v1233_v12 = vadd.f32 %v6501_v31, %v6542_v6  ;;  %v1323_v31 = vadd.f32 %v6509_v2, %v6526_v44 }
 0x2c7   : > { %4922 = vrot.lane.b32.xlu0 %v4921_v36, %s5613_s26 }
 0x2c8   : > { %v1468_v10 = vpop.f32.mrb[32].mxu0  ;;  %v1557_v50 = vpop.f32.mrb[32].mxu1  ;;  %4927 = vrot.lane.b32.xlu1 %v4926_v29, %s5613_s26 }
 0x2c9   : > { %v1469_v42 = vadd.f32 %v1468_v10, %v6542_v6  ;;  %v1558_v30 = vadd.f32 %v1557_v50, %v6526_v44  ;;  %v1470_v57 = vpop.f32.mrb[33].mxu0  ;;  %v1559_v59 = vpop.f32.mrb[33].mxu1  ;;  %v1358_v10 = vmax.f32 %v1229_v18, 0.0  ;;  %v5133_v18 = vld [vmem:[#allocation10 + $0x1c0] sm:$0xff]  }
 0x2ca   : > { %v1471_v23 = vadd.f32 %v1470_v57, %v6544_v5  ;;  %v1472_v17 = vpop.f32.mrb[34].mxu0  ;;  %v1560_v55 = vpop.f32.mrb[34].mxu1  ;;  %v1235_v59 = vadd.f32 %v6505_v33, %v6544_v5  ;;  %4467 = vmatprep.subr.bf16.mxu1 %v5133_v18 }
 0x2cb   : > { %v1600_v11 = vmax.f32 %v1469_v42, 0.0  ;;  %v1602_v25 = vmax.f32 %v1558_v30, 0.0  ;;  %v1473_v54 = vadd.f32 %v1472_v17, %v6542_v6  ;;  %v1561_v7 = vadd.f32 %v1560_v55, %v6526_v44  ;;  %v1474_v13 = vpop.f32.mrb[35].mxu0  ;;  %v1562_v61 = vpop.f32.mrb[35].mxu1 }
 0x2cc   : > { %v1601_v36 = vmax.f32 %v1471_v23, 0.0  ;;  %v1475_v28 = vadd.f32 %v1474_v13, %v6544_v5  ;;  %4932 = vrot.lane.b32.xlu1 %v4931_v51, %s5613_s26  ;;  %v1237_v23 = vadd.f32 %v6507_v37, %v6542_v6  ;;  %v1360_v55 = vmax.f32 %v1233_v12, 0.0 }
 0x2cd   : > { %v6642_v62 = vmax.f32 %v1354_v22, %v1600_v11  ;;  %v6644_v29 = vmax.f32 %v1356_v21, %v1602_v25  ;;  %v1603_v3 = vmax.f32 %v1473_v54, 0.0  ;;  %v1605_v34 = vmax.f32 %v1561_v7, 0.0 }
 0x2ce   : > { %v6646_v50 = vmax.f32 %v1355_v53, %v1601_v36  ;;  %v1604_v42 = vmax.f32 %v1475_v28, 0.0  ;;  %v1320_v22 = vadd.f32 %v6503_v32, %v6526_v44  ;;  %v1361_v7 = vmax.f32 %v1235_v59, 0.0 }
 0x2cf   : > { %v6648_v30 = vmax.f32 %v1357_v58, %v1603_v3  ;;  %v6650_v57 = vmax.f32 %v1359_v4, %v1605_v34  ;;  %v1239_v37 = vadd.f32 %v6511_v38, %v6544_v5  ;;  %v1365_v12 = vmax.f32 %v1323_v31, 0.0 }
 0x2d0   : > { %v6652_v8 = vmax.f32 %v1358_v10, %v1604_v42  ;;  %v1362_v51 = vmax.f32 %v1320_v22, 0.0  ;;  %v1363_v42 = vmax.f32 %v1237_v23, 0.0  ;;  %v1243_v31 = vadd.f32 %v6513_v39, %v6542_v6 }
 0x2d1   : > { %v4936_v21 = vpack.i.bf16 %v6650_v57, %v6644_v29  ;;  %v4946_v58 = vpack.i.bf16 %v6648_v30, %v6642_v62  ;;  %v1331_v39 = vadd.f32 %v6521_v52, %v6526_v44 }
 0x2d2   : > { %v4941_v53 = vpack.i.bf16 %v6652_v8, %v6646_v50 }
 0x2d3   : > { %4937 = vrot.lane.b32.xlu1 %v4936_v21, %s5613_s26 }
 0x2d4   : > { %v1478_v17 = vpop.f32.mrb[36].mxu0  ;;  %v1565_v32 = vpop.f32.mrb[36].mxu1  ;;  %4942 = vrot.lane.b32.xlu0 %v4941_v53, %s5613_s26 }
 0x2d5   : > { %v1479_v33 = vadd.f32 %v1478_v17, %v6542_v6  ;;  %v1566_v11 = vadd.f32 %v1565_v32, %v6526_v44  ;;  %v1480_v25 = vpop.f32.mrb[37].mxu0  ;;  %v1567_v54 = vpop.f32.mrb[37].mxu1  ;;  %v1364_v17 = vmax.f32 %v1239_v37, 0.0  ;;  %v1247_v37 = vadd.f32 %v6519_v43, %v6542_v6 }
 0x2d6   : > { %v1481_v13 = vadd.f32 %v1480_v25, %v6544_v5  ;;  %v1482_v2 = vpop.f32.mrb[38].mxu0  ;;  %v1568_v61 = vpop.f32.mrb[38].mxu1  ;;  %v1245_v54 = vadd.f32 %v6517_v41, %v6544_v5 }
 0x2d7   : > { %v1606_v4 = vmax.f32 %v1479_v33, 0.0  ;;  %v1608_v36 = vmax.f32 %v1566_v11, 0.0  ;;  %v1483_v28 = vadd.f32 %v1482_v2, %v6542_v6  ;;  %v1569_v3 = vadd.f32 %v1568_v61, %v6526_v44  ;;  %v1484_v34 = vpop.f32.mrb[39].mxu0  ;;  %v1570_v10 = vpop.f32.mrb[39].mxu1 }
 0x2d8   : > { %v1607_v22 = vmax.f32 %v1481_v13, 0.0  ;;  %v1485_v38 = vadd.f32 %v1484_v34, %v6544_v5  ;;  %4947 = vrot.lane.b32.xlu0 %v4946_v58, %s5613_s26 }
 0x2d9   : > { %v6681_v21 = vmax.f32 %v1360_v55, %v1606_v4  ;;  %v6683_v59 = vmax.f32 %v1362_v51, %v1608_v36  ;;  %v1609_v53 = vmax.f32 %v1483_v28, 0.0  ;;  %v1611_v18 = vmax.f32 %v1569_v3, 0.0 }
 0x2da   : > { %v6685_v32 = vmax.f32 %v1361_v7, %v1607_v22  ;;  %v1610_v33 = vmax.f32 %v1485_v38, 0.0  ;;  %v1328_v55 = vadd.f32 %v6515_v40, %v6526_v44  ;;  %v1366_v40 = vmax.f32 %v1243_v31, 0.0 }
 0x2db   : > { %v6687_v11 = vmax.f32 %v1363_v42, %v1609_v53  ;;  %v6689_v25 = vmax.f32 %v1365_v12, %v1611_v18  ;;  %v1367_v28 = vmax.f32 %v1245_v54, 0.0  ;;  %v1249_v3 = vadd.f32 %v6524_v47, %v6544_v5 }
 0x2dc   : > { %v6691_v23 = vmax.f32 %v1364_v17, %v1610_v33  ;;  %v1368_v61 = vmax.f32 %v1328_v55, 0.0  ;;  %v1369_v17 = vmax.f32 %v1247_v37, 0.0  ;;  %v1371_v33 = vmax.f32 %v1331_v39, 0.0 }
 0x2dd   : > { %v4951_v51 = vpack.i.bf16 %v6689_v25, %v6683_v59  ;;  %v4961_v10 = vpack.i.bf16 %v6687_v11, %v6681_v21  ;;  %v1253_v39 = vadd.f32 %v6528_v46, %v6542_v6 }
 0x2de   : > { %v4956_v7 = vpack.i.bf16 %v6691_v23, %v6685_v32 }
 0x2df   : > { %4952 = vrot.lane.b32.xlu0 %v4951_v51, %s5613_s26 }
 0x2e0   : > { %v1488_v13 = vpop.f32.mrb[40].mxu0  ;;  %v1573_v2 = vpop.f32.mrb[40].mxu1  ;;  %4957 = vrot.lane.b32.xlu1 %v4956_v7, %s5613_s26 }
 0x2e1   : > { %v1489_v58 = vadd.f32 %v1488_v13, %v6542_v6  ;;  %v1574_v41 = vadd.f32 %v1573_v2, %v6526_v44  ;;  %v1490_v4 = vpop.f32.mrb[41].mxu0  ;;  %v1575_v36 = vpop.f32.mrb[41].mxu1  ;;  %v1370_v13 = vmax.f32 %v1249_v3, 0.0 }
 0x2e2   : > { %v1491_v43 = vadd.f32 %v1490_v4, %v6544_v5  ;;  %v1492_v34 = vpop.f32.mrb[42].mxu0  ;;  %v1576_v52 = vpop.f32.mrb[42].mxu1 }
 0x2e3   : > { %v1612_v42 = vmax.f32 %v1489_v58, 0.0  ;;  %v1614_v12 = vmax.f32 %v1574_v41, 0.0  ;;  %v1493_v22 = vadd.f32 %v1492_v34, %v6542_v6  ;;  %v1577_v38 = vadd.f32 %v1576_v52, %v6526_v44  ;;  %v1494_v53 = vpop.f32.mrb[43].mxu0  ;;  %v1578_v18 = vpop.f32.mrb[43].mxu1 }
 0x2e4   : > { %v1613_v31 = vmax.f32 %v1491_v43, 0.0  ;;  %v1495_v47 = vadd.f32 %v1494_v53, %v6544_v5  ;;  %4962 = vrot.lane.b32.xlu1 %v4961_v10, %s5613_s26  ;;  %v1372_v34 = vmax.f32 %v1253_v39, 0.0 }
 0x2e5   : > { %v6720_v55 = vmax.f32 %v1366_v40, %v1612_v42  ;;  %v6722_v51 = vmax.f32 %v1368_v61, %v1614_v12  ;;  %v1615_v54 = vmax.f32 %v1493_v22, 0.0  ;;  %v1617_v7 = vmax.f32 %v1577_v38, 0.0 }
 0x2e6   : > { %v6724_v2 = vmax.f32 %v1367_v28, %v1613_v31  ;;  %v1616_v58 = vmax.f32 %v1495_v47, 0.0  ;;  %v1255_v61 = vadd.f32 %v6533_v49, %v6544_v5  ;;  %v1257_v28 = vadd.f32 %v6535_v15, %v6542_v6 }
 0x2e7   : > { %v6726_v41 = vmax.f32 %v1369_v17, %v1615_v54  ;;  %v6728_v4 = vmax.f32 %v1371_v33, %v1617_v7  ;;  %v1374_v12 = vmax.f32 %v6531_v48, 0.0  ;;  %v1259_v15 = vadd.f32 %v6540_v19, %v6544_v5 }
 0x2e8   : > { %v6730_v37 = vmax.f32 %v1370_v13, %v1616_v58  ;;  %v1373_v22 = vmax.f32 %v1255_v61, 0.0  ;;  %v1375_v13 = vmax.f32 %v1257_v28, 0.0  ;;  %v1377_v48 = vmax.f32 %v6538_v1, 0.0 }
 0x2e9   : > { %v4966_v40 = vpack.i.bf16 %v6726_v41, %v6720_v55  ;;  %v4976_v49 = vpack.i.bf16 %v6728_v4, %v6722_v51 }
 0x2ea   : > { %v4971_v36 = vpack.i.bf16 %v6730_v37, %v6724_v2 }
 0x2eb   : > { %4967 = vrot.lane.b32.xlu0 %v4966_v40, %s5613_s26 }
 0x2ec   : > { %v1498_v3 = vpop.f32.mrb[44].mxu0  ;;  %v1581_v43 = vpop.f32.mrb[44].mxu1  ;;  %4972 = vrot.lane.b32.xlu1 %v4971_v36, %s5613_s26 }
 0x2ed   : > { %v1499_v46 = vadd.f32 %v1498_v3, %v6542_v6  ;;  %v1582_v52 = vadd.f32 %v1581_v43, %v6526_v44  ;;  %v1500_v10 = vpop.f32.mrb[45].mxu0  ;;  %v1583_v42 = vpop.f32.mrb[45].mxu1  ;;  %v1376_v3 = vmax.f32 %v1259_v15, 0.0 }
 0x2ee   : > { %v1501_v38 = vadd.f32 %v1500_v10, %v6544_v5  ;;  %v1502_v53 = vpop.f32.mrb[46].mxu0  ;;  %v1584_v18 = vpop.f32.mrb[46].mxu1 }
 0x2ef   : > { %v1618_v17 = vmax.f32 %v1499_v46, 0.0  ;;  %v1620_v33 = vmax.f32 %v1582_v52, 0.0  ;;  %v1503_v31 = vadd.f32 %v1502_v53, %v6542_v6  ;;  %v1585_v47 = vadd.f32 %v1584_v18, %v6526_v44  ;;  %v1504_v54 = vpop.f32.mrb[47].mxu0  ;;  %4977 = vrot.lane.b32.xlu0 %v4976_v49, %s5613_s26  ;;  %v1586_v7 = vpop.f32.mrb[47].mxu1 }
 0x2f0   : > { %v1619_v58 = vmax.f32 %v1501_v38, 0.0  ;;  %v1505_v19 = vadd.f32 %v1504_v54, %v6544_v5  ;;  %v6779_v52 = vand.u32 127, %v957_v35 }
 0x2f1   : > { %v6757_v39 = vmax.f32 %v1372_v34, %v1618_v17  ;;  %v6759_v40 = vmax.f32 %v1374_v12, %v1620_v33  ;;  %v1621_v61 = vmax.f32 %v1503_v31, 0.0  ;;  %v1623_v36 = vmax.f32 %v1585_v47, 0.0 }
 0x2f2   : > { %v6761_v6 = vmax.f32 %v1373_v22, %v1619_v58  ;;  %v1622_v44 = vmax.f32 %v1505_v19, 0.0  ;;  %vm1734_vm3 = vcmp.lt.s32.totalorder %v6779_v52, 112  ;;  %v5125_v58 = vld [vmem:[#allocation10 + $0x100] sm:$0xff]   ;;  %v5128_v19 = vld [vmem:[#allocation10 + $0x148] sm:$0xff]  }
 0x2f3   : > { %v6763_v43 = vmax.f32 %v1375_v13, %v1621_v61  ;;  %v6765_v46 = vmax.f32 %v1377_v48, %v1623_v36 }
 0x2f4   : > { %v6767_v28 = vmax.f32 %v1376_v3, %v1622_v44 }
 0x2f5   : > { %v4981_v1 = vpack.i.bf16 %v6763_v43, %v6757_v39  ;;  %v4991_v34 = vpack.i.bf16 %v6765_v46, %v6759_v40 }
 0x2f6   : > { %v4986_v5 = vpack.i.bf16 %v6767_v28, %v6761_v6 }
 0x2f7   : > { %4982 = vrot.lane.b32.xlu1 %v4981_v1, %s5613_s26 }
 0x2f8   : > { %4987 = vrot.lane.b32.xlu0 %v4986_v5, %s5613_s26  ;;  %v5129_v5 = vld [vmem:[#allocation10 + $0x108] sm:$0xff]  }
 0x2fb   : > { %4992 = vrot.lane.b32.xlu1 %v4991_v34, %s5613_s26 }
 0x32d   : > { %v4908_v10 = vpop.permute.xlu1 %4907 }
 0x32e   : > { %v4910_v42 = vunpack.i.h.bf16 %v4908_v10  ;;  %v4909_v49 = vunpack.i.l.bf16 %v4908_v10  ;;  %v4913_v12 = vpop.permute.xlu0 %4912 }
 0x32f   : > { %v4915_v22 = vunpack.i.h.bf16 %v4913_v12  ;;  %v4914_v15 = vunpack.i.l.bf16 %v4913_v12 }
 0x331   : > { %v1736_v38 = vsel %vm1734_vm3, %v4915_v22, %v4910_v42  ;;  %v1735_v53 = vsel %vm1734_vm3, %v4914_v15, %v4909_v49 }
 0x332   : > { %v4918_v18 = vpop.permute.xlu0 %4917  ;;  %v1772_v17 = vmax.f32 %v6568_v16, %v1735_v53  ;;  %v1775_v35 = vmax.f32 %v6574_v45, %v1736_v38  ;;  %v5131_v53 = vld [vmem:[#allocation10 + $0x110] sm:$0xff]  }
 0x333   : > { %v4920_v33 = vunpack.i.h.bf16 %v4918_v18  ;;  %v4919_v31 = vunpack.i.l.bf16 %v4918_v18 }
 0x334   : > { %v6788_v47 = vpack.c.bf16 %v1775_v35, %v1772_v17  ;;  %v5132_v17 = vld [vmem:[#allocation10 + $0x158] sm:$0xff]  }
 0x335   : > { %v1748_v54 = vsel %vm1734_vm3, %v4920_v33, %v4915_v22  ;;  %v1747_v7 = vsel %vm1734_vm3, %v4919_v31, %v4914_v15 }
 0x336   : > { %v1774_v13 = vmax.f32 %v6570_v9, %v1748_v54  ;;  %v1771_v48 = vmax.f32 %v6564_v24, %v1747_v7  ;;  %2944 = vmatprep.mubr.bf16.mxu0 %v6788_v47  ;;  %v5130_v9 = vld [vmem:[#allocation10 + $0x150] sm:$0xff]  }
 0x338   : > { %v1807_v16 = vpack.c.bf16 %v1774_v13, %v1771_v48  ;;  %v5134_v48 = vld [vmem:[#allocation10 + $0x118] sm:$0xff]  }
 0x339   : > { %v6797_v45 = vpop.permute.xlu0 %4922 }
 0x33a   : > { %v4925_v61 = vunpack.i.h.bf16 %v6797_v45  ;;  %v4924_v36 = vunpack.i.l.bf16 %v6797_v45  ;;  %v4928_v3 = vpop.permute.xlu1 %4927  ;;  %2945 = vmatmul.mubr.bf16.vlgmr.msra.gmra.mrb[48].mxu0 %v1807_v16 }
 0x33b   : > { %v4930_v44 = vunpack.i.h.bf16 %v4928_v3  ;;  %v4929_v1 = vunpack.i.l.bf16 %v4928_v3  ;;  %4428 = vmatpush3.bf16.msra.mxu0 %v5125_v58 }
 0x33c   : > { %4429 = vmatprep.subr.bf16.mxu0 %v5128_v19  ;;  %v5136_v19 = vld [vmem:[#allocation10 + $0x160] sm:$0xff]  }
 0x33d   : > { %v1737_v24 = vsel %vm1734_vm3, %v4929_v1, %v4924_v36  ;;  %v1738_v34 = vsel %vm1734_vm3, %v4930_v44, %v4925_v61 }
 0x33e   : > { %v1778_v10 = vmax.f32 %v6607_v20, %v1737_v24  ;;  %v1781_v12 = vmax.f32 %v6613_v27, %v1738_v34  ;;  %v4933_v22 = vpop.permute.xlu1 %4932  ;;  %v1760_v20 = vsel %vm1734_vm3, %v4910_v42, %v4920_v33  ;;  %v1759_v27 = vsel %vm1734_vm3, %v4909_v49, %v4919_v31 }
 0x33f   : > { %v4935_v15 = vunpack.i.h.bf16 %v4933_v22  ;;  %v4934_v38 = vunpack.i.l.bf16 %v4933_v22  ;;  %4430 = vmatpush3.bf16.msra.mxu0 %v5129_v5  ;;  %v1776_v3 = vmax.f32 %v6572_v26, %v1760_v20  ;;  %v5135_v26 = vld [vmem:[#allocation10 + $0x180] sm:$0xff]   ;;  %v5141_v20 = vld [vmem:[#allocation10 + $0x128] sm:$0xff]  }
 0x340   : > { %v6811_v18 = vpack.c.bf16 %v1781_v12, %v1778_v10  ;;  %4431 = vmatprep.subr.bf16.mxu0 %v5130_v9  ;;  %v5137_v9 = vld [vmem:[#allocation10 + $0x120] sm:$0xff]   ;;  %v5138_v12 = vld [vmem:[#allocation10 + $0x1c8] sm:$0xff]  }
 0x341   : > { %v1750_v35 = vsel %vm1734_vm3, %v4935_v15, %v4930_v44  ;;  %v1749_v54 = vsel %vm1734_vm3, %v4934_v38, %v4929_v1  ;;  %v1773_v44 = vmax.f32 %v6566_v14, %v1759_v27  ;;  %v5140_v14 = vld [vmem:[#allocation10 + $0x168] sm:$0xff]  }
 0x342   : > { %v1780_v7 = vmax.f32 %v6609_v0, %v1750_v35  ;;  %v1777_v13 = vmax.f32 %v6603_v60, %v1749_v54  ;;  %2952 = vmatprep.mubr.bf16.mxu0 %v6811_v18  ;;  %v1846_v60 = vunpack.c.h.b16 %v1807_v16 }
 0x343   : > { %4432 = vmatpush3.bf16.msra.mxu0 %v5131_v53  ;;  %v6834_v34 = vpack.c.bf16 %v1776_v3, %v1773_v44  ;;  %v5142_v3 = vld [vmem:[#allocation10 + $0x1d0] sm:$0xff]  }
 0x344   : > { %v6824_v58 = vpack.c.bf16 %v1780_v7, %v1777_v13  ;;  %4433 = vmatprep.subr.bf16.mxu0 %v5132_v17  ;;  %v5139_v7 = vld [vmem:[#allocation10 + $0x188] sm:$0xff]   ;;  %v5144_v13 = vld [vmem:[#allocation10 + $0x170] sm:$0xff]  }
 0x345   : > { %v6828_v42 = vpop.permute.xlu1 %4937 }
 0x346   : > { %v4940_v49 = vunpack.i.h.bf16 %v6828_v42  ;;  %v4939_v0 = vunpack.i.l.bf16 %v6828_v42  ;;  %v4943_v33 = vpop.permute.xlu0 %4942  ;;  %2953 = vmatmul.mubr.bf16.gmra.mrb[52].mxu0 %v6824_v58  ;;  %v1849_v31 = vunpack.c.l.b16 %v6824_v58 }
 0x347   : > { %v4945_v1 = vunpack.i.h.bf16 %v4943_v33  ;;  %v4944_v5 = vunpack.i.l.bf16 %v4943_v33  ;;  %4434 = vmatpush3.bf16.msra.mxu0 %v5134_v48 }
 0x348   : > { %v2129_v24 = vpack.c.b16 %v1849_v31, %v1846_v60  ;;  %4435 = vmatprep.subr.bf16.mxu0 %v5136_v19  ;;  %v5148_v60 = vld [vmem:[#allocation10 + $0x178] sm:$0xff]  }
 0x349   : > { %v1740_v10 = vsel %vm1734_vm3, %v4945_v1, %v4940_v49  ;;  %v1739_v16 = vsel %vm1734_vm3, %v4944_v5, %v4939_v0 }
 0x34a   : > { %v1787_v22 = vmax.f32 %v6652_v8, %v1740_v10  ;;  %v1784_v53 = vmax.f32 %v6646_v50, %v1739_v16  ;;  %v4948_v17 = vpop.permute.xlu0 %4947  ;;  %3009 = vmatprep.mubr.bf16.mxu1 %v2129_v24  ;;  %v1761_v8 = vsel %vm1734_vm3, %v4924_v36, %v4934_v38  ;;  %v1762_v50 = vsel %vm1734_vm3, %v4925_v61, %v4935_v15  ;;  %v5145_v36 = vld [vmem:[#allocation10 + $0x130] sm:$0xff]   ;;  %v5147_v16 = vld [vmem:[#allocation10 + $0x198] sm:$0xff]  }
 0x34b   : > { %v4950_v35 = vunpack.i.h.bf16 %v4948_v17  ;;  %v4949_v54 = vunpack.i.l.bf16 %v4948_v17  ;;  %3010 = vmatmul.mubr.bf16.vlgmr.msra.gmra.mrb[48].mxu1 %v6834_v34  ;;  %4436 = vmatpush3.bf16.msra.mxu0 %v5137_v9  ;;  %v1779_v45 = vmax.f32 %v6605_v63, %v1761_v8  ;;  %v1782_v61 = vmax.f32 %v6611_v56, %v1762_v50  ;;  %v5143_v38 = vld [vmem:[#allocation10 + $0x190] sm:$0xff]  }
 0x34c   : > { %v6847_v27 = vpack.c.bf16 %v1787_v22, %v1784_v53  ;;  %4468 = vmatpush3.bf16.msra.mxu1 %v5135_v26  ;;  %4437 = vmatprep.subr.bf16.mxu0 %v5140_v14  ;;  %v1852_v9 = vunpack.c.h.b16 %v6824_v58  ;;  %v5149_v26 = vld [vmem:[#allocation10 + $0x138] sm:$0xff]  }
 0x34d   : > { %v1751_v48 = vsel %vm1734_vm3, %v4949_v54, %v4944_v5  ;;  %v1752_v19 = vsel %vm1734_vm3, %v4950_v35, %v4945_v1  ;;  %4469 = vmatprep.subr.bf16.mxu1 %v5138_v12  ;;  %v5146_v1 = vld [vmem:[#allocation10 + $0x1d8] sm:$0xff]   ;;  %v6873_v10 = vpack.c.bf16 %v1782_v61, %v1779_v45  ;;  %v5152_v12 = vld [vmem:[#allocation10 + $0x240] sm:$0xff]   ;;  %v1764_v22 = vsel %vm1734_vm3, %v4940_v49, %v4950_v35  ;;  %v5155_v45 = vld [vmem:[#allocation10 + $0x1a8] sm:$0xff]  }
 0x34e   : > { %v1783_v44 = vmax.f32 %v6642_v62, %v1751_v48  ;;  %v1786_v33 = vmax.f32 %v6648_v30, %v1752_v19  ;;  %2960 = vmatprep.mubr.bf16.mxu0 %v6847_v27  ;;  %v1763_v53 = vsel %vm1734_vm3, %v4939_v0, %v4949_v54  ;;  %v1788_v0 = vmax.f32 %v6650_v57, %v1764_v22  ;;  %v5151_v48 = vld [vmem:[#allocation10 + $0x1a0] sm:$0xff]  }
 0x34f   : > { %4438 = vmatpush3.bf16.msra.mxu0 %v5141_v20  ;;  %v1785_v35 = vmax.f32 %v6644_v29, %v1763_v53  ;;  %v1851_v19 = vunpack.c.l.b16 %v6873_v10  ;;  %v1848_v29 = vunpack.c.h.b16 %v6834_v34 }
 0x350   : > { %v6866_v15 = vpack.c.bf16 %v1786_v33, %v1783_v44  ;;  %4470 = vmatpush3.bf16.msra.mxu1 %v5139_v7  ;;  %4439 = vmatprep.subr.bf16.mxu0 %v5144_v13  ;;  %v5150_v7 = vld [vmem:[#allocation10 + $0x1e0] sm:$0xff]  }
 0x351   : > { %v4953_v31 = vpop.permute.xlu0 %4952  ;;  %4471 = vmatprep.subr.bf16.mxu1 %v5142_v3  ;;  %v5153_v3 = vld [vmem:[#allocation10 + $0x1e8] sm:$0xff]   ;;  %v6904_v33 = vpack.c.bf16 %v1788_v0, %v1785_v35  ;;  %v5163_v35 = vld [vmem:[#allocation10 + $0x1b8] sm:$0xff]  }
 0x352   : > { %v4955_v62 = vunpack.i.h.bf16 %v4953_v31  ;;  %v4954_v5 = vunpack.i.l.bf16 %v4953_v31  ;;  %v4958_v30 = vpop.permute.xlu1 %4957  ;;  %2961 = vmatmul.mubr.bf16.gmra.mrb[56].mxu0 %v6866_v15  ;;  %v1855_v63 = vunpack.c.l.b16 %v6866_v15  ;;  %v1858_v31 = vunpack.c.h.b16 %v6866_v15  ;;  %v5156_v0 = vld [vmem:[#allocation10 + $0x248] sm:$0xff]  }
 0x353   : > { %v4960_v24 = vunpack.i.h.bf16 %v4958_v30  ;;  %v4959_v56 = vunpack.i.l.bf16 %v4958_v30  ;;  %4440 = vmatpush3.bf16.msra.mxu0 %v5145_v36 }
 0x354   : > { %v6871_v14 = vpack.c.b16 %v1855_v63, %v1852_v9  ;;  %4472 = vmatpush3.bf16.msra.mxu1 %v5143_v38  ;;  %4441 = vmatprep.subr.bf16.mxu0 %v5148_v60  ;;  %v2131_v60 = vpack.c.b16 %v1851_v19, %v1848_v29  ;;  %v5160_v29 = vld [vmem:[#allocation10 + $0x250] sm:$0xff]  }
 0x355   : > { %v1741_v17 = vsel %vm1734_vm3, %v4959_v56, %v4954_v5  ;;  %v1742_v20 = vsel %vm1734_vm3, %v4960_v24, %v4955_v62  ;;  %4473 = vmatprep.subr.bf16.mxu1 %v5146_v1 }
 0x356   : > { %v1790_v13 = vmax.f32 %v6685_v32, %v1741_v17  ;;  %v1793_v8 = vmax.f32 %v6691_v23, %v1742_v20  ;;  %v4963_v50 = vpop.permute.xlu1 %4962  ;;  %3017 = vmatprep.mubr.bf16.mxu1 %v6871_v14 }
 0x357   : > { %v4965_v49 = vunpack.i.h.bf16 %v4963_v50  ;;  %v4964_v42 = vunpack.i.l.bf16 %v4963_v50  ;;  %3018 = vmatmul.mubr.bf16.gmra.mrb[52].mxu1 %v6873_v10  ;;  %4442 = vmatpush3.bf16.msra.mxu0 %v5149_v26  ;;  %v1850_v26 = vunpack.c.l.b16 %v6811_v18 }
 0x358   : > { %v6893_v54 = vpack.c.bf16 %v1793_v8, %v1790_v13  ;;  %4474 = vmatpush3.bf16.msra.mxu1 %v5147_v16  ;;  %4507 = vmatprep.subr.bf16.mxu0 %v5152_v12  ;;  %v5159_v16 = vld [vmem:[#allocation10 + $0x1b0] sm:$0xff]  }
 0x359   : > { %v1753_v32 = vsel %vm1734_vm3, %v4964_v42, %v4959_v56  ;;  %v1754_v23 = vsel %vm1734_vm3, %v4965_v49, %v4960_v24  ;;  %4475 = vmatprep.subr.bf16.mxu1 %v5150_v7  ;;  %v1765_v61 = vsel %vm1734_vm3, %v4954_v5, %v4964_v42  ;;  %v1847_v24 = vunpack.c.h.b16 %v6788_v47  ;;  %v5161_v47 = vld [vmem:[#allocation10 + $0x1f8] sm:$0xff]  }
 0x35a   : > { %v1789_v44 = vmax.f32 %v6681_v21, %v1753_v32  ;;  %v1792_v57 = vmax.f32 %v6687_v11, %v1754_v23  ;;  %2968 = vmatprep.mubr.bf16.mxu0 %v6893_v54  ;;  %v5157_v21 = vld [vmem:[#allocation10 + $0x1f0] sm:$0xff]   ;;  %v1766_v11 = vsel %vm1734_vm3, %v4955_v62, %v4965_v49  ;;  %v1857_v62 = vunpack.c.l.b16 %v6904_v33 }
 0x35b   : > { %v1791_v12 = vmax.f32 %v6683_v59, %v1765_v61  ;;  %v1794_v22 = vmax.f32 %v6689_v25, %v1766_v11  ;;  %v5154_v59 = vld [vmem:[#allocation10 + $0x200] sm:$0xff]   ;;  %v1854_v25 = vunpack.c.h.b16 %v6873_v10  ;;  %v2130_v42 = vpack.c.b16 %v1850_v26, %v1847_v24 }
 0x35c   : > { %v6906_v36 = vpack.c.bf16 %v1792_v57, %v1789_v44  ;;  %4476 = vmatpush3.bf16.msra.mxu1 %v5151_v48  ;;  %v5158_v44 = vld [vmem:[#allocation10 + $0x208] sm:$0xff]   ;;  %v1860_v11 = vunpack.c.h.b16 %v6904_v33 }
 0x35d   : > { %v4968_v38 = vpop.permute.xlu0 %4967  ;;  %4477 = vmatprep.subr.bf16.mxu1 %v5153_v3  ;;  %v6937_v48 = vpack.c.bf16 %v1794_v22, %v1791_v12  ;;  %v1859_v22 = vunpack.c.h.b16 %v6847_v27 }
 0x35e   : > { %v4970_v1 = vunpack.i.h.bf16 %v4968_v38  ;;  %v4969_v34 = vunpack.i.l.bf16 %v4968_v38  ;;  %v6913_v30 = vpop.permute.xlu1 %4972  ;;  %2969 = vmatmul.mubr.bf16.gmra.mrb[60].mxu0 %v6906_v36  ;;  %v1861_v9 = vunpack.c.l.b16 %v6906_v36  ;;  %v1864_v19 = vunpack.c.h.b16 %v6906_v36 }
 0x35f   : > { %v4975_v63 = vunpack.i.h.bf16 %v6913_v30  ;;  %v4974_v5 = vunpack.i.l.bf16 %v6913_v30  ;;  %3074 = vmatprep.mubr.bf16.mxu0 %v2131_v60  ;;  %v1863_v60 = vunpack.c.l.b16 %v6937_v48 }
 0x360   : > { %v6920_v56 = vpack.c.b16 %v1861_v9, %v1858_v31  ;;  %4478 = vmatpush3.bf16.msra.mxu1 %v5155_v45  ;;  %v1856_v45 = vunpack.c.l.b16 %v6847_v27  ;;  %v1853_v31 = vunpack.c.h.b16 %v6811_v18 }
 0x361   : > { %v1755_v53 = vsel %vm1734_vm3, %v4969_v34, %v4974_v5  ;;  %v1756_v17 = vsel %vm1734_vm3, %v4970_v1, %v4975_v63  ;;  %v4978_v20 = vpop.permute.xlu0 %4977  ;;  %4479 = vmatprep.subr.bf16.mxu1 %v5157_v21  ;;  %v5162_v21 = vld [vmem:[#allocation10 + $0x210] sm:$0xff]   ;;  %v6967_v9 = vpack.c.b16 %v1863_v60, %v1860_v11  ;;  %v5186_v11 = vld [vmem:[#allocation10 + $0x300] sm:$0xff]  }
 0x362   : > { %v1795_v7 = vmax.f32 %v6720_v55, %v1755_v53  ;;  %v1798_v13 = vmax.f32 %v6726_v41, %v1756_v17  ;;  %v4980_v8 = vunpack.i.h.bf16 %v4978_v20  ;;  %v4979_v50 = vunpack.i.l.bf16 %v4978_v20  ;;  %3025 = vmatprep.mubr.bf16.mxu1 %v6920_v56  ;;  %v5166_v41 = vld [vmem:[#allocation10 + $0x2c0] sm:$0xff]  }
 0x363   : > { %3026 = vmatmul.mubr.bf16.gmra.mrb[56].mxu1 %v6904_v33  ;;  %v6939_v55 = vpack.c.b16 %v1857_v62, %v1854_v25  ;;  %v5167_v62 = vld [vmem:[#allocation10 + $0x280] sm:$0xff]   ;;  %v1866_v17 = vunpack.c.h.b16 %v6937_v48  ;;  %v5178_v25 = vld [vmem:[#allocation10 + $0x2d8] sm:$0xff]  }
 0x364   : > { %v6935_v49 = vpack.c.bf16 %v1798_v13, %v1795_v7  ;;  %4480 = vmatpush3.bf16.msra.mxu1 %v5159_v16  ;;  %v1767_v32 = vsel %vm1734_vm3, %v4979_v50, %v4969_v34  ;;  %v1768_v23 = vsel %vm1734_vm3, %v4980_v8, %v4970_v1  ;;  %v6959_v1 = vpack.c.b16 %v1856_v45, %v1853_v31  ;;  %v5168_v16 = vld [vmem:[#allocation10 + $0x260] sm:$0xff]   ;;  %v5174_v13 = vld [vmem:[#allocation10 + $0x2d0] sm:$0xff]  }
 0x365   : > { %4481 = vmatprep.subr.bf16.mxu1 %v5161_v47  ;;  %v1797_v61 = vmax.f32 %v6722_v51, %v1767_v32  ;;  %v1800_v38 = vmax.f32 %v6728_v4, %v1768_v23  ;;  %v5164_v51 = vld [vmem:[#allocation10 + $0x258] sm:$0xff]   ;;  %v1744_v4 = vsel %vm1734_vm3, %v4975_v63, %v4980_v8  ;;  %v1743_v34 = vsel %vm1734_vm3, %v4974_v5, %v4979_v50  ;;  %v5170_v5 = vld [vmem:[#allocation10 + $0x2c8] sm:$0xff]   ;;  %v5169_v53 = vld [vmem:[#allocation10 + $0x220] sm:$0xff]  }
 0x366   : > { %3075 = vmatmul.mubr.bf16.vlgmr.msra.gmra.mrb[64].mxu0 %v2130_v42  ;;  %v1867_v3 = vunpack.c.l.b16 %v6935_v49  ;;  %v1799_v24 = vmax.f32 %v6730_v37, %v1744_v4  ;;  %v1796_v26 = vmax.f32 %v6724_v2, %v1743_v34  ;;  %v1862_v63 = vunpack.c.l.b16 %v6893_v54  ;;  %v5171_v37 = vld [vmem:[#allocation10 + $0x288] sm:$0xff]   ;;  %v5175_v8 = vld [vmem:[#allocation10 + $0x290] sm:$0xff]   ;;  %v5180_v32 = vld [vmem:[#allocation10 + $0x278] sm:$0xff]  }
 0x367   : > { %4508 = vmatpush3.bf16.msra.mxu0 %v5154_v59  ;;  %3082 = vmatprep.mubr.bf16.mxu0 %v6939_v55  ;;  %v6965_v30 = vpack.c.bf16 %v1800_v38, %v1797_v61  ;;  %v5172_v47 = vld [vmem:[#allocation10 + $0x268] sm:$0xff]   ;;  %v5176_v59 = vld [vmem:[#allocation10 + $0x270] sm:$0xff]   ;;  %v1865_v42 = vunpack.c.h.b16 %v6893_v54  ;;  %v5182_v23 = vld [vmem:[#allocation10 + $0x2e0] sm:$0xff]  }
 0x368   : > { %4509 = vmatprep.subr.bf16.mxu0 %v5156_v0  ;;  %v6948_v57 = vpack.c.b16 %v1867_v3, %v1864_v19  ;;  %4482 = vmatpush3.bf16.msra.mxu1 %v5163_v35  ;;  %v6978_v20 = vpack.c.bf16 %v1799_v24, %v1796_v26  ;;  %v6981_v2 = vpack.c.b16 %v1862_v63, %v1859_v22  ;;  %v5177_v0 = vld [vmem:[#allocation10 + $0x230] sm:$0xff]   ;;  %v5184_v45 = vld [vmem:[#allocation10 + $0x340] sm:$0xff]   ;;  %v5185_v61 = vld [vmem:[#allocation10 + $0x2e8] sm:$0xff]  }
 0x369   : > { %4547 = vmatprep.subr.bf16.mxu1 %v5166_v41  ;;  %v1869_v12 = vunpack.c.l.b16 %v6965_v30  ;;  %v5179_v41 = vld [vmem:[#allocation10 + $0x298] sm:$0xff]   ;;  %v6994_v19 = vpop.permute.xlu1 %4982  ;;  %v5189_v4 = vld [vmem:[#allocation10 + $0x2f0] sm:$0xff]   ;;  %v5190_v24 = vld [vmem:[#allocation10 + $0x308] sm:$0xff]  }
 0x36a   : > { %3033 = vmatprep.mubr.bf16.mxu1 %v6948_v57  ;;  %v1868_v50 = vunpack.c.l.b16 %v6978_v20  ;;  %v6996_v3 = vpop.permute.xlu0 %4987  ;;  %v4985_v38 = vunpack.i.h.bf16 %v6994_v19  ;;  %v4984_v60 = vunpack.i.l.bf16 %v6994_v19  ;;  %v5191_v26 = vld [vmem:[#allocation10 + $0x2b0] sm:$0xff]  }
 0x36b   : > { %4510 = vmatpush3.bf16.msra.mxu0 %v5158_v44  ;;  %3034 = vmatmul.mubr.bf16.gmra.mrb[60].mxu1 %v6937_v48  ;;  %v6983_v7 = vpack.c.b16 %v1869_v12, %v1866_v17  ;;  %v5181_v44 = vld [vmem:[#allocation10 + $0x238] sm:$0xff]   ;;  %v4990_v31 = vunpack.i.h.bf16 %v6996_v3  ;;  %v5194_v12 = vld [vmem:[#allocation10 + $0x310] sm:$0xff]  }
 0x36c   : > { %3139 = vmatprep.mubr.bf16.mxu1 %v6811_v18  ;;  %4511 = vmatprep.subr.bf16.mxu0 %v5160_v29  ;;  %v5165_v18 = vld [vmem:[#allocation10 + $0x218] sm:$0xff]   ;;  %v6991_v35 = vpack.c.b16 %v1868_v50, %v1865_v42  ;;  %v5183_v29 = vld [vmem:[#allocation10 + $0x2a0] sm:$0xff]   ;;  %v5204_v42 = vld [vmem:[#allocation10 + $0x390] sm:$0xff]  }
 0x36d   : > { %v1758_v34 = vsel %vm1734_vm3, %v4985_v38, %v4990_v31  ;;  %v4993_v22 = vpop.permute.xlu1 %4992  ;;  %v5200_v50 = vld [vmem:[#allocation10 + $0x320] sm:$0xff]   ;;  %v5206_v19 = vld [vmem:[#allocation10 + $0x330] sm:$0xff]  }
 0x36e   : > { %3083 = vmatmul.mubr.bf16.gmra.mrb[68].mxu0 %v6959_v1 }
 0x36f   : > { %4512 = vmatpush3.bf16.msra.mxu0 %v5162_v21  ;;  %3090 = vmatprep.mubr.bf16.mxu0 %v6967_v9  ;;  %v4989_v21 = vunpack.i.l.bf16 %v6996_v3  ;;  %v5209_v3 = vld [vmem:[#allocation10 + $0x338] sm:$0xff]  }
 0x370   : > { %4513 = vmatprep.subr.bf16.mxu0 %v5164_v51  ;;  %v5188_v51 = vld [vmem:[#allocation10 + $0x348] sm:$0xff]  }
 0x373   : > { %4514 = vmatpush3.bf16.msra.mxu0 %v5165_v18  ;;  %3140 = vmatmul.mubr.bf16.vlgmr.msra.gmra.mrb[64].mxu1 %v6824_v58  ;;  %v5173_v58 = vld [vmem:[#allocation10 + $0x228] sm:$0xff]   ;;  %v1757_v18 = vsel %vm1734_vm3, %v4984_v60, %v4989_v21 }
 0x374   : > { %4548 = vmatpush3.bf16.msra.mxu1 %v5167_v62  ;;  %3147 = vmatprep.mubr.bf16.mxu1 %v6847_v27  ;;  %v1804_v62 = vmax.f32 %v6763_v43, %v1758_v34  ;;  %v1801_v63 = vmax.f32 %v6757_v39, %v1757_v18  ;;  %v4995_v39 = vunpack.i.h.bf16 %v4993_v22  ;;  %v4994_v43 = vunpack.i.l.bf16 %v4993_v22  ;;  %v5216_v22 = vld [vmem:[#allocation13 + $0x48] sm:$0xff]  }
 0x375   : > { %4515 = vmatprep.subr.bf16.mxu0 %v5168_v16  ;;  %4549 = vmatprep.subr.bf16.mxu1 %v5170_v5  ;;  %v5192_v16 = vld [vmem:[#allocation10 + $0x350] sm:$0xff]   ;;  %v5193_v5 = vld [vmem:[#allocation10 + $0x2f8] sm:$0xff]  }
 0x376   : > { %3091 = vmatmul.mubr.bf16.gmra.mrb[72].mxu0 %v6981_v2  ;;  %v7019_v17 = vpack.c.bf16 %v1804_v62, %v1801_v63 }
 0x377   : > { %4516 = vmatpush3.bf16.msra.mxu0 %v5169_v53  ;;  %3098 = vmatprep.mubr.bf16.mxu0 %v6983_v7  ;;  %v5198_v53 = vld [vmem:[#allocation10 + $0x380] sm:$0xff]  }
 0x378   : > { %4550 = vmatpush3.bf16.msra.mxu1 %v5171_v37  ;;  %4517 = vmatprep.subr.bf16.mxu0 %v5172_v47  ;;  %v5197_v37 = vld [vmem:[#allocation10 + $0x318] sm:$0xff]   ;;  %v5199_v47 = vld [vmem:[#allocation10 + $0x360] sm:$0xff]  }
 0x379   : > { %4551 = vmatprep.subr.bf16.mxu1 %v5174_v13  ;;  %v1873_v13 = vunpack.c.l.b16 %v7019_v17 }
 0x37b   : > { %4518 = vmatpush3.bf16.msra.mxu0 %v5173_v58  ;;  %3148 = vmatmul.mubr.bf16.gmra.mrb[68].mxu1 %v6866_v15  ;;  %v1769_v58 = vsel %vm1734_vm3, %v4994_v43, %v4984_v60 }
 0x37c   : > { %4552 = vmatpush3.bf16.msra.mxu1 %v5175_v8  ;;  %3155 = vmatprep.mubr.bf16.mxu1 %v6893_v54  ;;  %v1770_v8 = vsel %vm1734_vm3, %v4995_v39, %v4985_v38 }
 0x37d   : > { %4519 = vmatprep.subr.bf16.mxu0 %v5176_v59  ;;  %4553 = vmatprep.subr.bf16.mxu1 %v5178_v25  ;;  %v5202_v59 = vld [vmem:[#allocation10 + $0x368] sm:$0xff]  }
 0x37e   : > { %3099 = vmatmul.mubr.bf16.gmra.mrb[76].mxu0 %v6991_v35 }
 0x37f   : > { %4520 = vmatpush3.bf16.msra.mxu0 %v5177_v0  ;;  %3204 = vmatprep.mubr.bf16.mxu0 %v6871_v14  ;;  %v5187_v14 = vld [vmem:[#allocation10 + $0x2a8] sm:$0xff]   ;;  %v1803_v0 = vmax.f32 %v6759_v40, %v1769_v58  ;;  %v1746_v40 = vsel %vm1734_vm3, %v4990_v31, %v4995_v39 }
 0x380   : > { %4554 = vmatpush3.bf16.msra.mxu1 %v5179_v41  ;;  %4521 = vmatprep.subr.bf16.mxu0 %v5180_v32  ;;  %v1806_v41 = vmax.f32 %v6765_v46, %v1770_v8  ;;  %v5205_v32 = vld [vmem:[#allocation10 + $0x370] sm:$0xff]  }
 0x381   : > { %4555 = vmatprep.subr.bf16.mxu1 %v5182_v23  ;;  %v5207_v23 = vld [vmem:[#allocation10 + $0x398] sm:$0xff]  }
 0x382   : > { %v1824_v46 = vpack.c.bf16 %v1806_v41, %v1803_v0 }
 0x383   : > { %4522 = vmatpush3.bf16.msra.mxu0 %v5181_v44  ;;  %3156 = vmatmul.mubr.bf16.gmra.mrb[72].mxu1 %v6906_v36  ;;  %v5208_v44 = vld [vmem:[#allocation10 + $0x378] sm:$0xff]  }
 0x384   : > { %4556 = vmatpush3.bf16.msra.mxu1 %v5183_v29  ;;  %3163 = vmatprep.mubr.bf16.mxu1 %v6978_v20  ;;  %v1875_v52 = vunpack.c.l.b16 %v1824_v46 }
 0x385   : > { %4587 = vmatprep.subr.bf16.mxu0 %v5184_v45  ;;  %4557 = vmatprep.subr.bf16.mxu1 %v5185_v61  ;;  %v1805_v45 = vmax.f32 %v6767_v28, %v1746_v40  ;;  %v5210_v61 = vld [vmem:[#allocation10 + $0x3a0] sm:$0xff]   ;;  %v5212_v28 = vld [vmem:[#allocation10 + $0x3b0] sm:$0xff]  }
 0x386   : > { %3205 = vmatmul.mubr.bf16.vlgmr.msra.gmra.mrb[80].mxu0 %v6873_v10  ;;  %v5195_v10 = vld [vmem:[#allocation10 + $0x2b8] sm:$0xff]  }
 0x387   : > { %4588 = vmatpush3.bf16.msra.mxu0 %v5186_v11  ;;  %3212 = vmatprep.mubr.bf16.mxu0 %v6920_v56  ;;  %v5196_v56 = vld [vmem:[#allocation10 + $0x358] sm:$0xff]  }
 0x388   : > { %4558 = vmatpush3.bf16.msra.mxu1 %v5187_v14  ;;  %4589 = vmatprep.subr.bf16.mxu0 %v5188_v51 }
 0x389   : > { %4559 = vmatprep.subr.bf16.mxu1 %v5189_v4 }
 0x38b   : > { %4590 = vmatpush3.bf16.msra.mxu0 %v5190_v24  ;;  %3164 = vmatmul.mubr.bf16.gmra.mrb[76].mxu1 %v6935_v49  ;;  %v5214_v24 = vld [vmem:[#allocation13 + $0x40] sm:$0xff]  }
 0x38c   : > { %4560 = vmatpush3.bf16.msra.mxu1 %v5191_v26  ;;  %3269 = vmatprep.mubr.bf16.mxu1 %v6939_v55  ;;  %v5201_v55 = vld [vmem:[#allocation10 + $0x388] sm:$0xff]  }
 0x38d   : > { %4591 = vmatprep.subr.bf16.mxu0 %v5192_v16  ;;  %4561 = vmatprep.subr.bf16.mxu1 %v5193_v5  ;;  %v5215_v26 = vld [vmem:[#allocation13] sm:$0xff]   ;;  %v5614_v5 = vmov 0.0  }
 0x38e   : > { %3213 = vmatmul.mubr.bf16.gmra.mrb[84].mxu0 %v6904_v33 }
 0x38f   : > { %4592 = vmatpush3.bf16.msra.mxu0 %v5194_v12  ;;  %3220 = vmatprep.mubr.bf16.mxu0 %v6948_v57  ;;  %v1870_v57 = vunpack.c.h.b16 %v6935_v49 }
 0x390   : > { %4562 = vmatpush3.bf16.msra.mxu1 %v5195_v10  ;;  %4593 = vmatprep.subr.bf16.mxu0 %v5196_v56  ;;  %v5217_v10 = vld [vmem:[#allocation13 + $0x8] sm:$0xff]  }
 0x391   : > { %4675 = vmatprep.subr.bf16.mxu1 %v5198_v53  ;;  %v2153_v25 = vpack.c.b16 %v1873_v13, %v1870_v57  ;;  %v5220_v57 = vld [vmem:[#allocation13 + $0x58] sm:$0xff]  }
 0x393   : > { %4594 = vmatpush3.bf16.msra.mxu0 %v5197_v37  ;;  %3270 = vmatmul.mubr.bf16.vlgmr.msra.gmra.mrb[80].mxu1 %v6959_v1  ;;  %v5203_v1 = vld [vmem:[#allocation10 + $0x328] sm:$0xff]   ;;  %v5218_v37 = vld [vmem:[#allocation13 + $0x50] sm:$0xff]  }
 0x394   : > { %4676 = vmatpush3.bf16.msra.mxu1 %v5198_v53  ;;  %3277 = vmatprep.mubr.bf16.mxu1 %v6967_v9  ;;  %v1745_v9 = vsel %vm1734_vm3, %v4989_v21, %v4994_v43  ;;  %v5213_v21 = vld [vmem:[#allocation10 + $0x3b8] sm:$0xff]  }
 0x395   : > { %4595 = vmatprep.subr.bf16.mxu0 %v5199_v47  ;;  %4677 = vmatprep.subr.bf16.mxu1 %v5201_v55  ;;  %v1802_v29 = vmax.f32 %v6761_v6, %v1745_v9  ;;  %v5219_v47 = vld [vmem:[#allocation13 + $0x10] sm:$0xff]   ;;  %v5223_v9 = vld [vmem:[#allocation13 + $0x20] sm:$0xff]  }
 0x396   : > { %3221 = vmatmul.mubr.bf16.gmra.mrb[88].mxu0 %v6937_v48 }
 0x397   : > { %4596 = vmatpush3.bf16.msra.mxu0 %v5200_v50  ;;  %3228 = vmatprep.mubr.bf16.mxu0 %v2153_v25  ;;  %v1823_v38 = vpack.c.bf16 %v1805_v45, %v1802_v29  ;;  %v5224_v45 = vld [vmem:[#allocation13 + $0x68] sm:$0xff]  }
 0x398   : > { %4678 = vmatpush3.bf16.msra.mxu1 %v5201_v55  ;;  %4597 = vmatprep.subr.bf16.mxu0 %v5202_v59  ;;  %v5221_v59 = vld [vmem:[#allocation13 + $0x18] sm:$0xff]  }
 0x399   : > { %4679 = vmatprep.subr.bf16.mxu1 %v5204_v42  ;;  %v1874_v60 = vunpack.c.l.b16 %v1823_v38 }
 0x39b   : > { %4598 = vmatpush3.bf16.msra.mxu0 %v5203_v1  ;;  %3278 = vmatmul.mubr.bf16.gmra.mrb[84].mxu1 %v6981_v2  ;;  %v1872_v2 = vunpack.c.h.b16 %v6965_v30 }
 0x39c   : > { %4680 = vmatpush3.bf16.msra.mxu1 %v5204_v42  ;;  %3285 = vmatprep.mubr.bf16.mxu1 %v6983_v7  ;;  %v5211_v7 = vld [vmem:[#allocation10 + $0x3a8] sm:$0xff]  }
 0x39d   : > { %4599 = vmatprep.subr.bf16.mxu0 %v5205_v32  ;;  %4681 = vmatprep.subr.bf16.mxu1 %v5207_v23  ;;  %v2155_v6 = vpack.c.b16 %v1875_v52, %v1872_v2 }
 0x39e   : > { %3229 = vmatmul.mubr.bf16.gmra.mrb[92].mxu0 %v6965_v30 }
 0x39f   : > { %4600 = vmatpush3.bf16.msra.mxu0 %v5206_v19  ;;  %3334 = vmatprep.mubr.bf16.mxu0 %v6847_v27  ;;  %v1871_v27 = vunpack.c.h.b16 %v6978_v20 }
 0x3a0   : > { %4682 = vmatpush3.bf16.msra.mxu1 %v5207_v23  ;;  %4601 = vmatprep.subr.bf16.mxu0 %v5208_v44  ;;  %v5222_v23 = vld [vmem:[#allocation13 + $0x60] sm:$0xff]  }
 0x3a1   : > { %4683 = vmatprep.subr.bf16.mxu1 %v5210_v61  ;;  %v2154_v31 = vpack.c.b16 %v1874_v60, %v1871_v27 }
 0x3a3   : > { %4602 = vmatpush3.bf16.msra.mxu0 %v5209_v3  ;;  %3286 = vmatmul.mubr.bf16.gmra.mrb[88].mxu1 %v6991_v35 }
 0x3a4   : > { %4684 = vmatpush3.bf16.msra.mxu1 %v5210_v61  ;;  %3293 = vmatprep.mubr.bf16.mxu1 %v2155_v6  ;;  %v5225_v61 = vld [vmem:[#allocation13 + $0x28] sm:$0xff]  }
 0x3a5   : > { %4685 = vmatprep.subr.bf16.mxu1 %v5211_v7  ;;  %4699 = vmatprep.subr.bf16.mxu0 %v5614_v5 }
 0x3a6   : > { %3335 = vmatmul.mubr.bf16.vlgmr.msra.gmra.mrb[96].mxu0 %v6866_v15 }
 0x3a7   : > { %3342 = vmatprep.mubr.bf16.mxu0 %v6893_v54  ;;  %4700 = vmatpush3.bf16.msra.mxu0 %v5214_v24 }
 0x3a8   : > { %4686 = vmatpush3.bf16.msra.mxu1 %v5211_v7  ;;  %4701 = vmatprep.subr.bf16.mxu0 %v5614_v5 }
 0x3a9   : > { %4687 = vmatprep.subr.bf16.mxu1 %v5212_v28 }
 0x3ab   : > { %3294 = vmatmul.mubr.bf16.gmra.mrb[92].mxu1 %v2154_v31  ;;  %4702 = vmatpush3.bf16.msra.mxu0 %v5216_v22 }
 0x3ac   : > { %4688 = vmatpush3.bf16.msra.mxu1 %v5212_v28  ;;  %4691 = vmatprep.mubr.bf16.mxu1 %v6904_v33 }
 0x3ad   : > { %4689 = vmatprep.subr.bf16.mxu1 %v5213_v21  ;;  %4703 = vmatprep.subr.bf16.mxu0 %v5614_v5 }
 0x3ae   : > { %3343 = vmatmul.mubr.bf16.gmra.mrb[100].mxu0 %v6906_v36 }
 0x3af   : > { %3350 = vmatprep.mubr.bf16.mxu0 %v6978_v20  ;;  %4704 = vmatpush3.bf16.msra.mxu0 %v5218_v37 }
 0x3b0   : > { %4690 = vmatpush3.bf16.msra.mxu1 %v5213_v21  ;;  %4705 = vmatprep.subr.bf16.mxu0 %v5614_v5 }
 0x3b1   : > { %4719 = vmatprep.subr.bf16.mxu1 %v5614_v5 }
 0x3b3   : > { %4692 = vmatmul.mubr.bf16.vlgmr.msra.gmra.mrb[96].mxu1 %v6937_v48  ;;  %v7060_v48 = vld [vmem:[#allocation11] ss:$0 sm:$0xff]  ;;  %4706 = vmatpush3.bf16.msra.mxu0 %v5220_v57 }
 0x3b4   : > { %4695 = vmatprep.mubr.bf16.mxu1 %v6965_v30  ;;  %4720 = vmatpush3.bf16.msra.mxu1 %v5215_v26 }
 0x3b5   : > { %4721 = vmatprep.subr.bf16.mxu1 %v5614_v5  ;;  %4707 = vmatprep.subr.bf16.mxu0 %v5614_v5 }
 0x3b6   : > { %3351 = vmatmul.mubr.bf16.gmra.mrb[104].mxu0 %v6935_v49 }
 0x3b7   : > { %3358 = vmatprep.mubr.bf16.mxu0 %v1823_v38  ;;  %4708 = vmatpush3.bf16.msra.mxu0 %v5222_v23 }
 0x3b8   : > { %4722 = vmatpush3.bf16.msra.mxu1 %v5217_v10  ;;  %4709 = vmatprep.subr.bf16.mxu0 %v5614_v5 }
 0x3b9   : > { %4723 = vmatprep.subr.bf16.mxu1 %v5614_v5 }
 0x3bb   : > { %4696 = vmatmul.mubr.bf16.gmra.mrb[100].mxu1 %v1824_v46  ;;  %4710 = vmatpush3.bf16.msra.mxu0 %v5224_v45 }
 0x3bc   : > { %4724 = vmatpush3.bf16.msra.mxu1 %v5219_v47  ;;  %4711 = vmatprep.subr.bf16.mxu0 %v5614_v5 }
 0x3bd   : > { %4725 = vmatprep.subr.bf16.mxu1 %v5614_v5  ;;  %4735 = vmatprep.mubr.msk.bf16.mxu1 %vm5615_vm4, %v5614_v5 }
 0x3be   : > { %3359 = vmatmul.mubr.bf16.gmra.mrb[108].mxu0 %v7019_v17 }
 0x3bf   : > { %4715 = vmatprep.mubr.msk.bf16.mxu0 %vm5615_vm4, %v5614_v5 }
 0x3c0   : > { %4726 = vmatpush3.bf16.msra.mxu1 %v5221_v59 }
 0x3c1   : > { %4727 = vmatprep.subr.bf16.mxu1 %v5614_v5 }
 0x3c4   : > { %4728 = vmatpush3.bf16.msra.mxu1 %v5223_v9 }
 0x3c5   : > { %4729 = vmatprep.subr.bf16.mxu1 %v5614_v5 }
 0x3c8   : > { %4730 = vmatpush3.bf16.msra.mxu1 %v5225_v61 }
 0x3c9   : > { %4731 = vmatprep.subr.bf16.mxu1 %v5614_v5 }
 0x40d   : > { %v4363_v15 = vpop.f32.mrb[48].mxu0 }
 0x40e   : > { %v4364_v54 = vpop.f32.mrb[49].mxu0 }
 0x40f   : > { %v4365_v35 = vadd.f32 %v4364_v54, %v4363_v15  ;;  %v4366_v33 = vpop.f32.mrb[50].mxu0 }
 0x410   : > { %v4367_v11 = vpop.f32.mrb[51].mxu0 }
 0x411   : > { %v4368_v14 = vadd.f32 %v4367_v11, %v4366_v33  ;;  %v2947_v62 = vadd.f32 %v4365_v35, %v7060_v48 }
 0x413   : > { %v2950_v56 = vadd.f32 %v4368_v14, %v7060_v48 }
 0x419   : > { %v4369_v36 = vpop.f32.mrb[52].mxu0 }
 0x41a   : > { %v4370_v51 = vpop.f32.mrb[53].mxu0 }
 0x41b   : > { %v4371_v20 = vadd.f32 %v4370_v51, %v4369_v36  ;;  %v4372_v4 = vpop.f32.mrb[54].mxu0 }
 0x41c   : > { %v4373_v34 = vpop.f32.mrb[55].mxu0 }
 0x41d   : > { %v4374_v30 = vadd.f32 %v4373_v34, %v4372_v4  ;;  %v2955_v0 = vadd.f32 %v4371_v20, %v7060_v48 }
 0x41e   : > { %v4403_v18 = vpop.f32.mrb[48].mxu1 }
 0x41f   : > { %v4404_v49 = vpop.f32.mrb[49].mxu1  ;;  %v2958_v40 = vadd.f32 %v4374_v30, %v7060_v48 }
 0x420   : > { %v4405_v63 = vadd.f32 %v4404_v49, %v4403_v18  ;;  %v4406_v16 = vpop.f32.mrb[50].mxu1 }
 0x421   : > { %v4407_v12 = vpop.f32.mrb[51].mxu1 }
 0x422   : > { %v7066_v53 = vadd.f32 %v4405_v63, %v2947_v62  ;;  %v4408_v17 = vadd.f32 %v4407_v12, %v4406_v16 }
 0x424   : > { %v7070_v39 = vadd.f32 %v4408_v17, %v2950_v56 }
 0x425   : > { %v4375_v43 = vpop.f32.mrb[56].mxu0 }
 0x426   : > { %v4376_v55 = vpop.f32.mrb[57].mxu0 }
 0x427   : > { %v4377_v13 = vadd.f32 %v4376_v55, %v4375_v43  ;;  %v4378_v58 = vpop.f32.mrb[58].mxu0 }
 0x428   : > { %v4379_v8 = vpop.f32.mrb[59].mxu0 }
 0x429   : > { %v4380_v50 = vadd.f32 %v4379_v8, %v4378_v58  ;;  %v2963_v60 = vadd.f32 %v4377_v13, %v7060_v48 }
 0x42a   : > { %v4409_v25 = vpop.f32.mrb[52].mxu1 }
 0x42b   : > { %v4410_v42 = vpop.f32.mrb[53].mxu1  ;;  %v2966_v54 = vadd.f32 %v4380_v50, %v7060_v48 }
 0x42c   : > { %v4411_v41 = vadd.f32 %v4410_v42, %v4409_v25  ;;  %v4412_v1 = vpop.f32.mrb[54].mxu1 }
 0x42d   : > { %v4413_v32 = vpop.f32.mrb[55].mxu1 }
 0x42e   : > { %v3020_v46 = vadd.f32 %v4411_v41, %v2955_v0  ;;  %v4414_v19 = vadd.f32 %v4413_v32, %v4412_v1 }
 0x430   : > { %v3023_v44 = vadd.f32 %v4414_v19, %v2958_v40 }
 0x431   : > { %v4381_v29 = vpop.f32.mrb[60].mxu0 }
 0x432   : > { %v4382_v52 = vpop.f32.mrb[61].mxu0 }
 0x433   : > { %v4383_v3 = vadd.f32 %v4382_v52, %v4381_v29  ;;  %v4384_v2 = vpop.f32.mrb[62].mxu0 }
 0x434   : > { %v4385_v7 = vpop.f32.mrb[63].mxu0 }
 0x435   : > { %v4386_v38 = vadd.f32 %v4385_v7, %v4384_v2  ;;  %v2971_v24 = vadd.f32 %v4383_v3, %v7060_v48 }
 0x436   : > { %v4415_v6 = vpop.f32.mrb[56].mxu1 }
 0x437   : > { %v4416_v28 = vpop.f32.mrb[57].mxu1  ;;  %v2974_v12 = vadd.f32 %v4386_v38, %v7060_v48 }
 0x438   : > { %v4417_v27 = vadd.f32 %v4416_v28, %v4415_v6  ;;  %v4418_v31 = vpop.f32.mrb[58].mxu1 }
 0x439   : > { %v4419_v21 = vpop.f32.mrb[59].mxu1  ;;  %v4443_v15 = vpop.f32.mrb[64].mxu0 }
 0x43a   : > { %v3028_v35 = vadd.f32 %v4417_v27, %v2963_v60  ;;  %v4420_v33 = vadd.f32 %v4419_v21, %v4418_v31  ;;  %v4444_v11 = vpop.f32.mrb[65].mxu0 }
 0x43b   : > { %v4445_v14 = vadd.f32 %v4444_v11, %v4443_v15  ;;  %v4446_v36 = vpop.f32.mrb[66].mxu0 }
 0x43c   : > { %v3031_v51 = vadd.f32 %v4420_v33, %v2966_v54  ;;  %v4447_v20 = vpop.f32.mrb[67].mxu0 }
 0x43d   : > { %v3077_v4 = vadd.f32 %v4445_v14, %v7066_v53  ;;  %v4448_v34 = vadd.f32 %v4447_v20, %v4446_v36 }
 0x43e   : > { %v4421_v30 = vpop.f32.mrb[60].mxu1 }
 0x43f   : > { %v3080_v18 = vadd.f32 %v4448_v34, %v7070_v39  ;;  %v4422_v49 = vpop.f32.mrb[61].mxu1 }
 0x440   : > { %v4423_v26 = vadd.f32 %v4422_v49, %v4421_v30  ;;  %v4424_v62 = vpop.f32.mrb[62].mxu1 }
 0x441   : > { %v4425_v63 = vpop.f32.mrb[63].mxu1  ;;  %v4449_v16 = vpop.f32.mrb[68].mxu0 }
 0x442   : > { %v3036_v22 = vadd.f32 %v4423_v26, %v2971_v24  ;;  %v4426_v10 = vadd.f32 %v4425_v63, %v4424_v62  ;;  %v4450_v56 = vpop.f32.mrb[69].mxu0 }
 0x443   : > { %v4451_v17 = vadd.f32 %v4450_v56, %v4449_v16  ;;  %v4452_v43 = vpop.f32.mrb[70].mxu0 }
 0x444   : > { %v3039_v37 = vadd.f32 %v4426_v10, %v2974_v12  ;;  %v4453_v53 = vpop.f32.mrb[71].mxu0 }
 0x445   : > { %v3085_v47 = vadd.f32 %v4451_v17, %v3020_v46  ;;  %v4454_v55 = vadd.f32 %v4453_v53, %v4452_v43 }
 0x446   : > { %v4483_v13 = vpop.f32.mrb[64].mxu1 }
 0x447   : > { %v3088_v39 = vadd.f32 %v4454_v55, %v3023_v44  ;;  %v4484_v58 = vpop.f32.mrb[65].mxu1 }
 0x448   : > { %v4485_v8 = vadd.f32 %v4484_v58, %v4483_v13  ;;  %v4486_v50 = vpop.f32.mrb[66].mxu1 }
 0x449   : > { %v4455_v57 = vpop.f32.mrb[72].mxu0  ;;  %v4487_v59 = vpop.f32.mrb[67].mxu1 }
 0x44a   : > { %v3142_v25 = vadd.f32 %v4485_v8, %v3077_v4  ;;  %v4488_v42 = vadd.f32 %v4487_v59, %v4486_v50  ;;  %v4456_v0 = vpop.f32.mrb[73].mxu0 }
 0x44b   : > { %v4457_v48 = vadd.f32 %v4456_v0, %v4455_v57  ;;  %v4458_v41 = vpop.f32.mrb[74].mxu0 }
 0x44c   : > { %v3145_v1 = vadd.f32 %v4488_v42, %v3080_v18  ;;  %v4459_v32 = vpop.f32.mrb[75].mxu0 }
 0x44d   : > { %v3093_v23 = vadd.f32 %v4457_v48, %v3028_v35  ;;  %v4460_v9 = vadd.f32 %v4459_v32, %v4458_v41 }
 0x44e   : > { %v4489_v40 = vpop.f32.mrb[68].mxu1 }
 0x44f   : > { %v3096_v19 = vadd.f32 %v4460_v9, %v3031_v51  ;;  %v4490_v46 = vpop.f32.mrb[69].mxu1 }
 0x450   : > { %v4491_v29 = vadd.f32 %v4490_v46, %v4489_v40  ;;  %v4492_v45 = vpop.f32.mrb[70].mxu1 }
 0x451   : > { %v4461_v44 = vpop.f32.mrb[76].mxu0  ;;  %v4493_v61 = vpop.f32.mrb[71].mxu1 }
 0x452   : > { %v3150_v52 = vadd.f32 %v4491_v29, %v3085_v47  ;;  %v4494_v3 = vadd.f32 %v4493_v61, %v4492_v45  ;;  %v4462_v2 = vpop.f32.mrb[77].mxu0 }
 0x453   : > { %v4463_v7 = vadd.f32 %v4462_v2, %v4461_v44  ;;  %v4464_v38 = vpop.f32.mrb[78].mxu0 }
 0x454   : > { %v3153_v6 = vadd.f32 %v4494_v3, %v3088_v39  ;;  %v4465_v28 = vpop.f32.mrb[79].mxu0 }
 0x455   : > { %v3101_v60 = vadd.f32 %v4463_v7, %v3036_v22  ;;  %v4466_v27 = vadd.f32 %v4465_v28, %v4464_v38 }
 0x456   : > { %v4495_v31 = vpop.f32.mrb[72].mxu1 }
 0x457   : > { %v3104_v21 = vadd.f32 %v4466_v27, %v3039_v37  ;;  %v4496_v15 = vpop.f32.mrb[73].mxu1 }
 0x458   : > { %v4497_v54 = vadd.f32 %v4496_v15, %v4495_v31  ;;  %v4498_v35 = vpop.f32.mrb[74].mxu1 }
 0x459   : > { %v4499_v33 = vpop.f32.mrb[75].mxu1  ;;  %v4523_v11 = vpop.f32.mrb[80].mxu0 }
 0x45a   : > { %v3158_v14 = vadd.f32 %v4497_v54, %v3093_v23  ;;  %v4500_v36 = vadd.f32 %v4499_v33, %v4498_v35  ;;  %v4524_v51 = vpop.f32.mrb[81].mxu0 }
 0x45b   : > { %v4525_v20 = vadd.f32 %v4524_v51, %v4523_v11  ;;  %v4526_v4 = vpop.f32.mrb[82].mxu0 }
 0x45c   : > { %v3161_v34 = vadd.f32 %v4500_v36, %v3096_v19  ;;  %v4527_v30 = vpop.f32.mrb[83].mxu0 }
 0x45d   : > { %v3207_v18 = vadd.f32 %v4525_v20, %v3142_v25  ;;  %v4528_v49 = vadd.f32 %v4527_v30, %v4526_v4 }
 0x45e   : > { %v4501_v24 = vpop.f32.mrb[76].mxu1 }
 0x45f   : > { %v3210_v26 = vadd.f32 %v4528_v49, %v3145_v1  ;;  %v4502_v62 = vpop.f32.mrb[77].mxu1 }
 0x460   : > { %v4503_v63 = vadd.f32 %v4502_v62, %v4501_v24  ;;  %v4504_v16 = vpop.f32.mrb[78].mxu1 }
 0x461   : > { %v4505_v12 = vpop.f32.mrb[79].mxu1  ;;  %v4529_v22 = vpop.f32.mrb[84].mxu0 }
 0x462   : > { %v3166_v10 = vadd.f32 %v4503_v63, %v3101_v60  ;;  %v4506_v56 = vadd.f32 %v4505_v12, %v4504_v16  ;;  %v4530_v17 = vpop.f32.mrb[85].mxu0 }
 0x463   : > { %v4531_v43 = vadd.f32 %v4530_v17, %v4529_v22  ;;  %v4532_v37 = vpop.f32.mrb[86].mxu0 }
 0x464   : > { %v3169_v53 = vadd.f32 %v4506_v56, %v3104_v21  ;;  %v4533_v47 = vpop.f32.mrb[87].mxu0 }
 0x465   : > { %v3215_v55 = vadd.f32 %v4531_v43, %v3150_v52  ;;  %v4534_v13 = vadd.f32 %v4533_v47, %v4532_v37  ;;  %v5226_v37 = vld [vmem:[#allocation13 + $0x70] sm:$0xff]  }
 0x466   : > { %v4563_v39 = vpop.f32.mrb[80].mxu1  ;;  %4712 = vmatpush3.bf16.msra.mxu0 %v5226_v37 }
 0x467   : > { %v3218_v58 = vadd.f32 %v4534_v13, %v3153_v6  ;;  %v4564_v8 = vpop.f32.mrb[81].mxu1  ;;  %4713 = vmatprep.subr.bf16.mxu0 %v5614_v5 }
 0x468   : > { %v4565_v50 = vadd.f32 %v4564_v8, %v4563_v39  ;;  %v4566_v57 = vpop.f32.mrb[82].mxu1 }
 0x469   : > { %v4535_v59 = vpop.f32.mrb[88].mxu0  ;;  %v4567_v25 = vpop.f32.mrb[83].mxu1 }
 0x46a   : > { %v3272_v42 = vadd.f32 %v4565_v50, %v3207_v18  ;;  %v4568_v0 = vadd.f32 %v4567_v25, %v4566_v57  ;;  %v4536_v48 = vpop.f32.mrb[89].mxu0  ;;  %v5228_v57 = vld [vmem:[#allocation13 + $0x78] sm:$0xff]  }
 0x46b   : > { %v4537_v41 = vadd.f32 %v4536_v48, %v4535_v59  ;;  %v4538_v1 = vpop.f32.mrb[90].mxu0  ;;  %4714 = vmatpush3.bf16.msra.mxu0 %v5228_v57  ;;  %v5233_v57 = vld [vmem:[#allocation13 + $0xc8] sm:$0xff]  }
 0x46c   : > { %v3275_v32 = vadd.f32 %v4568_v0, %v3210_v26  ;;  %v4539_v23 = vpop.f32.mrb[91].mxu0  ;;  %v5229_v0 = vld [vmem:[#allocation13 + $0x38] sm:$0xff]   ;;  %4739 = vmatprep.subr.bf16.mxu0 %v5614_v5 }
 0x46d   : > { %v3223_v9 = vadd.f32 %v4537_v41, %v3158_v14  ;;  %v4540_v40 = vadd.f32 %v4539_v23, %v4538_v1 }
 0x46e   : > { %v4569_v19 = vpop.f32.mrb[84].mxu1 }
 0x46f   : > { %v3226_v46 = vadd.f32 %v4540_v40, %v3161_v34  ;;  %v4570_v29 = vpop.f32.mrb[85].mxu1 }
 0x470   : > { %v4571_v45 = vadd.f32 %v4570_v29, %v4569_v19  ;;  %v4572_v44 = vpop.f32.mrb[86].mxu1 }
 0x471   : > { %v4541_v61 = vpop.f32.mrb[92].mxu0  ;;  %v4573_v52 = vpop.f32.mrb[87].mxu1 }
 0x472   : > { %v3280_v3 = vadd.f32 %v4571_v45, %v3215_v55  ;;  %v4574_v2 = vadd.f32 %v4573_v52, %v4572_v44  ;;  %v4542_v7 = vpop.f32.mrb[93].mxu0  ;;  %v5227_v55 = vld [vmem:[#allocation13 + $0x30] sm:$0xff]  }
 0x473   : > { %v4543_v38 = vadd.f32 %v4542_v7, %v4541_v61  ;;  %v4544_v6 = vpop.f32.mrb[94].mxu0  ;;  %4732 = vmatpush3.bf16.msra.mxu1 %v5227_v55 }
 0x474   : > { %v3283_v28 = vadd.f32 %v4574_v2, %v3218_v58  ;;  %v4545_v60 = vpop.f32.mrb[95].mxu0  ;;  %4733 = vmatprep.subr.bf16.mxu1 %v5614_v5 }
 0x475   : > { %v3231_v27 = vadd.f32 %v4543_v38, %v3166_v10  ;;  %v4546_v31 = vadd.f32 %v4545_v60, %v4544_v6 }
 0x476   : > { %v4575_v21 = vpop.f32.mrb[88].mxu1 }
 0x477   : > { %v3234_v15 = vadd.f32 %v4546_v31, %v3169_v53  ;;  %v4576_v54 = vpop.f32.mrb[89].mxu1  ;;  %4734 = vmatpush3.bf16.msra.mxu1 %v5229_v0  ;;  %v5237_v0 = vld [vmem:[#allocation13 + $0xd8] sm:$0xff]  }
 0x478   : > { %v4577_v35 = vadd.f32 %v4576_v54, %v4575_v21  ;;  %v4578_v33 = vpop.f32.mrb[90].mxu1  ;;  %4759 = vmatprep.subr.bf16.mxu1 %v5614_v5 }
 0x479   : > { %v4579_v11 = vpop.f32.mrb[91].mxu1  ;;  %v4603_v14 = vpop.f32.mrb[96].mxu0 }
 0x47a   : > { %v3288_v36 = vadd.f32 %v4577_v35, %v3223_v9  ;;  %v4580_v51 = vadd.f32 %v4579_v11, %v4578_v33  ;;  %v4604_v20 = vpop.f32.mrb[97].mxu0 }
 0x47b   : > { %v4605_v4 = vadd.f32 %v4604_v20, %v4603_v14  ;;  %v4606_v34 = vpop.f32.mrb[98].mxu0 }
 0x47c   : > { %v3291_v30 = vadd.f32 %v4580_v51, %v3226_v46  ;;  %v4607_v18 = vpop.f32.mrb[99].mxu0 }
 0x47d   : > { %v4608_v49 = vadd.f32 %v4607_v18, %v4606_v34  ;;  %v3337_v24 = vadd.f32 %v4605_v4, %v3272_v42 }
 0x47e   : > { %v4581_v26 = vpop.f32.mrb[92].mxu1 }
 0x47f   : > { %v4582_v62 = vpop.f32.mrb[93].mxu1  ;;  %v3340_v63 = vadd.f32 %v4608_v49, %v3275_v32 }
 0x480   : > { %v4583_v16 = vadd.f32 %v4582_v62, %v4581_v26  ;;  %v4584_v12 = vpop.f32.mrb[94].mxu1 }
 0x481   : > { %v4585_v22 = vpop.f32.mrb[95].mxu1  ;;  %v4609_v10 = vpop.f32.mrb[100].mxu0 }
 0x482   : > { %v3296_v56 = vadd.f32 %v4583_v16, %v3231_v27  ;;  %v4586_v17 = vadd.f32 %v4585_v22, %v4584_v12  ;;  %v4610_v43 = vpop.f32.mrb[101].mxu0 }
 0x483   : > { %v4611_v53 = vadd.f32 %v4610_v43, %v4609_v10  ;;  %v4612_v47 = vpop.f32.mrb[102].mxu0 }
 0x484   : > { %v3299_v13 = vadd.f32 %v4586_v17, %v3234_v15  ;;  %v4613_v39 = vpop.f32.mrb[103].mxu0 }
 0x485   : > { %v4614_v58 = vadd.f32 %v4613_v39, %v4612_v47  ;;  %v3345_v8 = vadd.f32 %v4611_v53, %v3280_v3 }
 0x486   : > { %v4693_v50 = vpop.f32.mrb[96].mxu1 }
 0x487   : > { %v7092_v59 = vadd.f32 %v4693_v50, %v3345_v8  ;;  %v3401_v25 = vpop.f32.mrb[97].mxu1  ;;  %v3348_v42 = vadd.f32 %v4614_v58, %v3283_v28  ;;  %v5231_v58 = vld [vmem:[#allocation13 + $0xc0] sm:$0xff]   ;;  %v5232_v50 = vld [vmem:[#allocation13 + $0x88] sm:$0xff]  }
 0x488   : > { %v3402_v48 = vadd.f32 %v3401_v25, %v3337_v24  ;;  %v4694_v41 = vpop.f32.mrb[98].mxu1  ;;  %v5235_v25 = vld [vmem:[#allocation13 + $0xd0] sm:$0xff]  }
 0x489   : > { %v3413_v1 = vadd.f32 %v4694_v41, %v3348_v42  ;;  %v4615_v32 = vpop.f32.mrb[104].mxu0  ;;  %v3404_v23 = vpop.f32.mrb[99].mxu1  ;;  %v3434_v19 = vmax.f32 %v7092_v59, 0.0  ;;  %v5234_v59 = vld [vmem:[#allocation13 + $0x90] sm:$0xff]   ;;  %v5236_v42 = vld [vmem:[#allocation13 + $0x98] sm:$0xff]   ;;  %v5239_v41 = vld [vmem:[#allocation13 + $0xe0] sm:$0xff]  }
 0x48a   : > { %v3405_v9 = vadd.f32 %v3404_v23, %v3340_v63  ;;  %v4616_v40 = vpop.f32.mrb[105].mxu0  ;;  %v3432_v44 = vmax.f32 %v3402_v48, 0.0  ;;  %v5238_v48 = vld [vmem:[#allocation13 + $0xa0] sm:$0xff]   ;;  %v5240_v23 = vld [vmem:[#allocation13 + $0xa8] sm:$0xff]  }
 0x48b   : > { %v3435_v46 = vmax.f32 %v3413_v1, 0.0  ;;  %v4617_v29 = vadd.f32 %v4616_v40, %v4615_v32  ;;  %v4618_v45 = vpop.f32.mrb[106].mxu0 }
 0x48c   : > { %v3433_v61 = vmax.f32 %v3405_v9, 0.0  ;;  %v4619_v52 = vpop.f32.mrb[107].mxu0 }
 0x48d   : > { %v4996_v3 = vpack.i.bf16 %v3435_v46, %v3434_v19  ;;  %v4620_v2 = vadd.f32 %v4619_v52, %v4618_v45  ;;  %v3353_v7 = vadd.f32 %v4617_v29, %v3288_v36  ;;  %v5242_v45 = vld [vmem:[#allocation13 + $0xb0] sm:$0xff]  }
 0x48e   : > { %v5001_v38 = vpack.i.bf16 %v3433_v61, %v3432_v44  ;;  %v4697_v6 = vpop.f32.mrb[100].mxu1  ;;  %v5243_v52 = vld [vmem:[#allocation13 + $0xf0] sm:$0xff]  }
 0x48f   : > { %v3417_v28 = vpop.f32.mrb[101].mxu1  ;;  %4997 = vrot.lane.b32.xlu0 %v4996_v3, %s5613_s26  ;;  %v3356_v60 = vadd.f32 %v4620_v2, %v3291_v30 }
 0x490   : > { %v7102_v27 = vadd.f32 %v3417_v28, %v3353_v7  ;;  %v4698_v31 = vpop.f32.mrb[102].mxu1  ;;  %5002 = vrot.lane.b32.xlu1 %v5001_v38, %s5613_s26  ;;  %v5244_v7 = vld [vmem:[#allocation13 + $0xb8] sm:$0xff]  }
 0x491   : > { %v4621_v21 = vpop.f32.mrb[108].mxu0  ;;  %v3420_v15 = vpop.f32.mrb[103].mxu1 }
 0x492   : > { %v7105_v54 = vadd.f32 %v3420_v15, %v3356_v60  ;;  %v4622_v35 = vpop.f32.mrb[109].mxu0  ;;  %v3436_v14 = vmax.f32 %v7102_v27, 0.0 }
 0x493   : > { %v4623_v33 = vadd.f32 %v4622_v35, %v4621_v21  ;;  %v4624_v11 = vpop.f32.mrb[110].mxu0 }
 0x494   : > { %v3437_v36 = vmax.f32 %v7105_v54, 0.0  ;;  %v4625_v51 = vpop.f32.mrb[111].mxu0 }
 0x495   : > { %v3361_v20 = vadd.f32 %v4623_v33, %v3296_v56  ;;  %v4626_v4 = vadd.f32 %v4625_v51, %v4624_v11 }
 0x496   : > { %v5006_v34 = vpack.i.bf16 %v3437_v36, %v3436_v14 }
 0x497   : > { %v7113_v30 = vadd.f32 %v4697_v6, %v3361_v20  ;;  %v3364_v18 = vadd.f32 %v4626_v4, %v3299_v13  ;;  %v5230_v13 = vld [vmem:[#allocation13 + $0x80] sm:$0xff]   ;;  %v5245_v6 = vld [vmem:[#allocation13 + $0xf8] sm:$0xff]  }
 0x498   : > { %5007 = vrot.lane.b32.xlu0 %v5006_v34, %s5613_s26  ;;  %v4342_v34 = vld [vmem:[#allocation14] ss:$0 sm:$0xff] }
 0x499   : > { %v7116_v49 = vadd.f32 %v4698_v31, %v3364_v18  ;;  %v3438_v24 = vmax.f32 %v7113_v30, 0.0 }
 0x49b   : > { %v3439_v26 = vmax.f32 %v7116_v49, 0.0 }
 0x49d   : > { %v5011_v62 = vpack.i.bf16 %v3439_v26, %v3438_v24 }
 0x49f   : > { %5012 = vrot.lane.b32.xlu1 %v5011_v62, %s5613_s26 }
 0x501   : > { %v4998_v63 = vpop.permute.xlu0 %4997 }
 0x502   : > { %v5000_v16 = vunpack.i.h.bf16 %v4998_v63  ;;  %v4999_v12 = vunpack.i.l.bf16 %v4998_v63  ;;  %v5003_v22 = vpop.permute.xlu1 %5002 }
 0x503   : > { %v5005_v10 = vunpack.i.h.bf16 %v5003_v22  ;;  %v5004_v56 = vunpack.i.l.bf16 %v5003_v22 }
 0x504   : > { %v3459_v17 = vmax.f32 %v3435_v46, %v5000_v16  ;;  %v3458_v43 = vmax.f32 %v3434_v19, %v4999_v12  ;;  %v5241_v19 = vld [vmem:[#allocation13 + $0xe8] sm:$0xff]  }
 0x505   : > { %v3457_v37 = vmax.f32 %v3433_v61, %v5005_v10  ;;  %v3456_v53 = vmax.f32 %v3432_v44, %v5004_v56 }
 0x506   : > { %v3482_v47 = vmax.f32 %v3458_v43, %v3459_v17 }
 0x507   : > { %v3464_v55 = vmax.f32 %v3456_v53, %v3457_v37 }
 0x508   : > { %v3483_v39 = vpack.c.bf16 %v3482_v47, %v3482_v47 }
 0x509   : > { %v3465_v8 = vpack.c.bf16 %v3464_v55, %v3464_v55 }
 0x50a   : > { %4716 = vmatmul.mubr.bf16.vlgmr.msra.gmra.mrb[112].mxu0 %v3483_v39  ;;  %v5008_v1 = vpop.permute.xlu0 %5007 }
 0x50b   : > { %4740 = vmatpush3.bf16.msra.mxu0 %v5230_v13  ;;  %4736 = vmatmul.mubr.bf16.vlgmr.msra.gmra.mrb[104].mxu1 %v3465_v8  ;;  %v5010_v9 = vunpack.i.h.bf16 %v5008_v1  ;;  %v5009_v40 = vunpack.i.l.bf16 %v5008_v1 }
 0x50c   : > { %4760 = vmatpush3.bf16.msra.mxu1 %v5231_v58  ;;  %4741 = vmatprep.subr.bf16.mxu0 %v5614_v5 }
 0x50d   : > { %4761 = vmatprep.subr.bf16.mxu1 %v5614_v5  ;;  %4755 = vmatprep.mubr.msk.bf16.mxu0 %vm5615_vm4, %v5614_v5  ;;  %v3461_v44 = vmax.f32 %v3437_v36, %v5010_v9  ;;  %v3460_v61 = vmax.f32 %v3436_v14, %v5009_v40 }
 0x50e   : > { %4775 = vmatprep.mubr.msk.bf16.mxu1 %vm5615_vm4, %v5614_v5 }
 0x50f   : > { %4742 = vmatpush3.bf16.msra.mxu0 %v5232_v50  ;;  %v3677_v38 = vmax.f32 %v3460_v61, %v3461_v44 }
 0x510   : > { %4762 = vmatpush3.bf16.msra.mxu1 %v5233_v57  ;;  %4743 = vmatprep.subr.bf16.mxu0 %v5614_v5 }
 0x511   : > { %4763 = vmatprep.subr.bf16.mxu1 %v5614_v5  ;;  %v5013_v32 = vpop.permute.xlu1 %5012  ;;  %v3678_v60 = vpack.c.bf16 %v3677_v38, %v3677_v38 }
 0x512   : > { %v5015_v46 = vunpack.i.h.bf16 %v5013_v32  ;;  %v5014_v29 = vunpack.i.l.bf16 %v5013_v32 }
 0x513   : > { %4744 = vmatpush3.bf16.msra.mxu0 %v5234_v59 }
 0x514   : > { %4764 = vmatpush3.bf16.msra.mxu1 %v5235_v25  ;;  %4745 = vmatprep.subr.bf16.mxu0 %v5614_v5  ;;  %v3463_v3 = vmax.f32 %v3439_v26, %v5015_v46  ;;  %v3462_v2 = vmax.f32 %v3438_v24, %v5014_v29 }
 0x515   : > { %4765 = vmatprep.subr.bf16.mxu1 %v5614_v5 }
 0x516   : > { %v3785_v28 = vmax.f32 %v3462_v2, %v3463_v3 }
 0x517   : > { %4746 = vmatpush3.bf16.msra.mxu0 %v5236_v42 }
 0x518   : > { %4766 = vmatpush3.bf16.msra.mxu1 %v5237_v0  ;;  %4747 = vmatprep.subr.bf16.mxu0 %v5614_v5  ;;  %v3786_v27 = vpack.c.bf16 %v3785_v28, %v3785_v28 }
 0x519   : > { %4767 = vmatprep.subr.bf16.mxu1 %v5614_v5 }
 0x51b   : > { %4748 = vmatpush3.bf16.msra.mxu0 %v5238_v48 }
 0x51c   : > { %4768 = vmatpush3.bf16.msra.mxu1 %v5239_v41  ;;  %4749 = vmatprep.subr.bf16.mxu0 %v5614_v5 }
 0x51d   : > { %4769 = vmatprep.subr.bf16.mxu1 %v5614_v5 }
 0x51f   : > { %4750 = vmatpush3.bf16.msra.mxu0 %v5240_v23 }
 0x520   : > { %4770 = vmatpush3.bf16.msra.mxu1 %v5241_v19  ;;  %4751 = vmatprep.subr.bf16.mxu0 %v5614_v5 }
 0x521   : > { %4771 = vmatprep.subr.bf16.mxu1 %v5614_v5 }
 0x523   : > { %4752 = vmatpush3.bf16.msra.mxu0 %v5242_v45 }
 0x524   : > { %4772 = vmatpush3.bf16.msra.mxu1 %v5243_v52  ;;  %4753 = vmatprep.subr.bf16.mxu0 %v5614_v5 }
 0x525   : > { %4773 = vmatprep.subr.bf16.mxu1 %v5614_v5 }
 0x527   : > { %4754 = vmatpush3.bf16.msra.mxu0 %v5244_v7 }
 0x528   : > { %4774 = vmatpush3.bf16.msra.mxu1 %v5245_v6 }
 0x52a   : > { %4756 = vmatmul.mubr.bf16.vlgmr.msra.gmra.mrb[116].mxu0 %v3678_v60 }
 0x52b   : > { %4776 = vmatmul.mubr.bf16.vlgmr.msra.gmra.mrb[108].mxu1 %v3786_v27 }
 0x5dd   : > { %v3583_v31 = vpop.f32.mrb[112].mxu0 }
 0x5de   : > { %v4717_v21 = vpop.f32.mrb[113].mxu0  ;;  %v3671_v15 = vpop.f32.mrb[104].mxu1 }
 0x5df   : > { %v3672_v54 = vadd.f32 %v3671_v15, %v3583_v31  ;;  %v3586_v35 = vpop.f32.mrb[114].mxu0  ;;  %v4737_v33 = vpop.f32.mrb[105].mxu1 }
 0x5e0   : > { %v4718_v11 = vpop.f32.mrb[115].mxu0  ;;  %v3674_v14 = vpop.f32.mrb[106].mxu1 }
 0x5e1   : > { %v4738_v36 = vpop.f32.mrb[107].mxu1 }
 0x5fd   : > { %v3778_v51 = vpop.f32.mrb[116].mxu0 }
 0x5fe   : > { %v3784_v5 = vadd.f32 %v3778_v51, %v3672_v54  ;;  %v4757_v20 = vpop.f32.mrb[117].mxu0  ;;  %v3886_v4 = vpop.f32.mrb[108].mxu1 }
 0x5ff   : > { %v3781_v30 = vpop.f32.mrb[118].mxu0  ;;  %v4777_v18 = vpop.f32.mrb[109].mxu1 }
 0x600   : > { %v3892_v49 = vadd.f32 %v3886_v4, %v3784_v5  ;;  %v4758_v24 = vpop.f32.mrb[119].mxu0  ;;  %v3889_v26 = vpop.f32.mrb[110].mxu1 }
 0x601   : > { %v4778_v62 = vpop.f32.mrb[111].mxu1 }
 0x602   : > { %v3900_v63 = vadd.f32 %v4342_v34, %v3892_v49 }
 0x604   : > { %3901 = vst [vmem:[%s442_s19] sm:$0xff] %v3900_v63 }
 0x605   : > { %5521 = shalt.err (!%p5518_p3)
}
 0x606   : > { %s5522_s6 = scalar_lea.hbm %s7156_s20, 128  ;;  %s5526_s12 = scalar_lea.hbm %s7208_s8, 256 }
 0x607   : > { %p5523_p12 = scmp.ne.s32.totalorder %s7156_s20, %s5522_s6  ;;  %p5527_p0 = scmp.lt.u32.totalorder %s7156_s20, %s7208_s8 }
 0x608   : > { %p5528_p5 = scmp.lt.u32.totalorder %s5526_s12, %s5522_s6  ;;  %p5530_p4 = scmp.lt.u32.totalorder %s5522_s6, %s7156_s20 }
 0x609   : > { %p5524_p1 = pnand %p5523_p12, %p7249_p10 }
 0x60a   : > { %p5529_p2 = por %p5528_p5, %p5527_p0 }
 0x60b   : > { %p5525_p13 = pneg %p5524_p1 }
 0x60c   : > { %p5531_p6 = por %p5530_p4, %p5529_p2 }
 0x60e   : > { %p5532_p7 = pnand %p5531_p6, %p5525_p13 }
 0x610   : > { %5535 = shalt.err (!%p5532_p7)
}
 0x611   : > { %4810 = dma.vmem_to_hbm [thread:$0]  (%p7249_p10), %s7158_s21, 128, %s7156_s20, %s3903_s2  }
 0x612 PF: > { %s3928_s3 = sand.u32 1, %s5582_s27   ;;  %p7250_p9 = scmp.ne.s32.totalorder %s7234_s10, 0 }
 0x613   : > { %p7251_p8 = scmp.ge.s32.totalorder %s5594_s30, 2  ;;  %s3929_s26 = scalar_lea.sflag [#allocation4], %s3928_s3 }
 0x615   : > { %p4839_p11 = pnand %p7251_p8, %p7250_p9 }
 0x617   : > { %5577 = dma.done.wait (!%p4839_p11), %s3929_s26, 128  }
 0x618   : > { %5579 = vsyncadd (!%p4839_p11), %s3929_s26, 4294967168  ;;  %p27_p3 = scmp.ge.s32.totalorder %s5854_s23, 4   ;;  %s7252_s27 = smov %s5586_s28 }
 0x619   : > { %s7253_s28 = smov %s5590_s29  ;;  %s7254_s29 = smov %s5865_s24 }
 0x61a   : > { %s7255_s30 = smov %s5854_s23  ;;  %29 = sbr.rel (!%p27_p3) target bundleno = 17 (0x11), region = 137 }
 0x621   :  { %3934 = vsyncpa [#allocation3], 1 }
 0x622   :  { %3936 = vsyncpa [#allocation3 + $0x1], 1 }
 0x623   :  { %3937 = vsyncpa [#allocation6], 1 }
 0x624   :  { %3939 = vsyncpa [#allocation6 + $0x1], 1 }
 0x625   :  { %3940 = vsyncpa [#allocation9], 1 }
 0x626   :  { %3941 = vsyncpa [#allocation12], 1 }
 0x627   :  { %3942 = vsyncpa [#allocation15], 1 }
 0x628   :  { %3943 = vsyncpa [#allocation4], 1 }
 0x629   :  { %3945 = vsyncpa [#allocation4 + $0x1], 1 }

</bundles_post_ra>
